<compile_context>
chip_gen: v5e
topology: v5e:2x2
jax: 0.10.0
libtpu: 0.0.40
codegen_flags: <defaults>
</compile_context>

<pallas_src>
import functools

import jax
import jax.numpy as jnp
from jax import lax
from jax.experimental import pallas as pl
from jax.experimental.pallas import tpu as pltpu


def _round_up(x: int, m: int) -> int:
    return (x + m - 1) // m * m


# ---------------------------------------------------------------------------
# Fused kernel: Q/K/V projection + per-head attention for one batch image.
# ---------------------------------------------------------------------------
def _fused_mhsa_kernel(x_ref, w_ref, b_ref, o_ref, *, heads, head_dim, l_actual):
    # x_ref: (C, Lp)   one batch image, channel-major pixels (1x1-conv layout)
    # w_ref: (3C, C)   stacked [Wq; Wk; Wv]   (VMEM-resident across steps)
    # b_ref: (3C, 1)   stacked [bq; bk; bv]
    # o_ref: (C, Lp)
    x = x_ref[...]
    w = w_ref[...]
    C = heads * head_dim
    Lp = x.shape[-1]

    # ---- fused 1x1-conv projection: qkv[o, l] = sum_c W[o, c] * x[c, l] + b[o]
    qkv = jnp.dot(w, x, preferred_element_type=jnp.float32)
    qkv = qkv + b_ref[...].astype(jnp.float32)
    # Keep subsequent MXU operands in the input dtype (bf16 fast path when
    # inputs are bf16); softmax math below stays f32 regardless.
    qkv = qkv.astype(x.dtype)

    # Mask for padded pixel columns (static: compiled away when Lp == L).
    if l_actual != Lp:
        col_ids = lax.broadcasted_iota(jnp.int32, (Lp, Lp), 1)
        valid_cols = col_ids < l_actual

    # ---- per-head attention (static unrolled loop; slices are sublane-aligned)
    for h in range(heads):
        q_h = qkv[h * head_dim:(h + 1) * head_dim, :]                # (d, Lp)
        k_h = qkv[C + h * head_dim:C + (h + 1) * head_dim, :]        # (d, Lp)
        v_h = qkv[2 * C + h * head_dim:2 * C + (h + 1) * head_dim, :]

        # energy[i, j] = sum_d q[d, i] * k[d, j]   -> (Lp, Lp), f32 accumulate
        energy = lax.dot_general(
            q_h, k_h, (((0,), (0,)), ((), ())),
            preferred_element_type=jnp.float32)
        if l_actual != Lp:
            energy = jnp.where(valid_cols, energy, -1e30)

        # numerically stable softmax over the last axis (f32 throughout)
        m = jnp.max(energy, axis=-1, keepdims=True)
        p = jnp.exp(energy - m)
        denom = jnp.sum(p, axis=-1, keepdims=True)
        attn = p * pl.reciprocal(denom, approx=True)

        # out[d, i] = sum_j v[d, j] * attn[i, j]   -> (d, Lp)
        out_h = lax.dot_general(
            v_h, attn.astype(v_h.dtype), (((1,), (1,)), ((), ())),
            preferred_element_type=jnp.float32)
        o_ref[h * head_dim:(h + 1) * head_dim, :] = out_h.astype(o_ref.dtype)


# ---------------------------------------------------------------------------
# MHSA forward (pos_emb=False path)
# ---------------------------------------------------------------------------
def mhsa_forward(x, wq, bq, wk, bk, wv, bv, heads):
    """x: (N, C, W, H); conv weights (C, C, 1, 1); biases (C,)."""
    N, C, W, H = x.shape
    L = W * H
    d = C // heads
    Lp = _round_up(L, 128)   # lane-dense last dim for all blocks/stores
    C3 = 3 * C

    # NCHW -> (N, C, L) is a free reshape (contiguous); pad pixels if needed.
    x_cl = x.reshape(N, C, L)
    if Lp != L:
        x_cl = jnp.pad(x_cl, ((0, 0), (0, 0), (0, Lp - L)))

    # Conv weights (C_out, C_in, 1, 1) -> stacked (3C, C); biases -> (3C, 1).
    w_all = jnp.concatenate(
        [wq.reshape(C, C), wk.reshape(C, C), wv.reshape(C, C)], axis=0)
    b_all = jnp.concatenate([bq, bk, bv], axis=0).reshape(C3, 1)

    kernel = functools.partial(
        _fused_mhsa_kernel, heads=heads, head_dim=d, l_actual=L)

    out = pl.pallas_call(
        kernel,
        out_shape=jax.ShapeDtypeStruct((N, C, Lp), x.dtype),
        grid_spec=pltpu.PrefetchScalarGridSpec(
            num_scalar_prefetch=0,
            grid=(N,),
            in_specs=[
                pl.BlockSpec((None, C, Lp), lambda n: (n, 0, 0)),
                pl.BlockSpec((C3, C), lambda n: (0, 0)),   # weight: resident
                pl.BlockSpec((C3, 1), lambda n: (0, 0)),   # bias: resident
            ],
            out_specs=pl.BlockSpec((None, C, Lp), lambda n: (n, 0, 0)),
        ),
        compiler_params=pltpu.CompilerParams(
            dimension_semantics=("parallel",),
        ),
    )(x_cl, w_all, b_all)

    if Lp != L:
        out = out[:, :, :L]
    return out.reshape(N, C, W, H)


# ---------------------------------------------------------------------------
# Pure-JAX reference (mirrors the PyTorch forward, pos_emb=False)
# ---------------------------------------------------------------------------
def mhsa_reference(x, wq, bq, wk, bk, wv, bv, heads):
    N, C, W, H = x.shape
    L = W * H
    d = C // heads

    def conv1x1(w, b):
        y = jnp.einsum('oc,nchw->nohw', w.reshape(C, C), x)
        y = y + b.reshape(1, C, 1, 1)
        return y.reshape(N, heads, d, L)

    q = conv1x1(wq, bq)
    k = conv1x1(wk, bk)
    v = conv1x1(wv, bv)
    cc = jnp.einsum('nhdi,nhdj->nhij', q, k)          # q^T k
    attn = jax.nn.softmax(cc, axis=-1)
    out = jnp.einsum('nhdj,nhij->nhdi', v, attn)      # v @ attn^T
    return out.reshape(N, C, W, H)


if __name__ == "__main__":
    key = jax.random.PRNGKey(0)
    kx, kwq, kbq, kwk, kbk, kwv, kbv = jax.random.split(key, 7)

    # Small shapes consistent with MHSA: batch=2, channels=64, heads=4
    # (head_dim=16), spatial 16x16 (seq L=256 -> lane-dense blocks).
    N, C, W, H, heads = 2, 64, 16, 16, 4

    x = jax.random.normal(kx, (N, C, W, H), dtype=jnp.float32)
    wq = jax.random.normal(kwq, (C, C, 1, 1), dtype=jnp.float32) * 0.1
    bq = jax.random.normal(kbq, (C,), dtype=jnp.float32) * 0.1
    wk = jax.random.normal(kwk, (C, C, 1, 1), dtype=jnp.float32) * 0.1
    bk = jax.random.normal(kbk, (C,), dtype=jnp.float32) * 0.1
    wv = jax.random.normal(kwv, (C, C, 1, 1), dtype=jnp.float32) * 0.1
    bv = jax.random.normal(kbv, (C,), dtype=jnp.float32) * 0.1

    out = mhsa_forward(x, wq, bq, wk, bk, wv, bv, heads)
    out = jax.block_until_ready(out)

    ref = mhsa_reference(x, wq, bq, wk, bk, wv, bv, heads)
    assert out.shape == x.shape, f"shape mismatch: {out.shape} vs {x.shape}"
    # Tolerance accommodates the EUP approximate reciprocal in the softmax
    # denominator and f32 MXU accumulation-order differences.
    assert jnp.allclose(out, ref, atol=5e-3, rtol=5e-3), "mismatch vs reference"

    print("KERNEL_OK")
</pallas_src>

<mosaic_0001>
module attributes {stable_mosaic.version = 11 : i64} {
  func.func @_fused_mhsa_kernel(%arg0: i32, %arg1: memref<1x64x256xf32, #tpu.memory_space<vmem>>, %arg2: memref<192x64xf32, #tpu.memory_space<vmem>>, %arg3: memref<192x1xf32, #tpu.memory_space<vmem>>, %arg4: memref<1x64x256xf32, #tpu.memory_space<vmem>>) attributes {dimension_semantics = [#tpu.dimension_semantics<parallel>], iteration_bounds = array<i64: 2>, scalar_prefetch = 0 : i64, scratch_operands = 0 : i64, tpu.core_type = #tpu.core_type<tc>, window_params = [{transform_indices = @transform_0, window_bounds = array<i64: 1, 64, 256>}, {pipeline_mode = #tpu.pipeline_mode<synchronous>, transform_indices = @transform_1, window_bounds = array<i64: 192, 64>}, {pipeline_mode = #tpu.pipeline_mode<synchronous>, transform_indices = @transform_2, window_bounds = array<i64: 192, 1>}, {transform_indices = @transform_3, window_bounds = array<i64: 1, 64, 256>}]} {
    %c0 = arith.constant 0 : index
    %c0_0 = arith.constant 0 : index
    %c0_1 = arith.constant 0 : index
    %0 = vector.load %arg1[%c0, %c0_0, %c0_1] : memref<1x64x256xf32, #tpu.memory_space<vmem>>, vector<1x64x256xf32>
    %1 = vector.shape_cast %0 : vector<1x64x256xf32> to vector<64x256xf32>
    %c0_2 = arith.constant 0 : index
    %c0_3 = arith.constant 0 : index
    %2 = vector.load %arg2[%c0_2, %c0_3] : memref<192x64xf32, #tpu.memory_space<vmem>>, vector<192x64xf32>
    %cst = arith.constant dense<0.000000e+00> : vector<192x256xf32>
    %3 = tpu.matmul %2, %1, %cst {dimension_numbers = #tpu.dot_dimension_numbers<[1], [0], [0], [1], [0, 0, 1, 1], [], []>} : vector<192x64xf32>, vector<64x256xf32>, vector<192x256xf32> -> vector<192x256xf32>
    %c0_4 = arith.constant 0 : index
    %c0_5 = arith.constant 0 : index
    %4 = vector.load %arg3[%c0_4, %c0_5] : memref<192x1xf32, #tpu.memory_space<vmem>>, vector<192x1xf32>
    %5 = vector.broadcast %4 : vector<192x1xf32> to vector<192x256xf32>
    %6 = arith.addf %3, %5 : vector<192x256xf32>
    %7 = vector.extract_strided_slice %6 {offsets = [0, 0], sizes = [16, 256], strides = [1, 1]} : vector<192x256xf32> to vector<16x256xf32>
    %8 = vector.extract_strided_slice %6 {offsets = [64, 0], sizes = [16, 256], strides = [1, 1]} : vector<192x256xf32> to vector<16x256xf32>
    %9 = vector.extract_strided_slice %6 {offsets = [128, 0], sizes = [16, 256], strides = [1, 1]} : vector<192x256xf32> to vector<16x256xf32>
    %cst_6 = arith.constant dense<0.000000e+00> : vector<256x256xf32>
    %10 = tpu.matmul %7, %8, %cst_6 {dimension_numbers = #tpu.dot_dimension_numbers<[0], [0], [1], [1], [0, 1, 1, 1], [], []>} : vector<16x256xf32>, vector<16x256xf32>, vector<256x256xf32> -> vector<256x256xf32>
    %cst_7 = arith.constant dense<0xFF800000> : vector<256xf32>
    %11 = vector.multi_reduction <maximumf>, %10, %cst_7 [1] : vector<256x256xf32> to vector<256xf32>
    %12 = vector.shape_cast %11 : vector<256xf32> to vector<256x1xf32>
    %13 = vector.broadcast %12 : vector<256x1xf32> to vector<256x256xf32>
    %14 = arith.subf %10, %13 : vector<256x256xf32>
    %15 = math.exp %14 : vector<256x256xf32>
    %cst_8 = arith.constant dense<0.000000e+00> : vector<256xf32>
    %16 = vector.multi_reduction <add>, %15, %cst_8 [1] : vector<256x256xf32> to vector<256xf32>
    %17 = vector.shape_cast %16 : vector<256xf32> to vector<256x1xf32>
    %18 = tpu.reciprocal %17 {approx = true} : vector<256x1xf32> -> vector<256x1xf32>
    %19 = vector.broadcast %18 : vector<256x1xf32> to vector<256x256xf32>
    %20 = arith.mulf %15, %19 : vector<256x256xf32>
    %cst_9 = arith.constant dense<0.000000e+00> : vector<16x256xf32>
    %21 = tpu.matmul %9, %20, %cst_9 {dimension_numbers = #tpu.dot_dimension_numbers<[1], [1], [0], [0], [0, 0, 1, 0], [], []>} : vector<16x256xf32>, vector<256x256xf32>, vector<16x256xf32> -> vector<16x256xf32>
    %c0_10 = arith.constant 0 : index
    %c0_11 = arith.constant 0 : index
    %c0_12 = arith.constant 0 : index
    %22 = vector.load %arg4[%c0_10, %c0_11, %c0_12] : memref<1x64x256xf32, #tpu.memory_space<vmem>>, vector<1x16x256xf32>
    %23 = vector.shape_cast %22 : vector<1x16x256xf32> to vector<16x256xf32>
    %24 = vector.shape_cast %21 : vector<16x256xf32> to vector<1x16x256xf32>
    tpu.vector_store %arg4[%c0_10, %c0_11, %c0_12], %24 {strides = array<i32>} : memref<1x64x256xf32, #tpu.memory_space<vmem>>, vector<1x16x256xf32>,
    %25 = vector.extract_strided_slice %6 {offsets = [16, 0], sizes = [16, 256], strides = [1, 1]} : vector<192x256xf32> to vector<16x256xf32>
    %26 = vector.extract_strided_slice %6 {offsets = [80, 0], sizes = [16, 256], strides = [1, 1]} : vector<192x256xf32> to vector<16x256xf32>
    %27 = vector.extract_strided_slice %6 {offsets = [144, 0], sizes = [16, 256], strides = [1, 1]} : vector<192x256xf32> to vector<16x256xf32>
    %cst_13 = arith.constant dense<0.000000e+00> : vector<256x256xf32>
    %28 = tpu.matmul %25, %26, %cst_13 {dimension_numbers = #tpu.dot_dimension_numbers<[0], [0], [1], [1], [0, 1, 1, 1], [], []>} : vector<16x256xf32>, vector<16x256xf32>, vector<256x256xf32> -> vector<256x256xf32>
    %cst_14 = arith.constant dense<0xFF800000> : vector<256xf32>
    %29 = vector.multi_reduction <maximumf>, %28, %cst_14 [1] : vector<256x256xf32> to vector<256xf32>
    %30 = vector.shape_cast %29 : vector<256xf32> to vector<256x1xf32>
    %31 = vector.broadcast %30 : vector<256x1xf32> to vector<256x256xf32>
    %32 = arith.subf %28, %31 : vector<256x256xf32>
    %33 = math.exp %32 : vector<256x256xf32>
    %cst_15 = arith.constant dense<0.000000e+00> : vector<256xf32>
    %34 = vector.multi_reduction <add>, %33, %cst_15 [1] : vector<256x256xf32> to vector<256xf32>
    %35 = vector.shape_cast %34 : vector<256xf32> to vector<256x1xf32>
    %36 = tpu.reciprocal %35 {approx = true} : vector<256x1xf32> -> vector<256x1xf32>
    %37 = vector.broadcast %36 : vector<256x1xf32> to vector<256x256xf32>
    %38 = arith.mulf %33, %37 : vector<256x256xf32>
    %cst_16 = arith.constant dense<0.000000e+00> : vector<16x256xf32>
    %39 = tpu.matmul %27, %38, %cst_16 {dimension_numbers = #tpu.dot_dimension_numbers<[1], [1], [0], [0], [0, 0, 1, 0], [], []>} : vector<16x256xf32>, vector<256x256xf32>, vector<16x256xf32> -> vector<16x256xf32>
    %c0_17 = arith.constant 0 : index
    %c16 = arith.constant 16 : index
    %c0_18 = arith.constant 0 : index
    %40 = vector.load %arg4[%c0_17, %c16, %c0_18] : memref<1x64x256xf32, #tpu.memory_space<vmem>>, vector<1x16x256xf32>
    %41 = vector.shape_cast %40 : vector<1x16x256xf32> to vector<16x256xf32>
    %42 = vector.shape_cast %39 : vector<16x256xf32> to vector<1x16x256xf32>
    tpu.vector_store %arg4[%c0_17, %c16, %c0_18], %42 {strides = array<i32>} : memref<1x64x256xf32, #tpu.memory_space<vmem>>, vector<1x16x256xf32>,
    %43 = vector.extract_strided_slice %6 {offsets = [32, 0], sizes = [16, 256], strides = [1, 1]} : vector<192x256xf32> to vector<16x256xf32>
    %44 = vector.extract_strided_slice %6 {offsets = [96, 0], sizes = [16, 256], strides = [1, 1]} : vector<192x256xf32> to vector<16x256xf32>
    %45 = vector.extract_strided_slice %6 {offsets = [160, 0], sizes = [16, 256], strides = [1, 1]} : vector<192x256xf32> to vector<16x256xf32>
    %cst_19 = arith.constant dense<0.000000e+00> : vector<256x256xf32>
    %46 = tpu.matmul %43, %44, %cst_19 {dimension_numbers = #tpu.dot_dimension_numbers<[0], [0], [1], [1], [0, 1, 1, 1], [], []>} : vector<16x256xf32>, vector<16x256xf32>, vector<256x256xf32> -> vector<256x256xf32>
    %cst_20 = arith.constant dense<0xFF800000> : vector<256xf32>
    %47 = vector.multi_reduction <maximumf>, %46, %cst_20 [1] : vector<256x256xf32> to vector<256xf32>
    %48 = vector.shape_cast %47 : vector<256xf32> to vector<256x1xf32>
    %49 = vector.broadcast %48 : vector<256x1xf32> to vector<256x256xf32>
    %50 = arith.subf %46, %49 : vector<256x256xf32>
    %51 = math.exp %50 : vector<256x256xf32>
    %cst_21 = arith.constant dense<0.000000e+00> : vector<256xf32>
    %52 = vector.multi_reduction <add>, %51, %cst_21 [1] : vector<256x256xf32> to vector<256xf32>
    %53 = vector.shape_cast %52 : vector<256xf32> to vector<256x1xf32>
    %54 = tpu.reciprocal %53 {approx = true} : vector<256x1xf32> -> vector<256x1xf32>
    %55 = vector.broadcast %54 : vector<256x1xf32> to vector<256x256xf32>
    %56 = arith.mulf %51, %55 : vector<256x256xf32>
    %cst_22 = arith.constant dense<0.000000e+00> : vector<16x256xf32>
    %57 = tpu.matmul %45, %56, %cst_22 {dimension_numbers = #tpu.dot_dimension_numbers<[1], [1], [0], [0], [0, 0, 1, 0], [], []>} : vector<16x256xf32>, vector<256x256xf32>, vector<16x256xf32> -> vector<16x256xf32>
    %c0_23 = arith.constant 0 : index
    %c32 = arith.constant 32 : index
    %c0_24 = arith.constant 0 : index
    %58 = vector.load %arg4[%c0_23, %c32, %c0_24] : memref<1x64x256xf32, #tpu.memory_space<vmem>>, vector<1x16x256xf32>
    %59 = vector.shape_cast %58 : vector<1x16x256xf32> to vector<16x256xf32>
    %60 = vector.shape_cast %57 : vector<16x256xf32> to vector<1x16x256xf32>
    tpu.vector_store %arg4[%c0_23, %c32, %c0_24], %60 {strides = array<i32>} : memref<1x64x256xf32, #tpu.memory_space<vmem>>, vector<1x16x256xf32>,
    %61 = vector.extract_strided_slice %6 {offsets = [48, 0], sizes = [16, 256], strides = [1, 1]} : vector<192x256xf32> to vector<16x256xf32>
    %62 = vector.extract_strided_slice %6 {offsets = [112, 0], sizes = [16, 256], strides = [1, 1]} : vector<192x256xf32> to vector<16x256xf32>
    %63 = vector.extract_strided_slice %6 {offsets = [176, 0], sizes = [16, 256], strides = [1, 1]} : vector<192x256xf32> to vector<16x256xf32>
    %cst_25 = arith.constant dense<0.000000e+00> : vector<256x256xf32>
    %64 = tpu.matmul %61, %62, %cst_25 {dimension_numbers = #tpu.dot_dimension_numbers<[0], [0], [1], [1], [0, 1, 1, 1], [], []>} : vector<16x256xf32>, vector<16x256xf32>, vector<256x256xf32> -> vector<256x256xf32>
    %cst_26 = arith.constant dense<0xFF800000> : vector<256xf32>
    %65 = vector.multi_reduction <maximumf>, %64, %cst_26 [1] : vector<256x256xf32> to vector<256xf32>
    %66 = vector.shape_cast %65 : vector<256xf32> to vector<256x1xf32>
    %67 = vector.broadcast %66 : vector<256x1xf32> to vector<256x256xf32>
    %68 = arith.subf %64, %67 : vector<256x256xf32>
    %69 = math.exp %68 : vector<256x256xf32>
    %cst_27 = arith.constant dense<0.000000e+00> : vector<256xf32>
    %70 = vector.multi_reduction <add>, %69, %cst_27 [1] : vector<256x256xf32> to vector<256xf32>
    %71 = vector.shape_cast %70 : vector<256xf32> to vector<256x1xf32>
    %72 = tpu.reciprocal %71 {approx = true} : vector<256x1xf32> -> vector<256x1xf32>
    %73 = vector.broadcast %72 : vector<256x1xf32> to vector<256x256xf32>
    %74 = arith.mulf %69, %73 : vector<256x256xf32>
    %cst_28 = arith.constant dense<0.000000e+00> : vector<16x256xf32>
    %75 = tpu.matmul %63, %74, %cst_28 {dimension_numbers = #tpu.dot_dimension_numbers<[1], [1], [0], [0], [0, 0, 1, 0], [], []>} : vector<16x256xf32>, vector<256x256xf32>, vector<16x256xf32> -> vector<16x256xf32>
    %c0_29 = arith.constant 0 : index
    %c48 = arith.constant 48 : index
    %c0_30 = arith.constant 0 : index
    %76 = vector.load %arg4[%c0_29, %c48, %c0_30] : memref<1x64x256xf32, #tpu.memory_space<vmem>>, vector<1x16x256xf32>
    %77 = vector.shape_cast %76 : vector<1x16x256xf32> to vector<16x256xf32>
    %78 = vector.shape_cast %75 : vector<16x256xf32> to vector<1x16x256xf32>
    tpu.vector_store %arg4[%c0_29, %c48, %c0_30], %78 {strides = array<i32>} : memref<1x64x256xf32, #tpu.memory_space<vmem>>, vector<1x16x256xf32>,
    return
  }
  func.func @transform_0(%arg0: i32) -> (i32, i32, i32) {
    %c0_i32 = arith.constant 0 : i32
    %c0_i32_0 = arith.constant 0 : i32
    %c0_i32_1 = arith.constant 0 : i32
    return %arg0, %c0_i32, %c0_i32_0 : i32, i32, i32
  }
  func.func @transform_1(%arg0: i32) -> (i32, i32) {
    %c0_i32 = arith.constant 0 : i32
    %c0_i32_0 = arith.constant 0 : i32
    %c0_i32_1 = arith.constant 0 : i32
    return %c0_i32, %c0_i32_0 : i32, i32
  }
  func.func @transform_2(%arg0: i32) -> (i32, i32) {
    %c0_i32 = arith.constant 0 : i32
    %c0_i32_0 = arith.constant 0 : i32
    %c0_i32_1 = arith.constant 0 : i32
    return %c0_i32, %c0_i32_0 : i32, i32
  }
  func.func @transform_3(%arg0: i32) -> (i32, i32, i32) {
    %c0_i32 = arith.constant 0 : i32
    %c0_i32_0 = arith.constant 0 : i32
    %c0_i32_1 = arith.constant 0 : i32
    return %arg0, %c0_i32, %c0_i32_0 : i32, i32, i32
  }
}

</mosaic_0001>

<bundles_post_ra>
// kernel: tpu_custom_call.1
= control target key start
LH: loop header
LB: loop body
LE: loop exit
PB: predicated region body
PF: predicated region fallthrough
CT: control target
= control target key end

     0   :  { %8 = vsyncpa [#allocation3], 0  ;;  %s8960_s0 = inlined_call_operand.vmem [shape: f32[2,64,256], index: 0, kind: input, shape index: {}]   ;;  %s8961_s1 = inlined_call_operand.vmem [shape: f32[192,64], index: 1, kind: input, shape index: {}]   ;;  %s8962_s2 = inlined_call_operand.vmem [shape: f32[192,1], index: 2, kind: input, shape index: {}]   ;;  %s8963_s3 = inlined_call_operand.hbm [shape: f32[2,64,256], index: 3, kind: output, shape index: {}]  }
   0x1   :  { %10 = vsyncpa [#allocation3 + $0x1], 0  ;;  %s5766_s12 = smov 0   ;;  %s5768_s13 = smov 0  }
   0x2   :  { %s5770_s14 = smov 0   ;;  %s5772_s15 = smov 0  }
   0x3 LB: > { %s5787_s16 = sadd.s32 4294967295, %s5741_s15   ;;  %s4531_s17 = sadd.s32 4294967294, %s5741_s15   ;;  %s5741_s15 = sphi %s5772_s15, %s9418_s15   ;;  %s5737_s14 = sphi %s5770_s14, %s9417_s14   ;;  %s5733_s13 = sphi %s5768_s13, %s9416_s13   ;;  %s5729_s12 = sphi %s5766_s12, %s9415_s12  }
   0x4   : > { %s5791_s18 = sadd.s32 1, %s5741_s15   ;;  %s91_s19 = sadd.s32 1, %s5737_s14 }
   0x5   : > { %s88_s20 = ssub.s32 %s5741_s15, %s5791_s18  ;;  %p101_p0 = scmp.ne.s32.totalorder %s5737_s14, %s5733_s13 }
   0x6   : > { %p89_p1 = scmp.eq.s32.totalorder %s88_s20, 0  ;;  %p102_p2 = scmp.eq.s32.totalorder %s5787_s16, 1 }
   0x7   : > { %p107_p3 = scmp.ne.s32.totalorder %s5733_s13, %s5729_s12  ;;  %p108_p4 = scmp.eq.s32.totalorder %s4531_s17, 1 }
   0x8   : > { %s5802_s21 = scalar_select %p89_p1, %s5737_s14, %s91_s19  }
   0x9   : > { %p5804_p5 = por %p102_p2, %p101_p0  ;;  %p5808_p6 = por %p108_p4, %p107_p3 }
   0xa   : > { %p4534_p7 = scmp.ge.s32.totalorder %s5741_s15, 1  ;;  %p140_p8 = scmp.lt.s32.totalorder %s5741_s15, 3 }
   0xc   : > { %p141_p9 = pnand %p4534_p7, %p140_p8 }
   0xe   : > { %144 = sbr.rel (%p141_p9) target bundleno = 3920 (0xf50), region = 32 }
  0x13   : > { %p164_p10 = scmp.lt.s32.totalorder %s5787_s16, 1  ;;  %v209_v0 = vld [vmem:[%s8962_s2] sm:$0xff]  ;;  %v8964_v1 = vmov 0   ;;  %v210_v6 = vld [vmem:[%s8962_s2 + $0x8] sm:$0xff]  ;;  %vm353_vm0 = vcmask 523264   ;;  %v187_v21 = vld [vmem:[%s8961_s1 + $0x10] sm:$0xff] }
  0x14   : > { %4908 = vset.pattern.permute.xlu0 %v8964_v1  ;;  %4909 = vset.pattern.permute.xlu1 %v8964_v1  ;;  %v185_v19 = vld [vmem:[%s8961_s1] sm:$0xff]  ;;  %v186_v20 = vld [vmem:[%s8961_s1 + $0x8] sm:$0xff]  ;;  %v188_v22 = vld [vmem:[%s8961_s1 + $0x18] sm:$0xff]  ;;  %vm668_vm1 = vcmask 130048   ;;  %s161_s25 = sand.u32 1, %s5733_s13   ;;  %s4848_s19 = sshll.u32 %s5787_s16, 7 }
  0x15   : > { %s165_s26 = scalar_select %p164_p10, %s5787_s16, 1  ;;  %235 = vperm.xlu0 %4908, %v209_v0   ;;  %v189_v23 = vld [vmem:[%s8961_s1 + $0x20] sm:$0xff]  ;;  %v190_v24 = vld [vmem:[%s8961_s1 + $0x28] sm:$0xff]  ;;  %v191_v25 = vld [vmem:[%s8961_s1 + $0x30] sm:$0xff] }
  0x16   : > { %v192_v26 = vld [vmem:[%s8961_s1 + $0x38] sm:$0xff]  ;;  %v193_v27 = vld [vmem:[%s8961_s1 + $0x40] sm:$0xff]  ;;  %v218_v28 = vld [vmem:[%s8962_s2 + $0x48] sm:$0xff]  ;;  %s5699_s7 = scalar_lea.hbm %s8963_s3, 256 }
  0x17   : > { %s4847_s27 = sshll.u32 %s165_s26, 7  ;;  %280 = vperm.xlu1 %4909, %v218_v28   ;;  %v194_v29 = vld [vmem:[%s8961_s1 + $0x48] sm:$0xff]  ;;  %v217_v30 = vld [vmem:[%s8962_s2 + $0x40] sm:$0xff]  ;;  %v207_v49 = vld [vmem:[%s8961_s1 + $0xb0] sm:$0xff]  ;;  %s4535_s26 = sshll.u32 %s161_s25, 7 }
  0x18   : > { %s5824_s30 = scalar_lea.vmem %s8960_s0, %s4847_s27  ;;  %v205_v43 = vld [vmem:[%s8961_s1 + $0xa0] sm:$0xff]  ;;  %v206_v46 = vld [vmem:[%s8961_s1 + $0xa8] sm:$0xff]  ;;  %v208_v52 = vld [vmem:[%s8961_s1 + $0xb8] sm:$0xff]  ;;  %s6463_s27 = scalar_lea.vmem [#allocation2], %s4535_s26 }
  0x19   : > { %v183_v2 = vld [vmem:[%s5824_s30 + $0x70] sm:$0xff]  ;;  %v184_v3 = vld [vmem:[%s5824_s30 + $0x78] sm:$0xff]  ;;  %v181_v4 = vld [vmem:[%s5824_s30 + $0x60] sm:$0xff]  ;;  %s4465_s26 = scalar_lea.hbm %s8963_s3, %s4848_s19  ;;  %s4466_s28 = sshll.u32 %s6463_s27, 4  ;;  %s4467_s28 = int_to_ptr.vmem [resolvable:$true] %s4466_s28 }
  0x1a   : > { %434 = vmatpush.msra.mxu0 %v183_v2  ;;  %523 = vmatpush.msra.mxu1 %v184_v3  ;;  %v182_v5 = vld [vmem:[%s5824_s30 + $0x68] sm:$0xff]  ;;  %v179_v7 = vld [vmem:[%s5824_s30 + $0x50] sm:$0xff]  ;;  %v180_v8 = vld [vmem:[%s5824_s30 + $0x58] sm:$0xff]  ;;  %s4468_s29 = sshll.u32 %s4465_s26, 4  ;;  %s4469_s29 = int_to_ptr.hbm [resolvable:$true] %s4468_s29 }
  0x1b   : > { %4849 = vmatpush.msra.mxu2 %v183_v2  ;;  %4857 = vmatpush.msra.mxu3 %v184_v3  ;;  %v177_v9 = vld [vmem:[%s5824_s30 + $0x40] sm:$0xff]  ;;  %v178_v10 = vld [vmem:[%s5824_s30 + $0x48] sm:$0xff]  ;;  %v175_v11 = vld [vmem:[%s5824_s30 + $0x30] sm:$0xff]  ;;  %s5693_s16 = sshra.s32 %s4469_s29, 4  ;;  %s5694_s16 = int_to_ptr.hbm [resolvable:$true] %s5693_s16 }
  0x1c   : > { %435 = vmatpush.msra.mxu0 %v181_v4  ;;  %524 = vmatpush.msra.mxu1 %v182_v5  ;;  %v176_v12 = vld [vmem:[%s5824_s30 + $0x38] sm:$0xff]  ;;  %v173_v13 = vld [vmem:[%s5824_s30 + $0x20] sm:$0xff]  ;;  %v174_v14 = vld [vmem:[%s5824_s30 + $0x28] sm:$0xff]  ;;  %s5695_s4 = scalar_lea.hbm %s5694_s16, 128  ;;  %p5700_p0 = scmp.lt.s32.totalorder %s5694_s16, %s8963_s3 }
  0x1d   : > { %240 = vperm.xlu0 %4908, %v210_v6   ;;  %4850 = vmatpush.msra.mxu2 %v181_v4  ;;  %v171_v15 = vld [vmem:[%s5824_s30 + $0x10] sm:$0xff]  ;;  %v172_v16 = vld [vmem:[%s5824_s30 + $0x18] sm:$0xff]  ;;  %v169_v17 = vld [vmem:[%s5824_s30] sm:$0xff]  ;;  %p5696_p11 = scmp.ne.s32.totalorder %s5694_s16, %s5695_s4  ;;  %p5701_p1 = scmp.lt.s32.totalorder %s5699_s7, %s5695_s4 }
  0x1e   : > { %436 = vmatpush.msra.mxu0 %v179_v7  ;;  %525 = vmatpush.msra.mxu1 %v180_v8  ;;  %v170_v18 = vld [vmem:[%s5824_s30 + $0x8] sm:$0xff]  ;;  %s4454_s30 = scalar_lea.sflag [#allocation3], %s161_s25 }
  0x1f   : > { %4858 = vmatpush.msra.mxu3 %v182_v5  ;;  %4851 = vmatpush.msra.mxu2 %v179_v7  ;;  %p5697_p12 = pnand %p5696_p11, %p5804_p5  ;;  %p5702_p2 = por %p5701_p1, %p5700_p0 }
  0x20   : > { %437 = vmatpush.msra.mxu0 %v177_v9  ;;  %526 = vmatpush.msra.mxu1 %v178_v10 }
  0x21   : > { %4859 = vmatpush.msra.mxu3 %v180_v8  ;;  %4852 = vmatpush.msra.mxu2 %v177_v9  ;;  %p5698_p13 = pneg %p5697_p12 }
  0x22   : > { %438 = vmatpush.msra.mxu0 %v175_v11  ;;  %527 = vmatpush.msra.mxu1 %v176_v12 }
  0x23   : > { %4860 = vmatpush.msra.mxu3 %v178_v10  ;;  %4853 = vmatpush.msra.mxu2 %v175_v11  ;;  %p5703_p3 = pnand %p5702_p2, %p5698_p13 }
  0x24   : > { %439 = vmatpush.msra.mxu0 %v173_v13  ;;  %528 = vmatpush.msra.mxu1 %v174_v14 }
  0x25   : > { %4861 = vmatpush.msra.mxu3 %v176_v12  ;;  %4854 = vmatpush.msra.mxu2 %v173_v13 }
  0x26   : > { %440 = vmatpush.msra.mxu0 %v171_v15  ;;  %529 = vmatpush.msra.mxu1 %v172_v16 }
  0x27   : > { %4862 = vmatpush.msra.mxu3 %v174_v14  ;;  %4855 = vmatpush.msra.mxu2 %v171_v15 }
  0x28   : > { %441 = vmatpush.msra.mxu0 %v169_v17  ;;  %530 = vmatpush.msra.mxu1 %v170_v18 }
  0x29   : > { %4538 = vmatmul.msk.f32.vlgmr.msra.gmra.mxu0 %vm353_vm0, %v185_v19  ;;  %4562 = vmatmul.msk.f32.vlgmr.msra.gmra.mxu1 %vm353_vm0, %v185_v19 }
  0x2a   : > { %4863 = vmatpush.msra.mxu3 %v172_v16  ;;  %4856 = vmatpush.msra.mxu2 %v169_v17 }
  0x2b   : > { %275 = vperm.xlu1 %4909, %v217_v30   ;;  %4558 = vmatmul.msk.f32.vlgmr.msra.gmra.mxu2 %vm353_vm0, %v205_v43 }
  0x2c   : > { %4864 = vmatpush.msra.mxu3 %v170_v18 }
  0x2d   : > { %4582 = vmatmul.msk.f32.vlgmr.msra.gmra.mxu3 %vm353_vm0, %v205_v43 }
  0x31   : > { %4539 = vmatmul.msk.f32.gmra.mxu0 %vm353_vm0, %v186_v20  ;;  %4563 = vmatmul.msk.f32.gmra.mxu1 %vm353_vm0, %v186_v20 }
  0x33   : > { %4559 = vmatmul.msk.f32.gmra.mxu2 %vm353_vm0, %v206_v46 }
  0x35   : > { %4583 = vmatmul.msk.f32.gmra.mxu3 %vm353_vm0, %v206_v46 }
  0x39   : > { %4540 = vmatmul.msk.f32.gmra.mxu0 %vm353_vm0, %v187_v21  ;;  %4564 = vmatmul.msk.f32.gmra.mxu1 %vm353_vm0, %v187_v21 }
  0x3b   : > { %4560 = vmatmul.msk.f32.gmra.mxu2 %vm353_vm0, %v207_v49 }
  0x3d   : > { %4584 = vmatmul.msk.f32.gmra.mxu3 %vm353_vm0, %v207_v49 }
  0x41   : > { %4541 = vmatmul.msk.f32.gmra.mxu0 %vm353_vm0, %v188_v22  ;;  %4565 = vmatmul.msk.f32.gmra.mxu1 %vm353_vm0, %v188_v22 }
  0x43   : > { %4561 = vmatmul.msk.f32.gmra.mxu2 %vm353_vm0, %v208_v52 }
  0x45   : > { %4585 = vmatmul.msk.f32.gmra.mxu3 %vm353_vm0, %v208_v52 }
  0x49   : > { %4542 = vmatmul.msk.f32.gmra.mxu0 %vm353_vm0, %v189_v23  ;;  %4566 = vmatmul.msk.f32.gmra.mxu1 %vm353_vm0, %v189_v23 }
  0x51   : > { %4543 = vmatmul.msk.f32.gmra.mxu0 %vm353_vm0, %v190_v24  ;;  %4567 = vmatmul.msk.f32.gmra.mxu1 %vm353_vm0, %v190_v24 }
  0x59   : > { %4544 = vmatmul.msk.f32.gmra.mxu0 %vm353_vm0, %v191_v25  ;;  %4568 = vmatmul.msk.f32.gmra.mxu1 %vm353_vm0, %v191_v25 }
  0x61   : > { %4545 = vmatmul.msk.f32.gmra.mxu0 %vm353_vm0, %v192_v26  ;;  %4569 = vmatmul.msk.f32.gmra.mxu1 %vm353_vm0, %v192_v26 }
  0x69   : > { %4546 = vmatmul.msk.f32.gmra.mxu0 %vm353_vm0, %v193_v27  ;;  %4570 = vmatmul.msk.f32.gmra.mxu1 %vm353_vm0, %v193_v27 }
  0x71   : > { %4547 = vmatmul.msk.f32.gmra.mxu0 %vm353_vm0, %v194_v29  ;;  %4571 = vmatmul.msk.f32.gmra.mxu1 %vm353_vm0, %v194_v29 }
  0x87   : > { %v5901_v31 = vpop.permute.xlu0 %235 }
  0x89   : > { %v281_v55 = vpop.permute.xlu1 %280 }
  0x8f   : > { %v5904_v34 = vpop.permute.xlu0 %240 }
  0x9d   : > { %v276_v58 = vpop.permute.xlu1 %275 }
  0xa6   : > { %v443_v32 = vpop.f32.mrf.mxu0  ;;  %v5907_v37 = vpop.f32.mrf.mxu1 }
  0xa7   : > { %v444_v33 = vadd.f32 %v443_v32, %v5901_v31 }
  0xa9   : > { %604 = vxpose.xlu2.b32.start [1/2] (short) %v444_v33, 128 }
  0xae   : > { %v446_v35 = vpop.f32.mrf.mxu0  ;;  %v5909_v38 = vpop.f32.mrf.mxu1 }
  0xaf   : > { %v447_v36 = vadd.f32 %v446_v35, %v5904_v34  ;;  %v5979_v14 = vpop.f32.mrf.mxu2 }
  0xb0   : > { %9100 = vst [vmem:[#allocation13_spill] sm:$0xff] %v5979_v14  ;;  %v5981_v15 = vpop.f32.mrf.mxu3 }
  0xb1   : > { %605 = vxpose.xlu2.b32.end [2/2] (short) %v447_v36, 128  ;;  %9101 = vst [vmem:[#allocation14_spill] sm:$0xff] %v5981_v15 }
  0xb6   : > { %v5911_v39 = vpop.f32.mrf.mxu0  ;;  %v5913_v40 = vpop.f32.mrf.mxu1 }
  0xb7   : > { %v5985_v17 = vpop.f32.mrf.mxu2 }
  0xb8   : > { %9102 = vst [vmem:[#allocation15_spill] sm:$0xff] %v5985_v17  ;;  %v5987_v18 = vpop.f32.mrf.mxu3 }
  0xb9   : > { %9103 = vst [vmem:[#allocation16_spill] sm:$0xff] %v5987_v18 }
  0xbe   : > { %v5915_v41 = vpop.f32.mrf.mxu0  ;;  %v5917_v42 = vpop.f32.mrf.mxu1 }
  0xbf   : > { %v5991_v20 = vpop.f32.mrf.mxu2 }
  0xc0   : > { %9104 = vst [vmem:[#allocation17_spill] sm:$0xff] %v5991_v20  ;;  %v5993_v21 = vpop.f32.mrf.mxu3 }
  0xc1   : > { %9105 = vst [vmem:[#allocation18_spill] sm:$0xff] %v5993_v21 }
  0xc6   : > { %v5924_v44 = vpop.f32.mrf.mxu0  ;;  %v5926_v45 = vpop.f32.mrf.mxu1 }
  0xc7   : > { %9092 = vst [vmem:[#allocation5_spill] sm:$0xff] %v5924_v44  ;;  %v5995_v22 = vpop.f32.mrf.mxu2 }
  0xc8   : > { %9093 = vst [vmem:[#allocation6_spill] sm:$0xff] %v5926_v45  ;;  %v5997_v23 = vpop.f32.mrf.mxu3 }
  0xc9   : > { %9106 = vst [vmem:[#allocation19_spill] sm:$0xff] %v5995_v22 }
  0xca   : > { %9107 = vst [vmem:[#allocation20_spill] sm:$0xff] %v5997_v23 }
  0xce   : > { %v5933_v47 = vpop.f32.mrf.mxu0  ;;  %v5935_v48 = vpop.f32.mrf.mxu1 }
  0xcf   : > { %9094 = vst [vmem:[#allocation7_spill] sm:$0xff] %v5933_v47 }
  0xd0   : > { %9095 = vst [vmem:[#allocation8_spill] sm:$0xff] %v5935_v48 }
  0xd6   : > { %v5942_v50 = vpop.f32.mrf.mxu0  ;;  %v5944_v51 = vpop.f32.mrf.mxu1 }
  0xd7   : > { %9096 = vst [vmem:[#allocation9_spill] sm:$0xff] %v5942_v50 }
  0xd8   : > { %9097 = vst [vmem:[#allocation10_spill] sm:$0xff] %v5944_v51 }
  0xde   : > { %v5951_v53 = vpop.f32.mrf.mxu0  ;;  %v5953_v54 = vpop.f32.mrf.mxu1 }
  0xdf   : > { %9098 = vst [vmem:[#allocation11_spill] sm:$0xff] %v5951_v53 }
  0xe0   : > { %9099 = vst [vmem:[#allocation12_spill] sm:$0xff] %v5953_v54 }
  0xe6   : > { %v467_v56 = vpop.f32.mrf.mxu0  ;;  %v556_v57 = vpop.f32.mrf.mxu1 }
  0xe7   : > { %v468_v63 = vadd.f32 %v467_v56, %v276_v58  ;;  %v557_v0 = vadd.f32 %v556_v57, %v276_v58 }
  0xee   : > { %v470_v59 = vpop.f32.mrf.mxu0  ;;  %v559_v60 = vpop.f32.mrf.mxu1 }
  0xef   : > { %v471_v61 = vadd.f32 %v470_v59, %v281_v55  ;;  %v560_v62 = vadd.f32 %v559_v60, %v281_v55  ;;  %v195_v60 = vld [vmem:[%s8961_s1 + $0x50] sm:$0xff] }
  0xf0   : > { %4548 = vmatmul.msk.f32.gmra.mxu0 %vm353_vm0, %v195_v60  ;;  %4572 = vmatmul.msk.f32.gmra.mxu1 %vm353_vm0, %v195_v60 }
  0xf1   : > { %779 = vmatpush.msrb.mxu2 %v471_v61  ;;  %892 = vmatpush.msrb.mxu3 %v560_v62 }
  0xf3   : > { %780 = vmatpush.msrb.mxu2 %v468_v63  ;;  %893 = vmatpush.msrb.mxu3 %v557_v0  ;;  %v196_v63 = vld [vmem:[%s8961_s1 + $0x58] sm:$0xff]  ;;  %v197_v0 = vld [vmem:[%s8961_s1 + $0x60] sm:$0xff] }
  0xf8   : > { %4549 = vmatmul.msk.f32.gmra.mxu0 %vm353_vm0, %v196_v63  ;;  %4573 = vmatmul.msk.f32.gmra.mxu1 %vm353_vm0, %v196_v63  ;;  %v201_v63 = vld [vmem:[%s8961_s1 + $0x80] sm:$0xff] }
 0x100   : > { %4550 = vmatmul.msk.f32.gmra.mxu0 %vm353_vm0, %v197_v0  ;;  %4574 = vmatmul.msk.f32.gmra.mxu1 %vm353_vm0, %v197_v0 }
 0x142   : > { %v620_v2 = vpop.trf.xlu2 }
 0x143   : > { %4586 = vmatmul.msk.f32.vlgmr.msrb.gmra.mxu2 %vm668_vm1, %v620_v2  ;;  %4618 = vmatmul.msk.f32.vlgmr.msrb.gmra.mxu3 %vm668_vm1, %v620_v2 }
 0x14a   : > { %v621_v3 = vpop.trf.xlu2 }
 0x14b   : > { %4587 = vmatmul.msk.f32.gmra.mxu2 %vm668_vm1, %v621_v3  ;;  %4619 = vmatmul.msk.f32.gmra.mxu3 %vm668_vm1, %v621_v3 }
 0x152   : > { %v622_v4 = vpop.trf.xlu2 }
 0x153   : > { %4588 = vmatmul.msk.f32.gmra.mxu2 %vm668_vm1, %v622_v4  ;;  %4620 = vmatmul.msk.f32.gmra.mxu3 %vm668_vm1, %v622_v4  ;;  %v198_v4 = vld [vmem:[%s8961_s1 + $0x68] sm:$0xff] }
 0x154   : > { %4551 = vmatmul.msk.f32.gmra.mxu0 %vm353_vm0, %v198_v4  ;;  %4575 = vmatmul.msk.f32.gmra.mxu1 %vm353_vm0, %v198_v4 }
 0x15a   : > { %v623_v5 = vpop.trf.xlu2 }
 0x15b   : > { %4589 = vmatmul.msk.f32.gmra.mxu2 %vm668_vm1, %v623_v5  ;;  %4621 = vmatmul.msk.f32.gmra.mxu3 %vm668_vm1, %v623_v5 }
 0x162   : > { %v624_v6 = vpop.trf.xlu2 }
 0x163   : > { %4590 = vmatmul.msk.f32.gmra.mxu2 %vm668_vm1, %v624_v6  ;;  %4622 = vmatmul.msk.f32.gmra.mxu3 %vm668_vm1, %v624_v6 }
 0x16a   : > { %v625_v7 = vpop.trf.xlu2 }
 0x16b   : > { %4591 = vmatmul.msk.f32.gmra.mxu2 %vm668_vm1, %v625_v7  ;;  %4623 = vmatmul.msk.f32.gmra.mxu3 %vm668_vm1, %v625_v7 }
 0x172   : > { %v626_v8 = vpop.trf.xlu2 }
 0x173   : > { %4592 = vmatmul.msk.f32.gmra.mxu2 %vm668_vm1, %v626_v8  ;;  %4624 = vmatmul.msk.f32.gmra.mxu3 %vm668_vm1, %v626_v8  ;;  %v199_v8 = vld [vmem:[%s8961_s1 + $0x70] sm:$0xff] }
 0x174   : > { %4552 = vmatmul.msk.f32.gmra.mxu0 %vm353_vm0, %v199_v8  ;;  %4576 = vmatmul.msk.f32.gmra.mxu1 %vm353_vm0, %v199_v8 }
 0x17a   : > { %v627_v9 = vpop.trf.xlu2 }
 0x17b   : > { %4593 = vmatmul.msk.f32.gmra.mxu2 %vm668_vm1, %v627_v9  ;;  %4625 = vmatmul.msk.f32.gmra.mxu3 %vm668_vm1, %v627_v9 }
 0x182   : > { %v628_v10 = vpop.trf.xlu2 }
 0x183   : > { %4594 = vmatmul.msk.f32.gmra.mxu2 %vm668_vm1, %v628_v10  ;;  %4626 = vmatmul.msk.f32.gmra.mxu3 %vm668_vm1, %v628_v10 }
 0x18a   : > { %v629_v11 = vpop.trf.xlu2 }
 0x18b   : > { %4595 = vmatmul.msk.f32.gmra.mxu2 %vm668_vm1, %v629_v11  ;;  %4627 = vmatmul.msk.f32.gmra.mxu3 %vm668_vm1, %v629_v11 }
 0x192   : > { %v630_v12 = vpop.trf.xlu2 }
 0x193   : > { %4596 = vmatmul.msk.f32.gmra.mxu2 %vm668_vm1, %v630_v12  ;;  %4628 = vmatmul.msk.f32.gmra.mxu3 %vm668_vm1, %v630_v12 }
 0x19a   : > { %v631_v13 = vpop.trf.xlu2 }
 0x19b   : > { %4597 = vmatmul.msk.f32.gmra.mxu2 %vm668_vm1, %v631_v13  ;;  %4629 = vmatmul.msk.f32.gmra.mxu3 %vm668_vm1, %v631_v13  ;;  %v200_v13 = vld [vmem:[%s8961_s1 + $0x78] sm:$0xff] }
 0x19c   : > { %4553 = vmatmul.msk.f32.gmra.mxu0 %vm353_vm0, %v200_v13  ;;  %4577 = vmatmul.msk.f32.gmra.mxu1 %vm353_vm0, %v200_v13 }
 0x1a2   : > { %v632_v16 = vpop.trf.xlu2 }
 0x1a3   : > { %4598 = vmatmul.msk.f32.gmra.mxu2 %vm668_vm1, %v632_v16  ;;  %4630 = vmatmul.msk.f32.gmra.mxu3 %vm668_vm1, %v632_v16 }
 0x1a4   : > { %4554 = vmatmul.msk.f32.gmra.mxu0 %vm353_vm0, %v201_v63  ;;  %4578 = vmatmul.msk.f32.gmra.mxu1 %vm353_vm0, %v201_v63  ;;  %v212_v63 = vld [vmem:[%s8962_s2 + $0x18] sm:$0xff] }
 0x1aa   : > { %v633_v19 = vpop.trf.xlu2 }
 0x1ab   : > { %4599 = vmatmul.msk.f32.gmra.mxu2 %vm668_vm1, %v633_v19  ;;  %4631 = vmatmul.msk.f32.gmra.mxu3 %vm668_vm1, %v633_v19 }
 0x1b2   : > { %v634_v33 = vpop.trf.xlu2 }
 0x1b3   : > { %4600 = vmatmul.msk.f32.gmra.mxu2 %vm668_vm1, %v634_v33  ;;  %4632 = vmatmul.msk.f32.gmra.mxu3 %vm668_vm1, %v634_v33 }
 0x1ba   : > { %v635_v55 = vpop.trf.xlu2 }
 0x1bb   : > { %4601 = vmatmul.msk.f32.gmra.mxu2 %vm668_vm1, %v635_v55  ;;  %4633 = vmatmul.msk.f32.gmra.mxu3 %vm668_vm1, %v635_v55 }
 0x1c6   : > { %v5999_v24 = vpop.f32.mrf.mxu2  ;;  %v6001_v25 = vpop.f32.mrf.mxu3 }
 0x1ce   : > { %v6003_v26 = vpop.f32.mrf.mxu2  ;;  %v6005_v27 = vpop.f32.mrf.mxu3 }
 0x1cf   : > { %v994_v13 = vmax.f32 %v6003_v26, %v6005_v27 }
 0x1d6   : > { %v6007_v28 = vpop.f32.mrf.mxu2  ;;  %v6009_v29 = vpop.f32.mrf.mxu3 }
 0x1de   : > { %v6011_v30 = vpop.f32.mrf.mxu2  ;;  %v6013_v32 = vpop.f32.mrf.mxu3 }
 0x1e6   : > { %v6017_v35 = vpop.f32.mrf.mxu2  ;;  %v6019_v36 = vpop.f32.mrf.mxu3 }
 0x1ee   : > { %v6021_v43 = vpop.f32.mrf.mxu2  ;;  %v6023_v46 = vpop.f32.mrf.mxu3 }
 0x1ef   : > { %v1006_v0 = vmax.f32 %v6021_v43, %v6023_v46 }
 0x1f6   : > { %v6025_v49 = vpop.f32.mrf.mxu2  ;;  %v6027_v52 = vpop.f32.mrf.mxu3 }
 0x1f7   : > { %v1009_v8 = vmax.f32 %v6025_v49, %v6027_v52 }
 0x1fe   : > { %v6031_v56 = vpop.f32.mrf.mxu2  ;;  %v6033_v57 = vpop.f32.mrf.mxu3 }
 0x1ff   : > { %v1012_v33 = vmax.f32 %v6031_v56, %v6033_v57 }
 0x206   : > { %v6035_v58 = vpop.f32.mrf.mxu2  ;;  %v6037_v59 = vpop.f32.mrf.mxu3 }
 0x207   : > { %v1015_v4 = vmax.f32 %v6035_v58, %v6037_v59 }
 0x20e   : > { %v6044_v61 = vpop.f32.mrf.mxu2  ;;  %v6046_v62 = vpop.f32.mrf.mxu3 }
 0x20f   : > { %v1018_v11 = vmax.f32 %v6044_v61, %v6046_v62 }
 0x216   : > { %v6056_v2 = vpop.f32.mrf.mxu2  ;;  %v6058_v3 = vpop.f32.mrf.mxu3 }
 0x217   : > { %v1021_v55 = vmax.f32 %v6056_v2, %v6058_v3 }
 0x21e   : > { %v6065_v5 = vpop.f32.mrf.mxu2  ;;  %v6067_v6 = vpop.f32.mrf.mxu3 }
 0x21f   : > { %v1024_v7 = vmax.f32 %v6065_v5, %v6067_v6 }
 0x221   : > { %1025 = vmax.xlane.f32.xlu1 %v1024_v7  ;;  %v1000_v7 = vmax.f32 %v6011_v30, %v6013_v32 }
 0x226   : > { %v6076_v9 = vpop.f32.mrf.mxu2  ;;  %v6078_v10 = vpop.f32.mrf.mxu3 }
 0x227   : > { %v1027_v12 = vmax.f32 %v6076_v9, %v6078_v10 }
 0x229   : > { %1019 = vmax.xlane.f32.xlu1 %v1018_v11  ;;  %1028 = vmax.xlane.f32.xlu0 %v1027_v12  ;;  %v1003_v11 = vmax.f32 %v6017_v35, %v6019_v36  ;;  %v997_v12 = vmax.f32 %v6007_v28, %v6009_v29 }
 0x22e   : > { %v6089_v16 = vpop.f32.mrf.mxu2  ;;  %v6091_v19 = vpop.f32.mrf.mxu3 }
 0x22f   : > { %v1030_v60 = vmax.f32 %v6089_v16, %v6091_v19 }
 0x231   : > { %1013 = vmax.xlane.f32.xlu1 %v1012_v33  ;;  %1022 = vmax.xlane.f32.xlu0 %v1021_v55  ;;  %v211_v33 = vld [vmem:[%s8962_s2 + $0x10] sm:$0xff]  ;;  %v991_v55 = vmax.f32 %v5999_v24, %v6001_v25 }
 0x232   : > { %1031 = vmax.xlane.f32.xlu2 %v1030_v60  ;;  %v225_v60 = vld [vmem:[%s8962_s2 + $0x80] sm:$0xff] }
 0x239   : > { %1007 = vmax.xlane.f32.xlu1 %v1006_v0  ;;  %1016 = vmax.xlane.f32.xlu0 %v1015_v4  ;;  %v6131_v0 = vpop.f32.mrf.mxu2  ;;  %v6133_v4 = vpop.f32.mrf.mxu3 }
 0x241   : > { %1001 = vmax.xlane.f32.xlu1 %v1000_v7  ;;  %1010 = vmax.xlane.f32.xlu0 %v1009_v8  ;;  %v1033_v7 = vmax.f32 %v6131_v0, %v6133_v4  ;;  %v202_v8 = vld [vmem:[%s8961_s1 + $0x88] sm:$0xff] }
 0x242   : > { %4555 = vmatmul.msk.f32.gmra.mxu0 %vm353_vm0, %v202_v8  ;;  %4579 = vmatmul.msk.f32.gmra.mxu1 %vm353_vm0, %v202_v8  ;;  %v226_v8 = vld [vmem:[%s8962_s2 + $0x88] sm:$0xff] }
 0x249   : > { %1004 = vmax.xlane.f32.xlu0 %v1003_v11  ;;  %v6142_v11 = vpop.f32.mrf.mxu2 }
 0x251   : > { %998 = vmax.xlane.f32.xlu0 %v997_v12  ;;  %v6144_v12 = vpop.f32.mrf.mxu3 }
 0x259   : > { %995 = vmax.xlane.f32.xlu0 %v994_v13  ;;  %v1036_v13 = vmax.f32 %v6142_v11, %v6144_v12 }
 0x25a   : > { %245 = vperm.xlu1 %4909, %v211_v33  }
 0x261   : > { %992 = vmax.xlane.f32.xlu0 %v991_v55 }
 0x262   : > { %315 = vperm.xlu1 %4909, %v225_v60  }
 0x275   : > { %250 = vperm.xlu0 %4908, %v212_v63  }
 0x28c   : > { %1034 = vmax.xlane.f32.xlu1 %v1033_v7 }
 0x294   : > { %v6148_v33 = vpop.xlane.xlu1 %1025 }
 0x29c   : > { %v6150_v55 = vpop.xlane.xlu0 %1028  ;;  %v6154_v63 = vpop.xlane.xlu1 %1019 }
 0x29f   : > { %1037 = vmax.xlane.f32.xlu0 %v1036_v13 }
 0x2a4   : > { %v6152_v60 = vpop.xlane.xlu0 %1022  ;;  %v1014_v1 = vpop.xlane.xlu1 %1013 }
 0x2ac   : > { %v6156_v7 = vpop.xlane.xlu0 %1016  ;;  %v1008_v22 = vpop.xlane.xlu1 %1007 }
 0x2ad   : > { %v1097_v44 = vsub.f32 %v6021_v43, %v1008_v22 }
 0x2b3   : > { %320 = vperm.xlu0 %4908, %v226_v8  }
 0x2b4   : > { %v6161_v23 = vpop.xlane.xlu0 %1010  ;;  %v1002_v20 = vpop.xlane.xlu1 %1001 }
 0x2b5   : > { %v1093_v14 = vsub.f32 %v6011_v30, %v1002_v20  ;;  %v1094_v50 = vsub.f32 %v6013_v32, %v1002_v20 }
 0x2b7   : > { %v1163_v48 = vmul.f32 1.442695, %v1093_v14  ;;  %v1165_v47 = vmul.f32 1.442695, %v1094_v50  ;;  %v1171_v14 = vmul.f32 1.442695, %v1097_v44 }
 0x2bc   : > { %v1005_v21 = vpop.xlane.xlu0 %1004 }
 0x2bd   : > { %v1096_v30 = vsub.f32 %v6019_v36, %v1005_v21 }
 0x2c4   : > { %v999_v18 = vpop.xlane.xlu0 %998 }
 0x2c5   : > { %v1092_v50 = vsub.f32 %v6009_v29, %v999_v18 }
 0x2cc   : > { %v6163_v17 = vpop.permute.xlu1 %245  ;;  %v996_v13 = vpop.xlane.xlu0 %995 }
 0x2cd   : > { %v539_v54 = vadd.f32 %v5913_v40, %v6163_v17  ;;  %v1089_v53 = vsub.f32 %v6003_v26, %v996_v13  ;;  %v1090_v15 = vsub.f32 %v6005_v27, %v996_v13  ;;  %v1098_v27 = vsub.f32 %v6023_v46, %v1008_v22 }
 0x2cf   : > { %v1155_v51 = vmul.f32 1.442695, %v1089_v53  ;;  %v1157_v8 = vmul.f32 1.442695, %v1090_v15  ;;  %1599 = vxpose.xlu2.b32.start [1/2] (short) %v539_v54, 128  ;;  %v1091_v53 = vsub.f32 %v6007_v28, %v999_v18  ;;  %v1095_v18 = vsub.f32 %v6017_v35, %v1005_v21 }
 0x2d0   : > { %v1105_v21 = vsub.f32 %v6044_v61, %v6154_v63 }
 0x2d1   : > { %4911 = vpow2.f32 %v1155_v51  ;;  %v1159_v22 = vmul.f32 1.442695, %v1091_v53 }
 0x2d2   : > { %4913 = vpow2.f32 %v1157_v8  ;;  %v1169_v8 = vmul.f32 1.442695, %v1096_v30 }
 0x2d3   : > { %4915 = vpow2.f32 %v1163_v48 }
 0x2d4   : > { %v993_v45 = vpop.xlane.xlu0 %992  ;;  %4917 = vpow2.f32 %v1165_v47  ;;  %v1102_v47 = vsub.f32 %v6033_v57, %v1014_v1  ;;  %v1167_v57 = vmul.f32 1.442695, %v1095_v18 }
 0x2d5   : > { %v1087_v40 = vsub.f32 %v5999_v24, %v993_v45  ;;  %v1088_v26 = vsub.f32 %v6001_v25, %v993_v45  ;;  %v1173_v45 = vmul.f32 1.442695, %v1098_v27  ;;  %v1161_v24 = vmul.f32 1.442695, %v1092_v50 }
 0x2d6   : > { %v1101_v25 = vsub.f32 %v6031_v56, %v1014_v1  ;;  %v1181_v56 = vmul.f32 1.442695, %v1102_v47  ;;  %v1099_v27 = vsub.f32 %v6025_v49, %v6161_v23 }
 0x2d7   : > { %v6175_v13 = vpop.eup %4911  ;;  %v1151_v54 = vmul.f32 1.442695, %v1087_v40  ;;  %v1153_v15 = vmul.f32 1.442695, %v1088_v26  ;;  %v1106_v26 = vsub.f32 %v6046_v62, %v6154_v63 }
 0x2d8   : > { %v6178_v51 = vpop.eup %4913  ;;  %v1179_v32 = vmul.f32 1.442695, %v1101_v25  ;;  %v1104_v25 = vsub.f32 %v6037_v59, %v6156_v7  ;;  %v1107_v59 = vsub.f32 %v6056_v2, %v6152_v60 }
 0x2d9   : > { %4919 = vpow2.f32 %v1151_v54  ;;  %v1282_v20 = vadd.f32 %v6178_v51, %v6175_v13  ;;  %v6183_v48 = vpop.eup %4915  ;;  %v1100_v54 = vsub.f32 %v6027_v52, %v6161_v23  ;;  %v1189_v63 = vmul.f32 1.442695, %v1106_v26 }
 0x2da   : > { %4921 = vpow2.f32 %v1153_v15  ;;  %v6186_v28 = vpop.eup %4917  ;;  %v1187_v15 = vmul.f32 1.442695, %v1105_v21  ;;  %v1191_v26 = vmul.f32 1.442695, %v1107_v59 }
 0x2db   : > { %1283 = vadd.xlane.f32.xlu1 %v1282_v20  ;;  %4923 = vpow2.f32 %v1171_v14  ;;  %v1288_v43 = vadd.f32 %v6186_v28, %v6183_v48  ;;  %v1175_v14 = vmul.f32 1.442695, %v1099_v27  ;;  %v1177_v23 = vmul.f32 1.442695, %v1100_v54 }
 0x2dc   : > { %4925 = vpow2.f32 %v1173_v45 }
 0x2dd   : > { %4927 = vpow2.f32 %v1159_v22  ;;  %v1110_v22 = vsub.f32 %v6067_v6, %v6148_v33 }
 0x2de   : > { %4929 = vpow2.f32 %v1161_v24  ;;  %v1103_v24 = vsub.f32 %v6035_v58, %v6156_v7  ;;  %v1032_v58 = vpop.xlane.xlu2 %1031 }
 0x2df   : > { %v6189_v44 = vpop.eup %4919  ;;  %4931 = vpow2.f32 %v1179_v32  ;;  %v1197_v30 = vmul.f32 1.442695, %v1110_v22  ;;  %v1114_v21 = vsub.f32 %v6091_v19, %v1032_v58  ;;  %v1111_v19 = vsub.f32 %v6076_v9, %v6150_v55 }
 0x2e0   : > { %v6192_v29 = vpop.eup %4921  ;;  %4933 = vpow2.f32 %v1181_v56  ;;  %v1183_v6 = vmul.f32 1.442695, %v1103_v24  ;;  %v1108_v56 = vsub.f32 %v6058_v3, %v6152_v60 }
 0x2e1   : > { %v1279_v46 = vadd.f32 %v6192_v29, %v6189_v44  ;;  %v6199_v1 = vpop.eup %4923  ;;  %4935 = vpow2.f32 %v1167_v57  ;;  %v1113_v57 = vsub.f32 %v6089_v16, %v1032_v58  ;;  %v1205_v16 = vmul.f32 1.442695, %v1114_v21 }
 0x2e2   : > { %v6201_v35 = vpop.eup %4925  ;;  %4937 = vpow2.f32 %v1169_v8  ;;  %v6256_v8 = vpop.permute.xlu1 %315  ;;  %v1193_v54 = vmul.f32 1.442695, %v1108_v56 }
 0x2e3   : > { %1289 = vadd.xlane.f32.xlu1 %v1288_v43  ;;  %1280 = vadd.xlane.f32.xlu0 %v1279_v46  ;;  %v6203_v40 = vpop.eup %4927  ;;  %v1294_v50 = vadd.f32 %v6201_v35, %v6199_v1  ;;  %4939 = vpow2.f32 %v1187_v15  ;;  %v1185_v43 = vmul.f32 1.442695, %v1104_v25  ;;  %v1203_v15 = vmul.f32 1.442695, %v1113_v57 }
 0x2e4   : > { %v6207_v36 = vpop.eup %4929  ;;  %4941 = vpow2.f32 %v1189_v63 }
 0x2e5   : > { %v1285_v62 = vadd.f32 %v6207_v36, %v6203_v40  ;;  %v6223_v49 = vpop.eup %4931  ;;  %4943 = vpow2.f32 %v1175_v14 }
 0x2e6   : > { %v6225_v20 = vpop.eup %4933  ;;  %4945 = vpow2.f32 %v1177_v23 }
 0x2e7   : > { %v6213_v53 = vpop.permute.xlu0 %250  ;;  %v6227_v52 = vpop.eup %4935  ;;  %v1300_v18 = vadd.f32 %v6225_v20, %v6223_v49 }
 0x2e8   : > { %v542_v61 = vadd.f32 %v5917_v42, %v6213_v53  ;;  %v1109_v42 = vsub.f32 %v6065_v5, %v6148_v33  ;;  %v6231_v45 = vpop.eup %4937 }
 0x2e9   : > { %v1291_v5 = vadd.f32 %v6231_v45, %v6227_v52  ;;  %v6243_v32 = vpop.eup %4939 }
 0x2ea   : > { %1600 = vxpose.xlu2.b32.end [2/2] (short) %v542_v61, 128  ;;  %v1195_v47 = vmul.f32 1.442695, %v1109_v42  ;;  %v6245_v33 = vpop.eup %4941  ;;  %v1199_v42 = vmul.f32 1.442695, %v1111_v19  ;;  %v219_v19 = vld [vmem:[%s8962_s2 + $0x50] sm:$0xff] }
 0x2eb   : > { %1295 = vadd.xlane.f32.xlu1 %v1294_v50  ;;  %1286 = vadd.xlane.f32.xlu0 %v1285_v62  ;;  %v6247_v46 = vpop.eup %4943  ;;  %v1306_v27 = vadd.f32 %v6245_v33, %v6243_v32  ;;  %v1112_v62 = vsub.f32 %v6078_v10, %v6150_v55 }
 0x2ec   : > { %4947 = vpow2.f32 %v1195_v47  ;;  %v6251_v7 = vpop.eup %4945 }
 0x2ed   : > { %4949 = vpow2.f32 %v1197_v30  ;;  %v1297_v2 = vadd.f32 %v6251_v7, %v6247_v46  ;;  %v1201_v24 = vmul.f32 1.442695, %v1112_v62  ;;  %v9108_v62 = vmov 0  }
 0x2ee   : > { %4951 = vpow2.f32 %v1183_v6 }
 0x2ef   : > { %4953 = vpow2.f32 %v1185_v43 }
 0x2f0   : > { %4955 = vpow2.f32 %v1191_v26 }
 0x2f1   : > { %4957 = vpow2.f32 %v1193_v54 }
 0x2f2   : > { %v6263_v61 = vpop.eup %4947  ;;  %4959 = vpow2.f32 %v1203_v15 }
 0x2f3   : > { %1301 = vadd.xlane.f32.xlu1 %v1300_v18  ;;  %1292 = vadd.xlane.f32.xlu0 %v1291_v5  ;;  %v6265_v3 = vpop.eup %4949  ;;  %4961 = vpow2.f32 %v1205_v16 }
 0x2f4   : > { %v6267_v60 = vpop.eup %4951  ;;  %v1312_v22 = vadd.f32 %v6265_v3, %v6263_v61  ;;  %4963 = vpow2.f32 %v1199_v42 }
 0x2f5   : > { %v6271_v50 = vpop.eup %4953  ;;  %4965 = vpow2.f32 %v1201_v24 }
 0x2f6   : > { %v1303_v9 = vadd.f32 %v6271_v50, %v6267_v60  ;;  %v6281_v25 = vpop.eup %4955 }
 0x2f7   : > { %v6283_v10 = vpop.eup %4957 }
 0x2f8   : > { %v6285_v18 = vpop.eup %4959 }
 0x2fb   : > { %1307 = vadd.xlane.f32.xlu1 %v1306_v27  ;;  %1298 = vadd.xlane.f32.xlu0 %v1297_v2 }
 0x2ff   : > { %v1035_v63 = vpop.xlane.xlu1 %1034 }
 0x300   : > { %v1115_v14 = vsub.f32 %v6131_v0, %v1035_v63  ;;  %v1116_v23 = vsub.f32 %v6133_v4, %v1035_v63  ;;  %v6287_v0 = vpop.eup %4961  ;;  %v1309_v4 = vadd.f32 %v6283_v10, %v6281_v25 }
 0x301   : > { %v1318_v5 = vadd.f32 %v6287_v0, %v6285_v18  ;;  %v6293_v30 = vpop.eup %4963 }
 0x302   : > { %v1207_v47 = vmul.f32 1.442695, %v1115_v14  ;;  %v1209_v55 = vmul.f32 1.442695, %v1116_v23  ;;  %v6295_v6 = vpop.eup %4965  ;;  %v536_v14 = vadd.f32 %v5909_v38, %v5904_v34  ;;  %v453_v34 = vadd.f32 %v5915_v41, %v6213_v53 }
 0x303   : > { %1313 = vadd.xlane.f32.xlu1 %v1312_v22  ;;  %1304 = vadd.xlane.f32.xlu0 %v1303_v9  ;;  %v1315_v59 = vadd.f32 %v6295_v6, %v6293_v30 }
 0x304   : > { %4967 = vpow2.f32 %v1207_v47 }
 0x305   : > { %4969 = vpow2.f32 %v1209_v55 }
 0x30a   : > { %v4968_v58 = vpop.eup %4967 }
 0x30b   : > { %1310 = vadd.xlane.f32.xlu0 %v1309_v4  ;;  %1319 = vadd.xlane.f32.xlu1 %v1318_v5  ;;  %v4970_v43 = vpop.eup %4969 }
 0x30c   : > { %v1321_v56 = vadd.f32 %v4970_v43, %v4968_v58 }
 0x312   : > { %v1038_v57 = vpop.xlane.xlu0 %1037 }
 0x313   : > { %1316 = vadd.xlane.f32.xlu0 %v1315_v59  ;;  %v1117_v21 = vsub.f32 %v6142_v11, %v1038_v57  ;;  %v1118_v26 = vsub.f32 %v6144_v12, %v1038_v57  ;;  %1322 = vadd.xlane.f32.xlu1 %v1321_v56  ;;  %v220_v11 = vld [vmem:[%s8962_s2 + $0x58] sm:$0xff]  ;;  %v533_v12 = vadd.f32 %v5907_v37, %v5901_v31 }
 0x314   : > { %v450_v37 = vadd.f32 %v5911_v39, %v6163_v17  ;;  %v6334_v39 = vpop.f32.mrf.mxu0  ;;  %v6336_v17 = vpop.f32.mrf.mxu1 }
 0x315   : > { %v1211_v27 = vmul.f32 1.442695, %v1117_v21  ;;  %v1213_v2 = vmul.f32 1.442695, %v1118_v26 }
 0x317   : > { %4971 = vpow2.f32 %v1211_v27 }
 0x318   : > { %4973 = vpow2.f32 %v1213_v2 }
 0x31d   : > { %v4972_v54 = vpop.eup %4971 }
 0x31e   : > { %v4974_v15 = vpop.eup %4973 }
 0x31f   : > { %v1324_v16 = vadd.f32 %v4974_v15, %v4972_v54 }
 0x321   : > { %1325 = vadd.xlane.f32.xlu1 %v1324_v16 }
 0x325   : > { %v6316_v42 = vpop.permute.xlu0 %320 }
 0x327   : > { %285 = vperm.xlu0 %4908, %v219_v19  }
 0x33a   : > { %290 = vperm.xlu1 %4909, %v220_v11  }
 0x349   : > { %636 = vxpose.xlu0.b32.start [1/2] (short) %v533_v12, 128 }
 0x34c   : > { %4910 = vset.pattern.permute.xlu2 %v9108_v62 }
 0x34e   : > { %v6310_v63 = vpop.xlane.xlu1 %1283 }
 0x351   : > { %637 = vxpose.xlu0.b32.end [2/2] (short) %v536_v14, 128 }
 0x356   : > { %v6314_v23 = vpop.xlane.xlu1 %1289  ;;  %v6320_v9 = vpop.xlane.xlu0 %1280 }
 0x35e   : > { %v6318_v22 = vpop.xlane.xlu1 %1295  ;;  %v6324_v31 = vpop.xlane.xlu0 %1286 }
 0x366   : > { %v6322_v24 = vpop.xlane.xlu1 %1301  ;;  %v6328_v55 = vpop.xlane.xlu0 %1292 }
 0x36e   : > { %v1308_v47 = vpop.xlane.xlu1 %1307  ;;  %v6332_v4 = vpop.xlane.xlu0 %1298 }
 0x36f   : > { %1567 = vxpose.xlu1.b32.start [1/2] (short) %v450_v37, 128  ;;  %v6340_v37 = vpop.f32.mrf.mxu0 }
 0x376   : > { %v1314_v38 = vpop.xlane.xlu1 %1313  ;;  %v1305_v59 = vpop.xlane.xlu0 %1304 }
 0x377   : > { %1568 = vxpose.xlu1.b32.end [2/2] (short) %v453_v34, 128  ;;  %v6342_v34 = vpop.f32.mrf.mxu1 }
 0x37e   : > { %v1320_v5 = vpop.xlane.xlu1 %1319  ;;  %v1311_v57 = vpop.xlane.xlu0 %1310 }
 0x386   : > { %v1323_v56 = vpop.xlane.xlu1 %1322  ;;  %v1317_v27 = vpop.xlane.xlu0 %1316 }
 0x394   : > { %v1326_v21 = vpop.xlane.xlu1 %1325 }
 0x395   : > { %4975 = vrcp.f32 %v1326_v21 }
 0x396   : > { %4977 = vrcp.f32 %v1323_v56 }
 0x397   : > { %4979 = vrcp.f32 %v1320_v5 }
 0x398   : > { %4981 = vrcp.f32 %v1317_v27 }
 0x399   : > { %4983 = vrcp.f32 %v1314_v38 }
 0x39a   : > { %4985 = vrcp.f32 %v1311_v57 }
 0x39b   : > { %v4976_v26 = vpop.eup %4975  ;;  %4987 = vrcp.f32 %v1308_v47 }
 0x39c   : > { %v1437_v2 = vmul.f32 %v4976_v26, %v4972_v54  ;;  %v1438_v41 = vmul.f32 %v4976_v26, %v4974_v15  ;;  %v4978_v53 = vpop.eup %4977  ;;  %4989 = vrcp.f32 %v1305_v59 }
 0x39d   : > { %v1435_v16 = vmul.f32 %v4978_v53, %v4968_v58  ;;  %v1436_v19 = vmul.f32 %v4978_v53, %v4970_v43  ;;  %v4980_v11 = vpop.eup %4979  ;;  %4991 = vrcp.f32 %v6322_v24 }
 0x39e   : > { %1471 = vmatpush.xpose.msrb.mxu0 %v1437_v2  ;;  %1494 = vmatpush.xpose.msrb.mxu1 %v1438_v41  ;;  %v1433_v12 = vmul.f32 %v4980_v11, %v6285_v18  ;;  %v1434_v62 = vmul.f32 %v4980_v11, %v6287_v0  ;;  %v4982_v14 = vpop.eup %4981  ;;  %v203_v18 = vld [vmem:[%s8961_s1 + $0x90] sm:$0xff]  ;;  %4993 = vrcp.f32 %v6332_v4 }
 0x39f   : > { %v1431_v54 = vmul.f32 %v4982_v14, %v6293_v30  ;;  %v1432_v58 = vmul.f32 %v4982_v14, %v6295_v6  ;;  %v4984_v43 = vpop.eup %4983  ;;  %4556 = vmatmul.msk.f32.gmra.mxu0 %vm353_vm0, %v203_v18  ;;  %4580 = vmatmul.msk.f32.gmra.mxu1 %vm353_vm0, %v203_v18  ;;  %v6353_v30 = vpop.f32.mrf.mxu0  ;;  %4995 = vrcp.f32 %v6318_v22 }
 0x3a0   : > { %v1429_v0 = vmul.f32 %v4984_v43, %v6263_v61  ;;  %v1430_v15 = vmul.f32 %v4984_v43, %v6265_v3  ;;  %v4986_v38 = vpop.eup %4985  ;;  %9109 = vst [vmem:[#allocation21_spill] sm:$0xff] %v6353_v30  ;;  %v6355_v6 = vpop.f32.mrf.mxu1  ;;  %v204_v61 = vld [vmem:[%s8961_s1 + $0x98] sm:$0xff]  ;;  %4997 = vrcp.f32 %v6328_v55 }
 0x3a1   : > { %9110 = vst [vmem:[#allocation22_spill] sm:$0xff] %v6355_v6  ;;  %v1427_v5 = vmul.f32 %v4986_v38, %v6281_v25  ;;  %v1428_v47 = vmul.f32 %v4986_v38, %v6283_v10  ;;  %v4988_v56 = vpop.eup %4987  ;;  %4999 = vrcp.f32 %v6314_v23 }
 0x3a2   : > { %1472 = vmatpush.xpose.msrb.mxu0 %v1435_v16  ;;  %1495 = vmatpush.xpose.msrb.mxu1 %v1436_v19  ;;  %v1425_v3 = vmul.f32 %v4988_v56, %v6243_v32  ;;  %v1426_v59 = vmul.f32 %v4988_v56, %v6245_v33  ;;  %v4990_v25 = vpop.eup %4989  ;;  %5001 = vrcp.f32 %v6324_v31 }
 0x3a3   : > { %v1423_v10 = vmul.f32 %v4990_v25, %v6267_v60  ;;  %v1424_v57 = vmul.f32 %v4990_v25, %v6271_v50  ;;  %v4992_v21 = vpop.eup %4991  ;;  %5003 = vrcp.f32 %v6310_v63 }
 0x3a4   : > { %v1421_v32 = vmul.f32 %v4992_v21, %v6223_v49  ;;  %v1422_v33 = vmul.f32 %v4992_v21, %v6225_v20  ;;  %v4994_v27 = vpop.eup %4993  ;;  %5005 = vrcp.f32 %v6320_v9 }
 0x3a5   : > { %v1419_v60 = vmul.f32 %v4994_v27, %v6247_v46  ;;  %v1420_v50 = vmul.f32 %v4994_v27, %v6251_v7  ;;  %v4996_v4 = vpop.eup %4995 }
 0x3a6   : > { %1473 = vmatpush.xpose.msrb.mxu0 %v1433_v12  ;;  %1496 = vmatpush.xpose.msrb.mxu1 %v1434_v62  ;;  %v1417_v49 = vmul.f32 %v4996_v4, %v6199_v1  ;;  %v1418_v20 = vmul.f32 %v4996_v4, %v6201_v35  ;;  %v4998_v41 = vpop.eup %4997 }
 0x3a7   : > { %4557 = vmatmul.msk.f32.gmra.mxu0 %vm353_vm0, %v204_v61  ;;  %4581 = vmatmul.msk.f32.gmra.mxu1 %vm353_vm0, %v204_v61  ;;  %v6370_v26 = vpop.f32.mrf.mxu0  ;;  %v1415_v46 = vmul.f32 %v4998_v41, %v6227_v52  ;;  %v1416_v7 = vmul.f32 %v4998_v41, %v6231_v45  ;;  %v5000_v55 = vpop.eup %4999 }
 0x3a8   : > { %9111 = vst [vmem:[#allocation23_spill] sm:$0xff] %v6370_v26  ;;  %v6372_v24 = vpop.f32.mrf.mxu1  ;;  %v1413_v23 = vmul.f32 %v5000_v55, %v6183_v48  ;;  %v1414_v1 = vmul.f32 %v5000_v55, %v6186_v28  ;;  %v5002_v53 = vpop.eup %5001 }
 0x3a9   : > { %9112 = vst [vmem:[#allocation24_spill] sm:$0xff] %v6372_v24  ;;  %v1411_v52 = vmul.f32 %v5002_v53, %v6203_v40  ;;  %v1412_v45 = vmul.f32 %v5002_v53, %v6207_v36  ;;  %v5004_v31 = vpop.eup %5003  ;;  %v286_v40 = vpop.permute.xlu0 %285 }
 0x3aa   : > { %1474 = vmatpush.xpose.msrb.mxu0 %v1431_v54  ;;  %1497 = vmatpush.xpose.msrb.mxu1 %v1432_v58  ;;  %v1409_v48 = vmul.f32 %v5004_v31, %v6175_v13  ;;  %v1410_v28 = vmul.f32 %v5004_v31, %v6178_v51  ;;  %v5006_v63 = vpop.eup %5005  ;;  %v474_v54 = vadd.f32 %v6334_v39, %v286_v40 }
 0x3ab   : > { %v1407_v62 = vmul.f32 %v5006_v63, %v6189_v44  ;;  %v1408_v9 = vmul.f32 %v5006_v63, %v6192_v29  ;;  %v563_v44 = vadd.f32 %v6336_v17, %v286_v40 }
 0x3ac   : > { %v291_v19 = vpop.permute.xlu1 %290 }
 0x3ad   : > { %v477_v36 = vadd.f32 %v6340_v37, %v291_v19  ;;  %v566_v14 = vadd.f32 %v6342_v34, %v291_v19 }
 0x3ae   : > { %1475 = vmatpush.xpose.msrb.mxu0 %v1429_v0  ;;  %1498 = vmatpush.xpose.msrb.mxu1 %v1430_v15 }
 0x3af   : > { %v6381_v2 = vpop.f32.mrf.mxu0 }
 0x3b0   : > { %9113 = vst [vmem:[#allocation25_spill] sm:$0xff] %v6381_v2  ;;  %v6383_v22 = vpop.f32.mrf.mxu1 }
 0x3b1   : > { %9114 = vst [vmem:[#allocation26_spill] sm:$0xff] %v6383_v22 }
 0x3b2   : > { %1476 = vmatpush.xpose.msrb.mxu0 %v1427_v5  ;;  %1499 = vmatpush.xpose.msrb.mxu1 %v1428_v47 }
 0x3b6   : > { %1477 = vmatpush.xpose.msrb.mxu0 %v1425_v3  ;;  %1500 = vmatpush.xpose.msrb.mxu1 %v1426_v59 }
 0x3b7   : > { %v6393_v35 = vpop.f32.mrf.mxu0 }
 0x3b8   : > { %9115 = vst [vmem:[#allocation27_spill] sm:$0xff] %v6393_v35  ;;  %v6395_v16 = vpop.f32.mrf.mxu1 }
 0x3b9   : > { %9116 = vst [vmem:[#allocation28_spill] sm:$0xff] %v6395_v16 }
 0x3ba   : > { %1478 = vmatpush.xpose.msrb.mxu0 %v1423_v10  ;;  %1501 = vmatpush.xpose.msrb.mxu1 %v1424_v57 }
 0x3be   : > { %1479 = vmatpush.xpose.msrb.mxu0 %v1421_v32  ;;  %1502 = vmatpush.xpose.msrb.mxu1 %v1422_v33 }
 0x3bf   : > { %v491_v11 = vpop.f32.mrf.mxu0 }
 0x3c0   : > { %v580_v12 = vpop.f32.mrf.mxu1  ;;  %v6407_v13 = vadd.f32 %v491_v11, %v6256_v8 }
 0x3c1   : > { %v6410_v51 = vadd.f32 %v580_v12, %v6256_v8 }
 0x3c2   : > { %1480 = vmatpush.xpose.msrb.mxu0 %v1419_v60  ;;  %1503 = vmatpush.xpose.msrb.mxu1 %v1420_v50  ;;  %9117 = vst [vmem:[#allocation29_spill] sm:$0xff] %v6407_v13 }
 0x3c3   : > { %9118 = vst [vmem:[#allocation30_spill] sm:$0xff] %v6410_v51 }
 0x3c6   : > { %1481 = vmatpush.xpose.msrb.mxu0 %v1417_v49  ;;  %1504 = vmatpush.xpose.msrb.mxu1 %v1418_v20 }
 0x3c7   : > { %v494_v29 = vpop.f32.mrf.mxu0 }
 0x3c8   : > { %v583_v37 = vpop.f32.mrf.mxu1  ;;  %v6417_v34 = vadd.f32 %v494_v29, %v6316_v42 }
 0x3c9   : > { %v6420_v8 = vadd.f32 %v583_v37, %v6316_v42 }
 0x3ca   : > { %1482 = vmatpush.xpose.msrb.mxu0 %v1415_v46  ;;  %1505 = vmatpush.xpose.msrb.mxu1 %v1416_v7  ;;  %9119 = vst [vmem:[#allocation31_spill] sm:$0xff] %v6417_v34 }
 0x3cb   : > { %9120 = vst [vmem:[#allocation32_spill] sm:$0xff] %v6420_v8 }
 0x3ce   : > { %1483 = vmatpush.xpose.msrb.mxu0 %v1413_v23  ;;  %1506 = vmatpush.xpose.msrb.mxu1 %v1414_v1 }
 0x3d2   : > { %1484 = vmatpush.xpose.msrb.mxu0 %v1411_v52  ;;  %1507 = vmatpush.xpose.msrb.mxu1 %v1412_v45 }
 0x3d6   : > { %1485 = vmatpush.xpose.msrb.mxu0 %v1409_v48  ;;  %1508 = vmatpush.xpose.msrb.mxu1 %v1410_v28 }
 0x3da   : > { %1486 = vmatpush.xpose.msrb.mxu0 %v1407_v62  ;;  %1509 = vmatpush.xpose.msrb.mxu1 %v1408_v9 }
 0x3dd   : > { %1487 = vmatmul.f32.vlgmr.msrb.gmra.mxu0 %v6407_v13  ;;  %1510 = vmatmul.f32.vlgmr.msrb.gmra.mxu1 %v6410_v51 }
 0x3de   : > { %1741 = vmatpush.msra.mxu0 %v477_v36  ;;  %1854 = vmatpush.msra.mxu1 %v566_v14 }
 0x3e0   : > { %1742 = vmatpush.msra.mxu0 %v474_v54  ;;  %1855 = vmatpush.msra.mxu1 %v563_v44 }
 0x3e5   : > { %1490 = vmatmul.f32.gmra.mxu0 %v6417_v34  ;;  %1513 = vmatmul.f32.gmra.mxu1 %v6420_v8 }
 0x3ed   : > { %v652_v39 = vpop.trf.xlu0 }
 0x3ee   : > { %4602 = vmatmul.msk.f32.gmra.mxu2 %vm668_vm1, %v652_v39  ;;  %4634 = vmatmul.msk.f32.gmra.mxu3 %vm668_vm1, %v652_v39 }
 0x3f5   : > { %v653_v17 = vpop.trf.xlu0 }
 0x3f6   : > { %4603 = vmatmul.msk.f32.gmra.mxu2 %vm668_vm1, %v653_v17  ;;  %4635 = vmatmul.msk.f32.gmra.mxu3 %vm668_vm1, %v653_v17 }
 0x3fd   : > { %v654_v58 = vpop.trf.xlu0 }
 0x3fe   : > { %4604 = vmatmul.msk.f32.gmra.mxu2 %vm668_vm1, %v654_v58  ;;  %4636 = vmatmul.msk.f32.gmra.mxu3 %vm668_vm1, %v654_v58 }
 0x405   : > { %v655_v42 = vpop.trf.xlu0 }
 0x406   : > { %4605 = vmatmul.msk.f32.gmra.mxu2 %vm668_vm1, %v655_v42  ;;  %4637 = vmatmul.msk.f32.gmra.mxu3 %vm668_vm1, %v655_v42 }
 0x40d   : > { %v656_v43 = vpop.trf.xlu0 }
 0x40e   : > { %4606 = vmatmul.msk.f32.gmra.mxu2 %vm668_vm1, %v656_v43  ;;  %4638 = vmatmul.msk.f32.gmra.mxu3 %vm668_vm1, %v656_v43 }
 0x413   : > { %v1583_v1 = vpop.trf.xlu1 }
 0x414   : > { %4650 = vmatmul.msk.f32.vlgmr.msra.gmra.mxu0 %vm668_vm1, %v1583_v1  ;;  %4682 = vmatmul.msk.f32.vlgmr.msra.gmra.mxu1 %vm668_vm1, %v1583_v1 }
 0x415   : > { %v657_v18 = vpop.trf.xlu0 }
 0x416   : > { %4607 = vmatmul.msk.f32.gmra.mxu2 %vm668_vm1, %v657_v18  ;;  %4639 = vmatmul.msk.f32.gmra.mxu3 %vm668_vm1, %v657_v18 }
 0x41b   : > { %v1584_v45 = vpop.trf.xlu1 }
 0x41c   : > { %v6448_v61 = vpop.f32.mrf.mxu0  ;;  %v6450_v3 = vpop.f32.mrf.mxu1  ;;  %4651 = vmatmul.msk.f32.gmra.mxu0 %vm668_vm1, %v1584_v45  ;;  %4683 = vmatmul.msk.f32.gmra.mxu1 %vm668_vm1, %v1584_v45 }
 0x41d   : > { %v658_v0 = vpop.trf.xlu0  ;;  %9121 = vst [vmem:[#allocation33_spill] sm:$0xff] %v6448_v61 }
 0x41e   : > { %4608 = vmatmul.msk.f32.gmra.mxu2 %vm668_vm1, %v658_v0  ;;  %4640 = vmatmul.msk.f32.gmra.mxu3 %vm668_vm1, %v658_v0  ;;  %9122 = vst [vmem:[#allocation34_spill] sm:$0xff] %v6450_v3 }
 0x423   : > { %v1585_v28 = vpop.trf.xlu1 }
 0x424   : > { %v6454_v25 = vpop.f32.mrf.mxu0  ;;  %v6456_v10 = vpop.f32.mrf.mxu1  ;;  %4652 = vmatmul.msk.f32.gmra.mxu0 %vm668_vm1, %v1585_v28  ;;  %4684 = vmatmul.msk.f32.gmra.mxu1 %vm668_vm1, %v1585_v28 }
 0x425   : > { %v659_v15 = vpop.trf.xlu0  ;;  %9123 = vst [vmem:[#allocation35_spill] sm:$0xff] %v6454_v25 }
 0x426   : > { %4609 = vmatmul.msk.f32.gmra.mxu2 %vm668_vm1, %v659_v15  ;;  %4641 = vmatmul.msk.f32.gmra.mxu3 %vm668_vm1, %v659_v15  ;;  %9124 = vst [vmem:[#allocation36_spill] sm:$0xff] %v6456_v10 }
 0x42b   : > { %v1586_v11 = vpop.trf.xlu1 }
 0x42c   : > { %4653 = vmatmul.msk.f32.gmra.mxu0 %vm668_vm1, %v1586_v11  ;;  %4685 = vmatmul.msk.f32.gmra.mxu1 %vm668_vm1, %v1586_v11 }
 0x42d   : > { %v660_v38 = vpop.trf.xlu0 }
 0x42e   : > { %4610 = vmatmul.msk.f32.gmra.mxu2 %vm668_vm1, %v660_v38  ;;  %4642 = vmatmul.msk.f32.gmra.mxu3 %vm668_vm1, %v660_v38 }
 0x433   : > { %v1587_v9 = vpop.trf.xlu1 }
 0x434   : > { %4654 = vmatmul.msk.f32.gmra.mxu0 %vm668_vm1, %v1587_v9  ;;  %4686 = vmatmul.msk.f32.gmra.mxu1 %vm668_vm1, %v1587_v9 }
 0x435   : > { %v661_v5 = vpop.trf.xlu0 }
 0x436   : > { %4611 = vmatmul.msk.f32.gmra.mxu2 %vm668_vm1, %v661_v5  ;;  %4643 = vmatmul.msk.f32.gmra.mxu3 %vm668_vm1, %v661_v5 }
 0x43b   : > { %v1588_v14 = vpop.trf.xlu1 }
 0x43c   : > { %4655 = vmatmul.msk.f32.gmra.mxu0 %vm668_vm1, %v1588_v14  ;;  %4687 = vmatmul.msk.f32.gmra.mxu1 %vm668_vm1, %v1588_v14 }
 0x43d   : > { %v662_v47 = vpop.trf.xlu0 }
 0x43e   : > { %4612 = vmatmul.msk.f32.gmra.mxu2 %vm668_vm1, %v662_v47  ;;  %4644 = vmatmul.msk.f32.gmra.mxu3 %vm668_vm1, %v662_v47 }
 0x443   : > { %v1589_v29 = vpop.trf.xlu1 }
 0x444   : > { %4656 = vmatmul.msk.f32.gmra.mxu0 %vm668_vm1, %v1589_v29  ;;  %4688 = vmatmul.msk.f32.gmra.mxu1 %vm668_vm1, %v1589_v29 }
 0x445   : > { %v663_v56 = vpop.trf.xlu0 }
 0x446   : > { %4613 = vmatmul.msk.f32.gmra.mxu2 %vm668_vm1, %v663_v56  ;;  %4645 = vmatmul.msk.f32.gmra.mxu3 %vm668_vm1, %v663_v56 }
 0x44b   : > { %v1590_v17 = vpop.trf.xlu1 }
 0x44c   : > { %4657 = vmatmul.msk.f32.gmra.mxu0 %vm668_vm1, %v1590_v17  ;;  %4689 = vmatmul.msk.f32.gmra.mxu1 %vm668_vm1, %v1590_v17 }
 0x44d   : > { %v664_v59 = vpop.trf.xlu0 }
 0x44e   : > { %4614 = vmatmul.msk.f32.gmra.mxu2 %vm668_vm1, %v664_v59  ;;  %4646 = vmatmul.msk.f32.gmra.mxu3 %vm668_vm1, %v664_v59 }
 0x453   : > { %v1591_v43 = vpop.trf.xlu1 }
 0x454   : > { %4658 = vmatmul.msk.f32.gmra.mxu0 %vm668_vm1, %v1591_v43  ;;  %4690 = vmatmul.msk.f32.gmra.mxu1 %vm668_vm1, %v1591_v43 }
 0x455   : > { %v665_v57 = vpop.trf.xlu0 }
 0x456   : > { %4615 = vmatmul.msk.f32.gmra.mxu2 %vm668_vm1, %v665_v57  ;;  %4647 = vmatmul.msk.f32.gmra.mxu3 %vm668_vm1, %v665_v57 }
 0x45a   : > { %v1488_v21 = vpop.f32.mrf.mxu0  ;;  %v1511_v32 = vpop.f32.mrf.mxu1 }
 0x45b   : > { %v1512_v33 = vadd.f32 %v1511_v32, %v1488_v21  ;;  %v1592_v15 = vpop.trf.xlu1 }
 0x45c   : > { %4659 = vmatmul.msk.f32.gmra.mxu0 %vm668_vm1, %v1592_v15  ;;  %4691 = vmatmul.msk.f32.gmra.mxu1 %vm668_vm1, %v1592_v15 }
 0x45d   : > { %1563 = vst [vmem:[%s6463_s27] sm:$0xff] %v1512_v33  ;;  %v666_v27 = vpop.trf.xlu0 }
 0x45e   : > { %4616 = vmatmul.msk.f32.gmra.mxu2 %vm668_vm1, %v666_v27  ;;  %4648 = vmatmul.msk.f32.gmra.mxu3 %vm668_vm1, %v666_v27 }
 0x462   : > { %v1491_v60 = vpop.f32.mrf.mxu0  ;;  %v1514_v50 = vpop.f32.mrf.mxu1 }
 0x463   : > { %v1515_v4 = vadd.f32 %v1514_v50, %v1491_v60  ;;  %v1593_v47 = vpop.trf.xlu1  ;;  %v1615_v60 = vpop.trf.xlu2 }
 0x464   : > { %4660 = vmatmul.msk.f32.gmra.mxu0 %vm668_vm1, %v1593_v47  ;;  %4692 = vmatmul.msk.f32.gmra.mxu1 %vm668_vm1, %v1593_v47 }
 0x465   : > { %1565 = vst [vmem:[%s6463_s27 + $0x10] sm:$0xff] %v1515_v4  ;;  %v667_v49 = vpop.trf.xlu0 }
 0x466   : > { %4617 = vmatmul.msk.f32.gmra.mxu2 %vm668_vm1, %v667_v49  ;;  %4649 = vmatmul.msk.f32.gmra.mxu3 %vm668_vm1, %v667_v49 }
 0x46b   : > { %v1594_v21 = vpop.trf.xlu1  ;;  %v1616_v11 = vpop.trf.xlu2 }
 0x46c   : > { %4661 = vmatmul.msk.f32.gmra.mxu0 %vm668_vm1, %v1594_v21  ;;  %4693 = vmatmul.msk.f32.gmra.mxu1 %vm668_vm1, %v1594_v21 }
 0x471   : > { %v6471_v20 = vpop.f32.mrf.mxu2  ;;  %v6473_v41 = vpop.f32.mrf.mxu3 }
 0x473   : > { %v1595_v50 = vpop.trf.xlu1  ;;  %v1617_v17 = vpop.trf.xlu2 }
 0x474   : > { %4662 = vmatmul.msk.f32.gmra.mxu0 %vm668_vm1, %v1595_v50  ;;  %4694 = vmatmul.msk.f32.gmra.mxu1 %vm668_vm1, %v1595_v50 }
 0x479   : > { %v6475_v46 = vpop.f32.mrf.mxu2  ;;  %v6477_v7 = vpop.f32.mrf.mxu3 }
 0x47b   : > { %v1596_v28 = vpop.trf.xlu1 }
 0x47c   : > { %4663 = vmatmul.msk.f32.gmra.mxu0 %vm668_vm1, %v1596_v28  ;;  %4695 = vmatmul.msk.f32.gmra.mxu1 %vm668_vm1, %v1596_v28 }
 0x481   : > { %v6479_v55 = vpop.f32.mrf.mxu2  ;;  %v6481_v23 = vpop.f32.mrf.mxu3 }
 0x483   : > { %v1597_v29 = vpop.trf.xlu1 }
 0x484   : > { %4664 = vmatmul.msk.f32.gmra.mxu0 %vm668_vm1, %v1597_v29  ;;  %4696 = vmatmul.msk.f32.gmra.mxu1 %vm668_vm1, %v1597_v29 }
 0x489   : > { %v6485_v53 = vpop.f32.mrf.mxu2  ;;  %v6487_v52 = vpop.f32.mrf.mxu3 }
 0x48b   : > { %v1598_v47 = vpop.trf.xlu1 }
 0x48c   : > { %4665 = vmatmul.msk.f32.gmra.mxu0 %vm668_vm1, %v1598_v47  ;;  %4697 = vmatmul.msk.f32.gmra.mxu1 %vm668_vm1, %v1598_v47  ;;  %v1045_v47 = vmax.f32 %v6479_v55, %v6481_v23 }
 0x491   : > { %v6491_v31 = vpop.f32.mrf.mxu2  ;;  %v6493_v48 = vpop.f32.mrf.mxu3 }
 0x492   : > { %v6585_v21 = vpop.f32.mrf.mxu1 }
 0x493   : > { %9134 = vst [vmem:[#allocation46_spill] sm:$0xff] %v6585_v21 }
 0x494   : > { %4666 = vmatmul.msk.f32.gmra.mxu0 %vm668_vm1, %v1615_v60  ;;  %4698 = vmatmul.msk.f32.gmra.mxu1 %vm668_vm1, %v1615_v60 }
 0x499   : > { %v6497_v63 = vpop.f32.mrf.mxu2  ;;  %v6499_v19 = vpop.f32.mrf.mxu3 }
 0x49a   : > { %v6595_v28 = vpop.f32.mrf.mxu1 }
 0x49b   : > { %9136 = vst [vmem:[#allocation48_spill] sm:$0xff] %v6595_v28 }
 0x49c   : > { %4667 = vmatmul.msk.f32.gmra.mxu0 %vm668_vm1, %v1616_v11  ;;  %4699 = vmatmul.msk.f32.gmra.mxu1 %vm668_vm1, %v1616_v11 }
 0x4a1   : > { %v6503_v12 = vpop.f32.mrf.mxu2  ;;  %v6505_v62 = vpop.f32.mrf.mxu3 }
 0x4a2   : > { %v6605_v60 = vpop.f32.mrf.mxu1 }
 0x4a4   : > { %4668 = vmatmul.msk.f32.gmra.mxu0 %vm668_vm1, %v1617_v17  ;;  %4700 = vmatmul.msk.f32.gmra.mxu1 %vm668_vm1, %v1617_v17  ;;  %v1039_v17 = vmax.f32 %v6471_v20, %v6473_v41 }
 0x4a9   : > { %v6509_v40 = vpop.f32.mrf.mxu2  ;;  %v6511_v36 = vpop.f32.mrf.mxu3 }
 0x4aa   : > { %v1060_v50 = vmax.f32 %v6509_v40, %v6511_v36  ;;  %v6615_v11 = vpop.f32.mrf.mxu1 }
 0x4ab   : > { %9138 = vst [vmem:[#allocation50_spill] sm:$0xff] %v6615_v11 }
 0x4b1   : > { %v6515_v54 = vpop.f32.mrf.mxu2  ;;  %v6517_v44 = vpop.f32.mrf.mxu3 }
 0x4b2   : > { %v1063_v15 = vmax.f32 %v6515_v54, %v6517_v44 }
 0x4b9   : > { %v6521_v37 = vpop.f32.mrf.mxu2  ;;  %v6523_v39 = vpop.f32.mrf.mxu3 }
 0x4ba   : > { %v1066_v43 = vmax.f32 %v6521_v37, %v6523_v39 }
 0x4c1   : > { %v6527_v58 = vpop.f32.mrf.mxu2  ;;  %v6529_v42 = vpop.f32.mrf.mxu3 }
 0x4c2   : > { %v1069_v14 = vmax.f32 %v6527_v58, %v6529_v42 }
 0x4c9   : > { %v6533_v18 = vpop.f32.mrf.mxu2  ;;  %v6535_v0 = vpop.f32.mrf.mxu3 }
 0x4ca   : > { %v1072_v9 = vmax.f32 %v6533_v18, %v6535_v0 }
 0x4d1   : > { %v6539_v38 = vpop.f32.mrf.mxu2  ;;  %v6541_v5 = vpop.f32.mrf.mxu3 }
 0x4d2   : > { %9125 = vst [vmem:[#allocation37_spill] sm:$0xff] %v6539_v38  ;;  %v1075_v45 = vmax.f32 %v6539_v38, %v6541_v5 }
 0x4d3   : > { %9126 = vst [vmem:[#allocation38_spill] sm:$0xff] %v6541_v5 }
 0x4d9   : > { %v6545_v56 = vpop.f32.mrf.mxu2  ;;  %v6547_v59 = vpop.f32.mrf.mxu3 }
 0x4da   : > { %9127 = vst [vmem:[#allocation39_spill] sm:$0xff] %v6545_v56  ;;  %v1078_v57 = vmax.f32 %v6545_v56, %v6547_v59 }
 0x4db   : > { %9128 = vst [vmem:[#allocation40_spill] sm:$0xff] %v6547_v59 }
 0x4dc   : > { %1079 = vmax.xlane.f32.xlu2 %v1078_v57  ;;  %v6583_v57 = vpop.f32.mrf.mxu0 }
 0x4dd   : > { %9133 = vst [vmem:[#allocation45_spill] sm:$0xff] %v6583_v57 }
 0x4e1   : > { %v6553_v32 = vpop.f32.mrf.mxu2  ;;  %v6555_v33 = vpop.f32.mrf.mxu3 }
 0x4e2   : > { %9129 = vst [vmem:[#allocation41_spill] sm:$0xff] %v6553_v32  ;;  %v1081_v27 = vmax.f32 %v6553_v32, %v6555_v33 }
 0x4e3   : > { %9130 = vst [vmem:[#allocation42_spill] sm:$0xff] %v6555_v33 }
 0x4e4   : > { %1082 = vmax.xlane.f32.xlu1 %v1081_v27  ;;  %v1618_v27 = vpop.trf.xlu2 }
 0x4e5   : > { %4669 = vmatmul.msk.f32.gmra.mxu0 %vm668_vm1, %v1618_v27  ;;  %4701 = vmatmul.msk.f32.gmra.mxu1 %vm668_vm1, %v1618_v27 }
 0x4e9   : > { %v6561_v4 = vpop.f32.mrf.mxu2  ;;  %v6563_v49 = vpop.f32.mrf.mxu3 }
 0x4ea   : > { %9131 = vst [vmem:[#allocation43_spill] sm:$0xff] %v6561_v4  ;;  %v1084_v1 = vmax.f32 %v6561_v4, %v6563_v49 }
 0x4eb   : > { %9132 = vst [vmem:[#allocation44_spill] sm:$0xff] %v6563_v49 }
 0x4ec   : > { %1085 = vmax.xlane.f32.xlu0 %v1084_v1  ;;  %1076 = vmax.xlane.f32.xlu1 %v1075_v45  ;;  %v1057_v1 = vmax.f32 %v6503_v12, %v6505_v62  ;;  %v6593_v45 = vpop.f32.mrf.mxu0  ;;  %v1619_v29 = vpop.trf.xlu2 }
 0x4ed   : > { %9135 = vst [vmem:[#allocation47_spill] sm:$0xff] %v6593_v45  ;;  %4670 = vmatmul.msk.f32.gmra.mxu0 %vm668_vm1, %v1619_v29  ;;  %4702 = vmatmul.msk.f32.gmra.mxu1 %vm668_vm1, %v1619_v29 }
 0x4f4   : > { %1073 = vmax.xlane.f32.xlu0 %v1072_v9  ;;  %1070 = vmax.xlane.f32.xlu1 %v1069_v14  ;;  %v1054_v9 = vmax.f32 %v6497_v63, %v6499_v19  ;;  %v1051_v14 = vmax.f32 %v6491_v31, %v6493_v48 }
 0x4fc   : > { %1067 = vmax.xlane.f32.xlu0 %v1066_v43  ;;  %1064 = vmax.xlane.f32.xlu1 %v1063_v15  ;;  %v6603_v43 = vpop.f32.mrf.mxu0  ;;  %v1048_v15 = vmax.f32 %v6485_v53, %v6487_v52 }
 0x504   : > { %1061 = vmax.xlane.f32.xlu0 %v1060_v50  ;;  %1058 = vmax.xlane.f32.xlu1 %v1057_v1  ;;  %v1620_v50 = vpop.trf.xlu2  ;;  %v6613_v1 = vpop.f32.mrf.mxu0 }
 0x505   : > { %9137 = vst [vmem:[#allocation49_spill] sm:$0xff] %v6613_v1  ;;  %4671 = vmatmul.msk.f32.gmra.mxu0 %vm668_vm1, %v1620_v50  ;;  %4703 = vmatmul.msk.f32.gmra.mxu1 %vm668_vm1, %v1620_v50 }
 0x50c   : > { %1055 = vmax.xlane.f32.xlu0 %v1054_v9  ;;  %1052 = vmax.xlane.f32.xlu1 %v1051_v14  ;;  %v1042_v9 = vmax.f32 %v6475_v46, %v6477_v7  ;;  %v1621_v14 = vpop.trf.xlu2 }
 0x50d   : > { %4672 = vmatmul.msk.f32.gmra.mxu0 %vm668_vm1, %v1621_v14  ;;  %4704 = vmatmul.msk.f32.gmra.mxu1 %vm668_vm1, %v1621_v14 }
 0x514   : > { %1049 = vmax.xlane.f32.xlu0 %v1048_v15  ;;  %1046 = vmax.xlane.f32.xlu1 %v1045_v47  ;;  %v6621_v15 = vpop.f32.mrf.mxu0  ;;  %v6623_v47 = vpop.f32.mrf.mxu1 }
 0x515   : > { %v1622_v22 = vpop.trf.xlu2 }
 0x516   : > { %4673 = vmatmul.msk.f32.gmra.mxu0 %vm668_vm1, %v1622_v22  ;;  %4705 = vmatmul.msk.f32.gmra.mxu1 %vm668_vm1, %v1622_v22 }
 0x51c   : > { %1043 = vmax.xlane.f32.xlu1 %v1042_v9  ;;  %v6629_v2 = vpop.f32.mrf.mxu0  ;;  %v6631_v9 = vpop.f32.mrf.mxu1 }
 0x51d   : > { %v1623_v27 = vpop.trf.xlu2 }
 0x51e   : > { %4674 = vmatmul.msk.f32.gmra.mxu0 %vm668_vm1, %v1623_v27  ;;  %4706 = vmatmul.msk.f32.gmra.mxu1 %vm668_vm1, %v1623_v27 }
 0x524   : > { %1040 = vmax.xlane.f32.xlu1 %v1039_v17  ;;  %v6635_v16 = vpop.f32.mrf.mxu0  ;;  %v6637_v35 = vpop.f32.mrf.mxu1 }
 0x525   : > { %9139 = vst [vmem:[#allocation51_spill] sm:$0xff] %v6635_v16  ;;  %v1624_v6 = vpop.trf.xlu2 }
 0x526   : > { %9140 = vst [vmem:[#allocation52_spill] sm:$0xff] %v6637_v35  ;;  %4675 = vmatmul.msk.f32.gmra.mxu0 %vm668_vm1, %v1624_v6  ;;  %4707 = vmatmul.msk.f32.gmra.mxu1 %vm668_vm1, %v1624_v6 }
 0x52c   : > { %v6641_v17 = vpop.f32.mrf.mxu0  ;;  %v6643_v29 = vpop.f32.mrf.mxu1 }
 0x52d   : > { %v1625_v24 = vpop.trf.xlu2 }
 0x52e   : > { %4676 = vmatmul.msk.f32.gmra.mxu0 %vm668_vm1, %v1625_v24  ;;  %4708 = vmatmul.msk.f32.gmra.mxu1 %vm668_vm1, %v1625_v24 }
 0x534   : > { %v6649_v50 = vpop.f32.mrf.mxu0  ;;  %v6651_v30 = vpop.f32.mrf.mxu1 }
 0x535   : > { %9141 = vst [vmem:[#allocation53_spill] sm:$0xff] %v6649_v50  ;;  %v1626_v10 = vpop.trf.xlu2 }
 0x536   : > { %9142 = vst [vmem:[#allocation54_spill] sm:$0xff] %v6651_v30  ;;  %4677 = vmatmul.msk.f32.gmra.mxu0 %vm668_vm1, %v1626_v10  ;;  %4709 = vmatmul.msk.f32.gmra.mxu1 %vm668_vm1, %v1626_v10 }
 0x53c   : > { %v6655_v14 = vpop.f32.mrf.mxu0  ;;  %v6657_v26 = vpop.f32.mrf.mxu1 }
 0x53d   : > { %9143 = vst [vmem:[#allocation55_spill] sm:$0xff] %v6655_v14  ;;  %v1627_v3 = vpop.trf.xlu2 }
 0x53e   : > { %9144 = vst [vmem:[#allocation56_spill] sm:$0xff] %v6657_v26  ;;  %4678 = vmatmul.msk.f32.gmra.mxu0 %vm668_vm1, %v1627_v3  ;;  %4710 = vmatmul.msk.f32.gmra.mxu1 %vm668_vm1, %v1627_v3 }
 0x544   : > { %v6663_v27 = vpop.f32.mrf.mxu0  ;;  %v6665_v25 = vpop.f32.mrf.mxu1 }
 0x545   : > { %9146 = vst [vmem:[#allocation58_spill] sm:$0xff] %v6663_v27  ;;  %v1628_v24 = vpop.trf.xlu2 }
 0x546   : > { %9147 = vst [vmem:[#allocation59_spill] sm:$0xff] %v6665_v25  ;;  %4679 = vmatmul.msk.f32.gmra.mxu0 %vm668_vm1, %v1628_v24  ;;  %4711 = vmatmul.msk.f32.gmra.mxu1 %vm668_vm1, %v1628_v24 }
 0x54c   : > { %v6673_v8 = vpop.f32.mrf.mxu0  ;;  %v6675_v34 = vpop.f32.mrf.mxu1 }
 0x54d   : > { %9150 = vst [vmem:[#allocation62_spill] sm:$0xff] %v6673_v8  ;;  %v1629_v49 = vpop.trf.xlu2 }
 0x54e   : > { %9151 = vst [vmem:[#allocation63_spill] sm:$0xff] %v6675_v34  ;;  %4680 = vmatmul.msk.f32.gmra.mxu0 %vm668_vm1, %v1629_v49  ;;  %4712 = vmatmul.msk.f32.gmra.mxu1 %vm668_vm1, %v1629_v49 }
 0x554   : > { %v6683_v57 = vpop.f32.mrf.mxu0  ;;  %v6685_v10 = vpop.f32.mrf.mxu1 }
 0x555   : > { %v1630_v25 = vpop.trf.xlu2 }
 0x556   : > { %4681 = vmatmul.msk.f32.gmra.mxu0 %vm668_vm1, %v1630_v25  ;;  %4713 = vmatmul.msk.f32.gmra.mxu1 %vm668_vm1, %v1630_v25 }
 0x557   : > { %v6661_v22 = vpop.xlane.xlu1 %1082 }
 0x558   : > { %9145 = vst [vmem:[#allocation57_spill] sm:$0xff] %v6661_v22 }
 0x55c   : > { %v6693_v34 = vpop.f32.mrf.mxu0  ;;  %v6695_v3 = vpop.f32.mrf.mxu1 }
 0x55f   : > { %v6669_v6 = vpop.xlane.xlu0 %1085  ;;  %v6671_v61 = vpop.xlane.xlu1 %1076 }
 0x560   : > { %9148 = vst [vmem:[#allocation60_spill] sm:$0xff] %v6669_v6 }
 0x561   : > { %9149 = vst [vmem:[#allocation61_spill] sm:$0xff] %v6671_v61 }
 0x564   : > { %v6703_v27 = vpop.f32.mrf.mxu0  ;;  %v6705_v24 = vpop.f32.mrf.mxu1 }
 0x565   : > { %9152 = vst [vmem:[#allocation64_spill] sm:$0xff] %v6703_v27 }
 0x566   : > { %9153 = vst [vmem:[#allocation65_spill] sm:$0xff] %v6705_v24 }
 0x567   : > { %v6679_v51 = vpop.xlane.xlu0 %1073  ;;  %v6681_v13 = vpop.xlane.xlu1 %1070 }
 0x56c   : > { %v6709_v22 = vpop.f32.mrf.mxu0  ;;  %v6711_v14 = vpop.f32.mrf.mxu1 }
 0x56d   : > { %9154 = vst [vmem:[#allocation66_spill] sm:$0xff] %v6709_v22 }
 0x56e   : > { %9155 = vst [vmem:[#allocation67_spill] sm:$0xff] %v6711_v14 }
 0x56f   : > { %v6689_v21 = vpop.xlane.xlu0 %1067  ;;  %v6691_v8 = vpop.xlane.xlu1 %1064 }
 0x574   : > { %v6717_v27 = vpop.f32.mrf.mxu0  ;;  %v6719_v24 = vpop.f32.mrf.mxu1 }
 0x575   : > { %9156 = vst [vmem:[#allocation68_spill] sm:$0xff] %v6717_v27 }
 0x576   : > { %9157 = vst [vmem:[#allocation69_spill] sm:$0xff] %v6719_v24 }
 0x577   : > { %v6699_v4 = vpop.xlane.xlu0 %1061  ;;  %v6701_v6 = vpop.xlane.xlu1 %1058 }
 0x57f   : > { %v1056_v33 = vpop.xlane.xlu0 %1055  ;;  %v1053_v32 = vpop.xlane.xlu1 %1052 }
 0x580   : > { %v1127_v25 = vsub.f32 %v6491_v31, %v1053_v32  ;;  %v1128_v14 = vsub.f32 %v6493_v48, %v1053_v32  ;;  %v1130_v31 = vsub.f32 %v6499_v19, %v1056_v33 }
 0x587   : > { %v1050_v49 = vpop.xlane.xlu0 %1049  ;;  %v1047_v26 = vpop.xlane.xlu1 %1046 }
 0x588   : > { %v1125_v59 = vsub.f32 %v6485_v53, %v1050_v49  ;;  %v1126_v56 = vsub.f32 %v6487_v52, %v1050_v49  ;;  %v1123_v50 = vsub.f32 %v6479_v55, %v1047_v26  ;;  %v1124_v30 = vsub.f32 %v6481_v23, %v1047_v26 }
 0x589   : > { %v1231_v53 = vmul.f32 1.442695, %v1127_v25  ;;  %v1233_v52 = vmul.f32 1.442695, %v1128_v14  ;;  %v1129_v23 = vsub.f32 %v6497_v63, %v1056_v33  ;;  %v1131_v33 = vsub.f32 %v6503_v12, %v6701_v6 }
 0x58a   : > { %v1227_v5 = vmul.f32 1.442695, %v1125_v59  ;;  %v1229_v22 = vmul.f32 1.442695, %v1126_v56  ;;  %v1223_v38 = vmul.f32 1.442695, %v1123_v50  ;;  %v6729_v56 = vpop.f32.mrf.mxu0  ;;  %v1132_v25 = vsub.f32 %v6505_v62, %v6701_v6 }
 0x58b   : > { %v1225_v61 = vmul.f32 1.442695, %v1124_v30  ;;  %9160 = vst [vmem:[#allocation72_spill] sm:$0xff] %v6729_v56  ;;  %v6731_v30 = vpop.f32.mrf.mxu1  ;;  %v1237_v59 = vmul.f32 1.442695, %v1130_v31 }
 0x58c   : > { %5007 = vpow2.f32 %v1227_v5  ;;  %9161 = vst [vmem:[#allocation73_spill] sm:$0xff] %v6731_v30  ;;  %v1235_v5 = vmul.f32 1.442695, %v1129_v23  ;;  %v1241_v12 = vmul.f32 1.442695, %v1132_v25 }
 0x58d   : > { %5009 = vpow2.f32 %v1229_v22 }
 0x58e   : > { %5011 = vpow2.f32 %v1223_v38 }
 0x58f   : > { %5013 = vpow2.f32 %v1225_v61  ;;  %v1044_v55 = vpop.xlane.xlu1 %1043 }
 0x590   : > { %5015 = vpow2.f32 %v1231_v53  ;;  %v1121_v53 = vsub.f32 %v6475_v46, %v1044_v55  ;;  %v1122_v31 = vsub.f32 %v6477_v7, %v1044_v55  ;;  %v1959_v46 = vmax.f32 %v6603_v43, %v6605_v60 }
 0x591   : > { %5017 = vpow2.f32 %v1233_v52 }
 0x592   : > { %v6723_v26 = vpop.eup %5007  ;;  %5019 = vpow2.f32 %v1235_v5  ;;  %v1219_v62 = vmul.f32 1.442695, %v1121_v53  ;;  %v1221_v6 = vmul.f32 1.442695, %v1122_v31 }
 0x593   : > { %9158 = vst [vmem:[#allocation70_spill] sm:$0xff] %v6723_v26  ;;  %v6726_v49 = vpop.eup %5009  ;;  %5021 = vpow2.f32 %v1237_v59  ;;  %v1133_v59 = vsub.f32 %v6509_v40, %v6699_v4  ;;  %v1962_v40 = vmax.f32 %v6613_v1, %v6615_v11  ;;  %v9197_v11 = vld [vmem:[#allocation55_spill] sm:$0xff] }
 0x594   : > { %9159 = vst [vmem:[#allocation71_spill] sm:$0xff] %v6726_v49  ;;  %v6733_v48 = vpop.eup %5011  ;;  %v1336_v61 = vadd.f32 %v6726_v49, %v6723_v26  ;;  %v9195_v49 = vld [vmem:[#allocation40_spill] sm:$0xff] }
 0x595   : > { %9162 = vst [vmem:[#allocation74_spill] sm:$0xff] %v6733_v48  ;;  %v6737_v38 = vpop.eup %5013  ;;  %v1243_v53 = vmul.f32 1.442695, %v1133_v59  ;;  %v1965_v59 = vmax.f32 %v6621_v15, %v6623_v47 }
 0x596   : > { %9163 = vst [vmem:[#allocation75_spill] sm:$0xff] %v6737_v38  ;;  %1337 = vadd.xlane.f32.xlu2 %v1336_v61  ;;  %v1333_v63 = vadd.f32 %v6737_v38, %v6733_v48  ;;  %v6741_v19 = vpop.eup %5015  ;;  %v1239_v61 = vmul.f32 1.442695, %v1131_v33  ;;  %v1134_v33 = vsub.f32 %v6511_v36, %v6699_v4 }
 0x597   : > { %v1041_v32 = vpop.xlane.xlu1 %1040  ;;  %9164 = vst [vmem:[#allocation76_spill] sm:$0xff] %v6741_v19  ;;  %v6747_v22 = vpop.eup %5017 }
 0x598   : > { %1334 = vadd.xlane.f32.xlu1 %v1333_v63  ;;  %v1119_v50 = vsub.f32 %v6471_v20, %v1041_v32  ;;  %v1120_v14 = vsub.f32 %v6473_v41, %v1041_v32  ;;  %9165 = vst [vmem:[#allocation77_spill] sm:$0xff] %v6747_v22  ;;  %v1339_v20 = vadd.f32 %v6747_v22, %v6741_v19  ;;  %v6755_v41 = vpop.f32.mrf.mxu0  ;;  %v6757_v63 = vpop.f32.mrf.mxu1  ;;  %v9202_v19 = vld [vmem:[#allocation58_spill] sm:$0xff] }
 0x599   : > { %9166 = vst [vmem:[#allocation78_spill] sm:$0xff] %v6755_v41  ;;  %v6761_v5 = vpop.eup %5019 }
 0x59a   : > { %v1215_v52 = vmul.f32 1.442695, %v1119_v50  ;;  %v1217_v23 = vmul.f32 1.442695, %v1120_v14  ;;  %9167 = vst [vmem:[#allocation79_spill] sm:$0xff] %v6757_v63  ;;  %v6763_v7 = vpop.eup %5021 }
 0x59b   : > { %9168 = vst [vmem:[#allocation80_spill] sm:$0xff] %v6761_v5  ;;  %v1342_v50 = vadd.f32 %v6763_v7, %v6761_v5 }
 0x59c   : > { %5023 = vpow2.f32 %v1215_v52  ;;  %9169 = vst [vmem:[#allocation81_spill] sm:$0xff] %v6763_v7 }
 0x59d   : > { %5025 = vpow2.f32 %v1217_v23  ;;  %v1245_v23 = vmul.f32 1.442695, %v1134_v33 }
 0x59e   : > { %1340 = vadd.xlane.f32.xlu2 %v1339_v20  ;;  %5027 = vpow2.f32 %v1239_v61  ;;  %v1135_v20 = vsub.f32 %v6515_v54, %v6691_v8 }
 0x59f   : > { %5029 = vpow2.f32 %v1241_v12  ;;  %v1136_v12 = vsub.f32 %v6517_v44, %v6691_v8 }
 0x5a0   : > { %1960 = vmax.xlane.f32.xlu1 %v1959_v46  ;;  %5031 = vpow2.f32 %v1219_v62  ;;  %v6783_v31 = vpop.f32.mrf.mxu0  ;;  %v6785_v36 = vpop.f32.mrf.mxu1 }
 0x5a1   : > { %5033 = vpow2.f32 %v1221_v6  ;;  %9174 = vst [vmem:[#allocation86_spill] sm:$0xff] %v6783_v31  ;;  %v1247_v6 = vmul.f32 1.442695, %v1135_v20  ;;  %v1249_v33 = vmul.f32 1.442695, %v1136_v12  ;;  %v1968_v20 = vmax.f32 %v6629_v2, %v6631_v9 }
 0x5a2   : > { %v6765_v55 = vpop.eup %5023  ;;  %9175 = vst [vmem:[#allocation87_spill] sm:$0xff] %v6785_v36  ;;  %5035 = vpow2.f32 %v1243_v53  ;;  %v1138_v53 = vsub.f32 %v6523_v39, %v6689_v21  ;;  %v1139_v39 = vsub.f32 %v6527_v58, %v6681_v13 }
 0x5a3   : > { %9170 = vst [vmem:[#allocation82_spill] sm:$0xff] %v6765_v55  ;;  %v6769_v32 = vpop.eup %5025  ;;  %5037 = vpow2.f32 %v1245_v23  ;;  %v1956_v23 = vmax.f32 %v6593_v45, %v6595_v28  ;;  %v9189_v28 = vld [vmem:[#allocation38_spill] sm:$0xff] }
 0x5a4   : > { %9171 = vst [vmem:[#allocation83_spill] sm:$0xff] %v6769_v32  ;;  %v1327_v14 = vadd.f32 %v6769_v32, %v6765_v55  ;;  %v6777_v25 = vpop.eup %5027  ;;  %5039 = vpow2.f32 %v1247_v6 }
 0x5a5   : > { %9172 = vst [vmem:[#allocation84_spill] sm:$0xff] %v6777_v25  ;;  %v6781_v52 = vpop.eup %5029  ;;  %5041 = vpow2.f32 %v1249_v33 }
 0x5a6   : > { %1343 = vadd.xlane.f32.xlu2 %v1342_v50  ;;  %1328 = vadd.xlane.f32.xlu0 %v1327_v14  ;;  %9173 = vst [vmem:[#allocation85_spill] sm:$0xff] %v6781_v52  ;;  %v6787_v4 = vpop.eup %5031  ;;  %v1345_v62 = vadd.f32 %v6781_v52, %v6777_v25  ;;  %v1137_v14 = vsub.f32 %v6521_v37, %v6689_v21 }
 0x5a7   : > { %9176 = vst [vmem:[#allocation88_spill] sm:$0xff] %v6787_v4  ;;  %v6789_v61 = vpop.eup %5033  ;;  %v1140_v21 = vsub.f32 %v6529_v42, %v6681_v13  ;;  %v1141_v42 = vsub.f32 %v6533_v18, %v6679_v51 }
 0x5a8   : > { %1963 = vmax.xlane.f32.xlu1 %v1962_v40  ;;  %9177 = vst [vmem:[#allocation89_spill] sm:$0xff] %v6789_v61  ;;  %v1330_v46 = vadd.f32 %v6789_v61, %v6787_v4  ;;  %v6801_v50 = vpop.eup %5035  ;;  %v6805_v8 = vpop.f32.mrf.mxu0  ;;  %v1251_v12 = vmul.f32 1.442695, %v1137_v14  ;;  %v1989_v14 = vmax.f32 %v6683_v57, %v6685_v10  ;;  %v9192_v61 = vld [vmem:[#allocation54_spill] sm:$0xff] }
 0x5a9   : > { %9178 = vst [vmem:[#allocation90_spill] sm:$0xff] %v6801_v50  ;;  %v6803_v54 = vpop.eup %5037  ;;  %v6807_v44 = vpop.f32.mrf.mxu1  ;;  %v1257_v58 = vmul.f32 1.442695, %v1140_v21 }
 0x5aa   : > { %9179 = vst [vmem:[#allocation91_spill] sm:$0xff] %v6803_v54  ;;  %v1348_v40 = vadd.f32 %v6803_v54, %v6801_v50  ;;  %5043 = vpow2.f32 %v1251_v12 }
 0x5ab   : > { %9180 = vst [vmem:[#allocation92_spill] sm:$0xff] %v6805_v8 }
 0x5ac   : > { %9181 = vst [vmem:[#allocation93_spill] sm:$0xff] %v6807_v44 }
 0x5ae   : > { %1346 = vadd.xlane.f32.xlu2 %v1345_v62  ;;  %1331 = vadd.xlane.f32.xlu0 %v1330_v46  ;;  %v1253_v62 = vmul.f32 1.442695, %v1138_v53  ;;  %v6819_v46 = vpop.eup %5039  ;;  %v1971_v53 = vmax.f32 %v6635_v16, %v6637_v35  ;;  %v9204_v35 = vld [vmem:[#allocation43_spill] sm:$0xff] }
 0x5af   : > { %9182 = vst [vmem:[#allocation94_spill] sm:$0xff] %v6819_v46  ;;  %v6821_v37 = vpop.eup %5041 }
 0x5b0   : > { %1966 = vmax.xlane.f32.xlu1 %v1965_v59  ;;  %9183 = vst [vmem:[#allocation95_spill] sm:$0xff] %v6821_v37  ;;  %5045 = vpow2.f32 %v1253_v62  ;;  %v6827_v6 = vpop.f32.mrf.mxu0  ;;  %v1351_v33 = vadd.f32 %v6821_v37, %v6819_v46  ;;  %v1992_v62 = vmax.f32 %v6693_v34, %v6695_v3 }
 0x5b1   : > { %v6829_v59 = vpop.f32.mrf.mxu1 }
 0x5b2   : > { %9184 = vst [vmem:[#allocation96_spill] sm:$0xff] %v6829_v59 }
 0x5b6   : > { %1349 = vadd.xlane.f32.xlu2 %v1348_v40  ;;  %1957 = vmax.xlane.f32.xlu0 %v1956_v23  ;;  %v1255_v40 = vmul.f32 1.442695, %v1139_v39  ;;  %v6837_v23 = vpop.eup %5043 }
 0x5b7   : > { %v6839_v13 = vpop.eup %5045 }
 0x5b8   : > { %1969 = vmax.xlane.f32.xlu1 %v1968_v20  ;;  %5047 = vpow2.f32 %v1255_v40  ;;  %v1142_v20 = vsub.f32 %v6535_v0, %v6679_v51  ;;  %v1354_v12 = vadd.f32 %v6839_v13, %v6837_v23  ;;  %v6849_v39 = vpop.f32.mrf.mxu0  ;;  %v9187_v0 = vld [vmem:[#allocation61_spill] sm:$0xff] }
 0x5b9   : > { %5049 = vpow2.f32 %v1257_v58  ;;  %9185 = vst [vmem:[#allocation97_spill] sm:$0xff] %v6849_v39  ;;  %v6851_v21 = vpop.f32.mrf.mxu1  ;;  %v9188_v40 = vld [vmem:[#allocation37_spill] sm:$0xff]  ;;  %v1144_v45 = vsub.f32 %v9189_v28, %v9187_v0 }
 0x5ba   : > { %9186 = vst [vmem:[#allocation98_spill] sm:$0xff] %v6851_v21  ;;  %v1261_v18 = vmul.f32 1.442695, %v1142_v20  ;;  %v1143_v58 = vsub.f32 %v9188_v40, %v9187_v0  ;;  %v1080_v20 = vpop.xlane.xlu2 %1079  ;;  %v9194_v0 = vld [vmem:[#allocation39_spill] sm:$0xff] }
 0x5bb   : > { %v1265_v38 = vmul.f32 1.442695, %v1144_v45  ;;  %v1145_v48 = vsub.f32 %v9194_v0, %v1080_v20  ;;  %v1146_v26 = vsub.f32 %v9195_v49, %v1080_v20  ;;  %v9198_v49 = vld [vmem:[#allocation57_spill] sm:$0xff] }
 0x5bc   : > { %v1263_v55 = vmul.f32 1.442695, %v1143_v58  ;;  %v2019_v58 = vmax.f32 %v6849_v39, %v6851_v21  ;;  %v9201_v39 = vld [vmem:[#allocation59_spill] sm:$0xff] }
 0x5bd   : > { %v1983_v7 = vmax.f32 %v9202_v19, %v9201_v39 }
 0x5be   : > { %1352 = vadd.xlane.f32.xlu2 %v1351_v33  ;;  %1990 = vmax.xlane.f32.xlu0 %v1989_v14  ;;  %v1974_v33 = vmax.f32 %v6641_v17, %v6643_v29  ;;  %v1259_v14 = vmul.f32 1.442695, %v1141_v42  ;;  %v9190_v42 = vld [vmem:[#allocation65_spill] sm:$0xff] }
 0x5c0   : > { %1972 = vmax.xlane.f32.xlu1 %v1971_v53  ;;  %v6855_v53 = vpop.eup %5047  ;;  %5051 = vpow2.f32 %v1259_v14  ;;  %v6869_v40 = vpop.f32.mrf.mxu0 }
 0x5c1   : > { %v6857_v51 = vpop.eup %5049  ;;  %5053 = vpow2.f32 %v1261_v18  ;;  %v6871_v14 = vpop.f32.mrf.mxu1 }
 0x5c2   : > { %v1357_v32 = vadd.f32 %v6857_v51, %v6855_v53  ;;  %5055 = vpow2.f32 %v1263_v55 }
 0x5c3   : > { %5057 = vpow2.f32 %v1265_v38  ;;  %v9199_v38 = vld [vmem:[#allocation41_spill] sm:$0xff] }
 0x5c4   : > { %v1147_v20 = vsub.f32 %v9199_v38, %v9198_v49 }
 0x5c6   : > { %1355 = vadd.xlane.f32.xlu2 %v1354_v12  ;;  %1993 = vmax.xlane.f32.xlu0 %v1992_v62  ;;  %v9191_v12 = vld [vmem:[#allocation64_spill] sm:$0xff]  ;;  %v6873_v28 = vpop.eup %5051 }
 0x5c7   : > { %v1995_v62 = vmax.f32 %v9191_v12, %v9190_v42  ;;  %v6875_v18 = vpop.eup %5053 }
 0x5c8   : > { %1975 = vmax.xlane.f32.xlu1 %v1974_v33  ;;  %v9193_v33 = vld [vmem:[#allocation53_spill] sm:$0xff]  ;;  %v1360_v45 = vadd.f32 %v6875_v18, %v6873_v28  ;;  %v6885_v22 = vpop.eup %5055  ;;  %v6889_v0 = vpop.f32.mrf.mxu0 }
 0x5c9   : > { %v1977_v4 = vmax.f32 %v9193_v33, %v9192_v61  ;;  %v6887_v55 = vpop.eup %5057  ;;  %v6891_v21 = vpop.f32.mrf.mxu1 }
 0x5ce   : > { %1358 = vadd.xlane.f32.xlu2 %v1357_v32  ;;  %1996 = vmax.xlane.f32.xlu0 %v1995_v62  ;;  %v1267_v32 = vmul.f32 1.442695, %v1145_v48  ;;  %v9196_v62 = vld [vmem:[#allocation56_spill] sm:$0xff]  ;;  %v2022_v48 = vmax.f32 %v6869_v40, %v6871_v14 }
 0x5cf   : > { %v1980_v1 = vmax.f32 %v9197_v11, %v9196_v62  ;;  %v2016_v62 = vmax.f32 %v6827_v6, %v6829_v59 }
 0x5d0   : > { %1978 = vmax.xlane.f32.xlu1 %v1977_v4  ;;  %v1269_v4 = vmul.f32 1.442695, %v1146_v26  ;;  %5059 = vpow2.f32 %v1267_v32  ;;  %v6913_v52 = vpop.f32.mrf.mxu0 }
 0x5d1   : > { %9206 = vst [vmem:[#allocation61_spill] sm:$0xff] %v6913_v52 }
 0x5d2   : > { %5061 = vpow2.f32 %v1269_v4  ;;  %v9203_v4 = vld [vmem:[#allocation60_spill] sm:$0xff] }
 0x5d3   : > { %v1149_v16 = vsub.f32 %v9204_v35, %v9203_v4 }
 0x5d6   : > { %1361 = vadd.xlane.f32.xlu2 %v1360_v45  ;;  %2020 = vmax.xlane.f32.xlu0 %v2019_v58  ;;  %v9200_v58 = vld [vmem:[#allocation42_spill] sm:$0xff]  ;;  %v1271_v45 = vmul.f32 1.442695, %v1147_v20  ;;  %v6903_v5 = vpop.eup %5059  ;;  %v9205_v20 = vld [vmem:[#allocation44_spill] sm:$0xff] }
 0x5d7   : > { %v1148_v26 = vsub.f32 %v9200_v58, %v9198_v49  ;;  %v2025_v49 = vmax.f32 %v6889_v0, %v6891_v21  ;;  %v1150_v58 = vsub.f32 %v9205_v20, %v9203_v4  ;;  %v2004_v20 = vmax.f32 %v6729_v56, %v6731_v30  ;;  %v9211_v30 = vld [vmem:[#allocation45_spill] sm:$0xff] }
 0x5d8   : > { %1981 = vmax.xlane.f32.xlu1 %v1980_v1  ;;  %v1363_v1 = vadd.f32 %v6887_v55, %v6885_v22  ;;  %v6905_v38 = vpop.eup %5061  ;;  %5063 = vpow2.f32 %v1271_v45  ;;  %v9209_v45 = vld [vmem:[#allocation62_spill] sm:$0xff]  ;;  %v6931_v50 = vpop.f32.mrf.mxu0 }
 0x5d9   : > { %v1273_v32 = vmul.f32 1.442695, %v1148_v26  ;;  %v1275_v26 = vmul.f32 1.442695, %v1149_v16  ;;  %v1277_v35 = vmul.f32 1.442695, %v1150_v58 }
 0x5db   : > { %5065 = vpow2.f32 %v1273_v32 }
 0x5dc   : > { %5067 = vpow2.f32 %v1275_v26  ;;  %v2007_v26 = vmax.f32 %v6755_v41, %v6757_v63  ;;  %v9213_v63 = vld [vmem:[#allocation66_spill] sm:$0xff] }
 0x5dd   : > { %5069 = vpow2.f32 %v1277_v35 }
 0x5de   : > { %1364 = vadd.xlane.f32.xlu2 %v1363_v1  ;;  %2023 = vmax.xlane.f32.xlu0 %v2022_v48  ;;  %v6915_v48 = vpop.f32.mrf.mxu1  ;;  %v9208_v1 = vld [vmem:[#allocation63_spill] sm:$0xff]  ;;  %v6921_v54 = vpop.eup %5063 }
 0x5df   : > { %9207 = vst [vmem:[#allocation37_spill] sm:$0xff] %v6915_v48  ;;  %v1986_v25 = vmax.f32 %v9209_v45, %v9208_v1  ;;  %v2028_v4 = vmax.f32 %v6913_v52, %v6915_v48  ;;  %v9210_v52 = vld [vmem:[#allocation46_spill] sm:$0xff] }
 0x5e0   : > { %1984 = vmax.xlane.f32.xlu1 %v1983_v7  ;;  %v1366_v7 = vadd.f32 %v6905_v38, %v6903_v5  ;;  %v6945_v48 = vpop.f32.mrf.mxu0  ;;  %v1953_v56 = vmax.f32 %v9211_v30, %v9210_v52 }
 0x5e1   : > { %v6923_v32 = vpop.eup %5065 }
 0x5e2   : > { %v1369_v16 = vadd.f32 %v6923_v32, %v6921_v54 }
 0x5e6   : > { %2026 = vmax.xlane.f32.xlu0 %v2025_v49  ;;  %1367 = vadd.xlane.f32.xlu2 %v1366_v7  ;;  %v6933_v49 = vpop.f32.mrf.mxu1 }
 0x5e7   : > { %v2031_v7 = vmax.f32 %v6931_v50, %v6933_v49 }
 0x5e8   : > { %1987 = vmax.xlane.f32.xlu1 %v1986_v25  ;;  %v6935_v25 = vpop.eup %5067 }
 0x5e9   : > { %v6937_v58 = vpop.eup %5069 }
 0x5ea   : > { %v1372_v35 = vadd.f32 %v6937_v58, %v6935_v25 }
 0x5ee   : > { %2029 = vmax.xlane.f32.xlu0 %v2028_v4  ;;  %1370 = vadd.xlane.f32.xlu2 %v1369_v16  ;;  %v6947_v4 = vpop.f32.mrf.mxu1  ;;  %v2010_v16 = vmax.f32 %v6783_v31, %v6785_v36 }
 0x5f0   : > { %2005 = vmax.xlane.f32.xlu1 %v2004_v20  ;;  %v2034_v20 = vmax.f32 %v6945_v48, %v6947_v4 }
 0x5f6   : > { %2032 = vmax.xlane.f32.xlu0 %v2031_v7  ;;  %1373 = vadd.xlane.f32.xlu2 %v1372_v35  ;;  %v2013_v7 = vmax.f32 %v6805_v8, %v6807_v44  ;;  %v9212_v35 = vld [vmem:[#allocation67_spill] sm:$0xff] }
 0x5f7   : > { %v1998_v41 = vmax.f32 %v9213_v63, %v9212_v35 }
 0x5f8   : > { %2008 = vmax.xlane.f32.xlu1 %v2007_v26 }
 0x5fe   : > { %2035 = vmax.xlane.f32.xlu0 %v2034_v20  ;;  %1954 = vmax.xlane.f32.xlu2 %v1953_v56  ;;  %v2001_v20 = vmax.f32 %v6717_v27, %v6719_v24 }
 0x600   : > { %2011 = vmax.xlane.f32.xlu1 %v2010_v16 }
 0x606   : > { %1999 = vmax.xlane.f32.xlu2 %v1998_v41 }
 0x608   : > { %2014 = vmax.xlane.f32.xlu1 %v2013_v7 }
 0x609   : > { %v6959_v26 = vpop.xlane.xlu2 %1337 }
 0x60a   : > { %9214 = vst [vmem:[#allocation38_spill] sm:$0xff] %v6959_v26 }
 0x60b   : > { %v6963_v36 = vpop.xlane.xlu1 %1334 }
 0x60c   : > { %9215 = vst [vmem:[#allocation65_spill] sm:$0xff] %v6963_v36 }
 0x60e   : > { %2017 = vmax.xlane.f32.xlu2 %v2016_v62 }
 0x610   : > { %2002 = vmax.xlane.f32.xlu1 %v2001_v20 }
 0x611   : > { %v6967_v56 = vpop.xlane.xlu2 %1340 }
 0x612   : > { %9216 = vst [vmem:[#allocation64_spill] sm:$0xff] %v6967_v56 }
 0x613   : > { %v6969_v16 = vpop.xlane.xlu1 %1960 }
 0x619   : > { %v6971_v44 = vpop.xlane.xlu0 %1328  ;;  %v6973_v41 = vpop.xlane.xlu2 %1343 }
 0x61a   : > { %9217 = vst [vmem:[#allocation54_spill] sm:$0xff] %v6971_v44 }
 0x61b   : > { %9218 = vst [vmem:[#allocation53_spill] sm:$0xff] %v6973_v41  ;;  %v6975_v7 = vpop.xlane.xlu1 %1963 }
 0x61c   : > { %9219 = vst [vmem:[#allocation39_spill] sm:$0xff] %v6975_v7 }
 0x621   : > { %v6977_v8 = vpop.xlane.xlu0 %1331  ;;  %v6979_v52 = vpop.xlane.xlu2 %1346 }
 0x622   : > { %9220 = vst [vmem:[#allocation40_spill] sm:$0xff] %v6977_v8 }
 0x623   : > { %v1967_v30 = vpop.xlane.xlu1 %1966 }
 0x629   : > { %v6981_v36 = vpop.xlane.xlu0 %1957  ;;  %v6983_v24 = vpop.xlane.xlu2 %1349 }
 0x62a   : > { %9221 = vst [vmem:[#allocation57_spill] sm:$0xff] %v6981_v36 }
 0x62b   : > { %v1970_v62 = vpop.xlane.xlu1 %1969 }
 0x631   : > { %v1991_v20 = vpop.xlane.xlu0 %1990  ;;  %v6985_v27 = vpop.xlane.xlu2 %1352 }
 0x632   : > { %v2073_v26 = vsub.f32 %v6683_v57, %v1991_v20  ;;  %v2074_v44 = vsub.f32 %v6685_v10, %v1991_v20 }
 0x633   : > { %v6989_v31 = vpop.xlane.xlu1 %1972 }
 0x634   : > { %v2161_v7 = vmul.f32 1.442695, %v2073_v26  ;;  %v2163_v56 = vmul.f32 1.442695, %v2074_v44 }
 0x636   : > { %5071 = vpow2.f32 %v2161_v7  ;;  %v2058_v7 = vsub.f32 %v6623_v47, %v1967_v30 }
 0x637   : > { %5073 = vpow2.f32 %v2163_v56 }
 0x639   : > { %v1994_v8 = vpop.xlane.xlu0 %1993  ;;  %v6991_v41 = vpop.xlane.xlu2 %1355 }
 0x63a   : > { %v2075_v36 = vsub.f32 %v6693_v34, %v1994_v8  ;;  %v2076_v11 = vsub.f32 %v6695_v3, %v1994_v8 }
 0x63b   : > { %v1976_v37 = vpop.xlane.xlu1 %1975 }
 0x63c   : > { %v6995_v46 = vpop.eup %5071  ;;  %v2165_v59 = vmul.f32 1.442695, %v2075_v36  ;;  %v2167_v57 = vmul.f32 1.442695, %v2076_v11  ;;  %v2063_v10 = vsub.f32 %v6641_v17, %v1976_v37  ;;  %v2064_v44 = vsub.f32 %v6643_v29, %v1976_v37 }
 0x63d   : > { %v6998_v20 = vpop.eup %5073  ;;  %v2057_v17 = vsub.f32 %v6621_v15, %v1967_v30 }
 0x63e   : > { %9222 = vst [vmem:[#allocation41_spill] sm:$0xff] %v6998_v20  ;;  %5075 = vpow2.f32 %v2165_v59  ;;  %v2277_v26 = vadd.f32 %v6998_v20, %v6995_v46  ;;  %v2141_v56 = vmul.f32 1.442695, %v2063_v10  ;;  %v2143_v34 = vmul.f32 1.442695, %v2064_v44 }
 0x63f   : > { %5077 = vpow2.f32 %v2167_v57  ;;  %v2059_v57 = vsub.f32 %v6629_v2, %v1970_v62  ;;  %v2060_v20 = vsub.f32 %v6631_v9, %v1970_v62  ;;  %v2129_v15 = vmul.f32 1.442695, %v2057_v17 }
 0x640   : > { %2278 = vadd.xlane.f32.xlu2 %v2277_v26  ;;  %5079 = vpow2.f32 %v2141_v56  ;;  %v2053_v9 = vsub.f32 %v6603_v43, %v6969_v16  ;;  %v2054_v62 = vsub.f32 %v6605_v60, %v6969_v16 }
 0x641   : > { %v7003_v3 = vpop.xlane.xlu0 %1996  ;;  %v7005_v8 = vpop.xlane.xlu2 %1358  ;;  %5081 = vpow2.f32 %v2143_v34  ;;  %v2133_v30 = vmul.f32 1.442695, %v2059_v57  ;;  %v2135_v34 = vmul.f32 1.442695, %v2060_v20 }
 0x642   : > { %v2121_v20 = vmul.f32 1.442695, %v2053_v9  ;;  %v2123_v43 = vmul.f32 1.442695, %v2054_v62 }
 0x643   : > { %v1979_v36 = vpop.xlane.xlu1 %1978 }
 0x644   : > { %v7007_v11 = vpop.eup %5075  ;;  %v2065_v29 = vsub.f32 %v9193_v33, %v1979_v36  ;;  %v2066_v37 = vsub.f32 %v9192_v61, %v1979_v36  ;;  %v2131_v33 = vmul.f32 1.442695, %v2058_v7 }
 0x645   : > { %v7012_v59 = vpop.eup %5077 }
 0x646   : > { %v2145_v10 = vmul.f32 1.442695, %v2065_v29  ;;  %v2147_v44 = vmul.f32 1.442695, %v2066_v37  ;;  %v2280_v26 = vadd.f32 %v7012_v59, %v7007_v11  ;;  %v7023_v47 = vpop.eup %5079 }
 0x647   : > { %v7025_v2 = vpop.eup %5081 }
 0x648   : > { %5083 = vpow2.f32 %v2145_v10  ;;  %2281 = vadd.xlane.f32.xlu2 %v2280_v26  ;;  %9223 = vst [vmem:[#allocation42_spill] sm:$0xff] %v7025_v2  ;;  %v2262_v29 = vadd.f32 %v7025_v2, %v7023_v47 }
 0x649   : > { %5085 = vpow2.f32 %v2147_v44  ;;  %v7019_v61 = vpop.xlane.xlu0 %2020  ;;  %v7021_v56 = vpop.xlane.xlu2 %1361 }
 0x64a   : > { %5087 = vpow2.f32 %v2129_v15 }
 0x64b   : > { %v7027_v36 = vpop.xlane.xlu1 %1981  ;;  %5089 = vpow2.f32 %v2131_v33 }
 0x64c   : > { %5091 = vpow2.f32 %v2133_v30 }
 0x64d   : > { %5093 = vpow2.f32 %v2135_v34 }
 0x64e   : > { %v7033_v17 = vpop.eup %5083  ;;  %5095 = vpow2.f32 %v2121_v20 }
 0x64f   : > { %v7037_v37 = vpop.eup %5085  ;;  %5097 = vpow2.f32 %v2123_v43 }
 0x650   : > { %v2265_v7 = vadd.f32 %v7037_v37, %v7033_v17  ;;  %2263 = vadd.xlane.f32.xlu2 %v2262_v29  ;;  %v7043_v60 = vpop.eup %5087 }
 0x651   : > { %v2024_v57 = vpop.xlane.xlu0 %2023  ;;  %v7041_v10 = vpop.xlane.xlu2 %1364  ;;  %9224 = vst [vmem:[#allocation59_spill] sm:$0xff] %v7043_v60 }
 0x652   : > { %2266 = vadd.xlane.f32.xlu1 %v2265_v7  ;;  %v2095_v16 = vsub.f32 %v6869_v40, %v2024_v57  ;;  %v2096_v44 = vsub.f32 %v6871_v14, %v2024_v57  ;;  %v7047_v26 = vpop.eup %5089 }
 0x653   : > { %9225 = vst [vmem:[#allocation58_spill] sm:$0xff] %v7047_v26  ;;  %v7049_v15 = vpop.xlane.xlu1 %1984  ;;  %v7051_v33 = vpop.eup %5091  ;;  %v2253_v62 = vadd.f32 %v7047_v26, %v7043_v60 }
 0x654   : > { %9226 = vst [vmem:[#allocation60_spill] sm:$0xff] %v7051_v33  ;;  %v2205_v30 = vmul.f32 1.442695, %v2095_v16  ;;  %v2207_v34 = vmul.f32 1.442695, %v2096_v44  ;;  %v7053_v9 = vpop.eup %5093 }
 0x655   : > { %9227 = vst [vmem:[#allocation43_spill] sm:$0xff] %v7053_v9  ;;  %v2256_v40 = vadd.f32 %v7053_v9, %v7051_v33  ;;  %v7061_v7 = vpop.eup %5095 }
 0x656   : > { %5099 = vpow2.f32 %v2205_v30  ;;  %9228 = vst [vmem:[#allocation44_spill] sm:$0xff] %v7061_v7  ;;  %v7063_v20 = vpop.eup %5097 }
 0x657   : > { %5101 = vpow2.f32 %v2207_v34  ;;  %9229 = vst [vmem:[#allocation63_spill] sm:$0xff] %v7063_v20 }
 0x658   : > { %2254 = vadd.xlane.f32.xlu2 %v2253_v62 }
 0x659   : > { %v7059_v14 = vpop.xlane.xlu0 %2026  ;;  %v1368_v29 = vpop.xlane.xlu2 %1367 }
 0x65a   : > { %2257 = vadd.xlane.f32.xlu1 %v2256_v40  ;;  %v2247_v40 = vadd.f32 %v7063_v20, %v7061_v7 }
 0x65b   : > { %v1988_v57 = vpop.xlane.xlu1 %1987 }
 0x65c   : > { %v7065_v16 = vpop.eup %5099  ;;  %v2071_v43 = vsub.f32 %v9209_v45, %v1988_v57  ;;  %v2072_v44 = vsub.f32 %v9208_v1, %v1988_v57  ;;  %v7079_v1 = vpop.f32.mrf.mxu0 }
 0x65d   : > { %9230 = vst [vmem:[#allocation62_spill] sm:$0xff] %v7065_v16  ;;  %v7069_v30 = vpop.eup %5101 }
 0x65e   : > { %9231 = vst [vmem:[#allocation67_spill] sm:$0xff] %v7069_v30  ;;  %v2157_v34 = vmul.f32 1.442695, %v2071_v43  ;;  %v2159_v26 = vmul.f32 1.442695, %v2072_v44  ;;  %v2310_v62 = vadd.f32 %v7069_v30, %v7065_v16  ;;  %v7083_v43 = vpop.f32.mrf.mxu1 }
 0x65f   : > { %v2037_v20 = vmax.f32 %v7079_v1, %v7083_v43 }
 0x660   : > { %5103 = vpow2.f32 %v2157_v34  ;;  %2311 = vadd.xlane.f32.xlu2 %v2310_v62 }
 0x661   : > { %5105 = vpow2.f32 %v2159_v26  ;;  %v7075_v60 = vpop.xlane.xlu0 %2029  ;;  %v1371_v9 = vpop.xlane.xlu2 %1370 }
 0x662   : > { %2248 = vadd.xlane.f32.xlu1 %v2247_v40 }
 0x664   : > { %v7091_v33 = vpop.f32.mrf.mxu0 }
 0x666   : > { %v7077_v45 = vpop.eup %5103 }
 0x667   : > { %v7081_v57 = vpop.eup %5105 }
 0x668   : > { %v2274_v44 = vadd.f32 %v7081_v57, %v7077_v45 }
 0x669   : > { %v2033_v34 = vpop.xlane.xlu0 %2032  ;;  %v1374_v30 = vpop.xlane.xlu2 %1373 }
 0x66a   : > { %2275 = vadd.xlane.f32.xlu0 %v2274_v44  ;;  %v2101_v26 = vsub.f32 %v6931_v50, %v2033_v34  ;;  %v2102_v62 = vsub.f32 %v6933_v49, %v2033_v34  ;;  %5107 = vrcp.f32 %v1374_v30  ;;  %v7097_v49 = vpop.f32.mrf.mxu1 }
 0x66b   : > { %5109 = vrcp.f32 %v1371_v9 }
 0x66c   : > { %v2217_v40 = vmul.f32 1.442695, %v2101_v26  ;;  %v2219_v16 = vmul.f32 1.442695, %v2102_v62 }
 0x66e   : > { %5111 = vpow2.f32 %v2217_v40 }
 0x66f   : > { %5113 = vpow2.f32 %v2219_v16  ;;  %v2077_v16 = vsub.f32 %v9191_v12, %v7003_v3 }
 0x670   : > { %v5108_v7 = vpop.eup %5107  ;;  %5115 = vrcp.f32 %v1368_v29 }
 0x671   : > { %v7093_v2 = vpop.xlane.xlu2 %1954  ;;  %v1469_v44 = vmul.f32 %v5108_v7, %v6935_v25  ;;  %v1470_v50 = vmul.f32 %v5108_v7, %v6937_v58  ;;  %v5110_v9 = vpop.eup %5109  ;;  %5117 = vrcp.f32 %v7041_v10  ;;  %v2078_v25 = vsub.f32 %v9190_v42, %v7003_v3 }
 0x672   : > { %2038 = vmax.xlane.f32.xlu0 %v2037_v20  ;;  %v1467_v58 = vmul.f32 %v5110_v9, %v6921_v54  ;;  %v1468_v7 = vmul.f32 %v5110_v9, %v6923_v32  ;;  %v2040_v20 = vmax.f32 %v7091_v33, %v7097_v49  ;;  %v2169_v12 = vmul.f32 1.442695, %v2077_v16  ;;  %v7128_v9 = vpop.xlane.xlu1 %2005 }
 0x673   : > { %1517 = vmatpush.xpose.msra.mxu2 %v1469_v44  ;;  %1540 = vmatpush.xpose.msra.mxu3 %v1470_v50  ;;  %5119 = vrcp.f32 %v7021_v56  ;;  %v2171_v10 = vmul.f32 1.442695, %v2078_v25  ;;  %v7120_v44 = vpop.f32.mrf.mxu0  ;;  %v7122_v56 = vpop.f32.mrf.mxu1 }
 0x674   : > { %v7099_v30 = vpop.eup %5111  ;;  %5121 = vrcp.f32 %v7005_v8  ;;  %v2043_v25 = vmax.f32 %v7120_v44, %v7122_v56 }
 0x675   : > { %v7104_v29 = vpop.eup %5113  ;;  %5123 = vpow2.f32 %v2169_v12 }
 0x676   : > { %v5116_v34 = vpop.eup %5115  ;;  %v2319_v26 = vadd.f32 %v7104_v29, %v7099_v30  ;;  %5125 = vpow2.f32 %v2171_v10 }
 0x677   : > { %1518 = vmatpush.xpose.msra.mxu2 %v1467_v58  ;;  %1541 = vmatpush.xpose.msra.mxu3 %v1468_v7  ;;  %v1465_v42 = vmul.f32 %v5116_v34, %v6903_v5  ;;  %v1466_v54 = vmul.f32 %v5116_v34, %v6905_v38  ;;  %v5118_v32 = vpop.eup %5117  ;;  %v2097_v5 = vsub.f32 %v6889_v0, %v7059_v14 }
 0x678   : > { %2320 = vadd.xlane.f32.xlu2 %v2319_v26  ;;  %v1464_v8 = vmul.f32 %v5118_v32, %v6887_v55 }
 0x679   : > { %v2000_v62 = vpop.xlane.xlu2 %1999  ;;  %v5120_v16 = vpop.eup %5119  ;;  %v2209_v0 = vmul.f32 1.442695, %v2097_v5 }
 0x67a   : > { %2041 = vmax.xlane.f32.xlu0 %v2040_v20  ;;  %v2079_v3 = vsub.f32 %v9213_v63, %v2000_v62  ;;  %v2080_v40 = vsub.f32 %v9212_v35, %v2000_v62  ;;  %v2098_v63 = vsub.f32 %v6891_v21, %v7059_v14  ;;  %v1463_v35 = vmul.f32 %v5118_v32, %v6885_v22  ;;  %v5122_v58 = vpop.eup %5121  ;;  %v2036_v21 = vpop.xlane.xlu0 %2035 }
 0x67b   : > { %1519 = vmatpush.xpose.msra.mxu2 %v1465_v42  ;;  %1542 = vmatpush.xpose.msra.mxu3 %v1466_v54  ;;  %v1461_v14 = vmul.f32 %v5120_v16, %v6873_v28  ;;  %v1462_v22 = vmul.f32 %v5120_v16, %v6875_v18  ;;  %v7137_v34 = vpop.eup %5123  ;;  %v2104_v28 = vsub.f32 %v6947_v4, %v2036_v21  ;;  %v7168_v5 = vpop.f32.mrf.mxu0 }
 0x67c   : > { %v2173_v50 = vmul.f32 1.442695, %v2079_v3  ;;  %v2175_v38 = vmul.f32 1.442695, %v2080_v40  ;;  %v2211_v7 = vmul.f32 1.442695, %v2098_v63  ;;  %v7139_v55 = vpop.eup %5125  ;;  %v1459_v18 = vmul.f32 %v5122_v58, %v6855_v53 }
 0x67d   : > { %v1460_v12 = vmul.f32 %v5122_v58, %v6857_v51  ;;  %v2070_v42 = vsub.f32 %v9201_v39, %v7049_v15  ;;  %v2283_v53 = vadd.f32 %v7139_v55, %v7137_v34  ;;  %v2223_v54 = vmul.f32 1.442695, %v2104_v28  ;;  %v9233_v63 = vld [vmem:[#allocation94_spill] sm:$0xff] }
 0x67e   : > { %5127 = vpow2.f32 %v2173_v50  ;;  %v7170_v50 = vpop.f32.mrf.mxu1 }
 0x67f   : > { %5129 = vpow2.f32 %v2175_v38  ;;  %1520 = vmatpush.xpose.msra.mxu2 %v1463_v35  ;;  %1543 = vmatpush.xpose.msra.mxu3 %v1464_v8  ;;  %v9234_v8 = vld [vmem:[#allocation95_spill] sm:$0xff]  ;;  %v2046_v58 = vmax.f32 %v7168_v5, %v7170_v50 }
 0x680   : > { %5131 = vrcp.f32 %v6991_v41  ;;  %v2103_v41 = vsub.f32 %v6945_v48, %v2036_v21  ;;  %v7156_v48 = vpop.xlane.xlu1 %2008 }
 0x681   : > { %5133 = vrcp.f32 %v6985_v27  ;;  %v2069_v27 = vsub.f32 %v9202_v19, %v7049_v15  ;;  %v2018_v19 = vpop.xlane.xlu2 %2017 }
 0x682   : > { %2044 = vmax.xlane.f32.xlu0 %v2043_v25  ;;  %5135 = vpow2.f32 %v2209_v0  ;;  %v2221_v4 = vmul.f32 1.442695, %v2103_v41 }
 0x683   : > { %1521 = vmatpush.xpose.msra.mxu2 %v1461_v14  ;;  %1544 = vmatpush.xpose.msra.mxu3 %v1462_v22  ;;  %5137 = vpow2.f32 %v2211_v7  ;;  %v2153_v39 = vmul.f32 1.442695, %v2069_v27  ;;  %v9237_v14 = vld [vmem:[#allocation53_spill] sm:$0xff]  ;;  %v9239_v27 = vld [vmem:[#allocation91_spill] sm:$0xff] }
 0x684   : > { %v7142_v20 = vpop.eup %5127  ;;  %5139 = vrcp.f32 %v6983_v24  ;;  %v2155_v24 = vmul.f32 1.442695, %v2070_v42 }
 0x685   : > { %v7145_v26 = vpop.eup %5129  ;;  %5141 = vrcp.f32 %v6979_v52  ;;  %v9235_v52 = vld [vmem:[#allocation55_spill] sm:$0xff] }
 0x686   : > { %v5132_v10 = vpop.eup %5131  ;;  %v2286_v62 = vadd.f32 %v7145_v26, %v7142_v20  ;;  %5143 = vpow2.f32 %v2221_v4  ;;  %v2067_v0 = vsub.f32 %v9235_v52, %v7027_v36  ;;  %v9246_v52 = vld [vmem:[#allocation52_spill] sm:$0xff] }
 0x687   : > { %1522 = vmatpush.xpose.msra.mxu2 %v1459_v18  ;;  %1545 = vmatpush.xpose.msra.mxu3 %v1460_v12  ;;  %v5134_v51 = vpop.eup %5133  ;;  %v1457_v32 = vmul.f32 %v5132_v10, %v6837_v23  ;;  %v1458_v3 = vmul.f32 %v5132_v10, %v6839_v13  ;;  %v2091_v23 = vsub.f32 %v6827_v6, %v2018_v19  ;;  %5145 = vpow2.f32 %v2223_v54  ;;  %v9232_v13 = vld [vmem:[#allocation96_spill] sm:$0xff]  ;;  %v9238_v12 = vld [vmem:[#allocation90_spill] sm:$0xff] }
 0x688   : > { %2287 = vadd.xlane.f32.xlu1 %v2286_v62  ;;  %v7163_v40 = vpop.eup %5135  ;;  %v2092_v38 = vsub.f32 %v9232_v13, %v2018_v19  ;;  %v1455_v35 = vmul.f32 %v5134_v51, %v9233_v63  ;;  %v1456_v16 = vmul.f32 %v5134_v51, %v9234_v8  ;;  %5147 = vpow2.f32 %v2153_v39  ;;  %v9236_v6 = vld [vmem:[#allocation56_spill] sm:$0xff]  ;;  %v2012_v28 = vpop.xlane.xlu1 %2011  ;;  %v9241_v19 = vld [vmem:[#allocation86_spill] sm:$0xff]  ;;  %v9242_v39 = vld [vmem:[#allocation87_spill] sm:$0xff] }
 0x689   : > { %v7165_v15 = vpop.eup %5137  ;;  %v2068_v21 = vsub.f32 %v9236_v6, %v7027_v36  ;;  %5149 = vpow2.f32 %v2155_v24  ;;  %v2197_v22 = vmul.f32 1.442695, %v2091_v23  ;;  %v2149_v4 = vmul.f32 1.442695, %v2067_v0  ;;  %v9240_v36 = vld [vmem:[#allocation64_spill] sm:$0xff]  ;;  %v9245_v8 = vld [vmem:[#allocation51_spill] sm:$0xff] }
 0x68a   : > { %2284 = vadd.xlane.f32.xlu0 %v2283_v53  ;;  %v5140_v25 = vpop.eup %5139  ;;  %v2313_v7 = vadd.f32 %v7165_v15, %v7163_v40  ;;  %5151 = vrcp.f32 %v9237_v14  ;;  %v2199_v18 = vmul.f32 1.442695, %v2092_v38  ;;  %v2088_v24 = vsub.f32 %v9242_v39, %v2012_v28  ;;  %v9243_v23 = vld [vmem:[#allocation84_spill] sm:$0xff]  ;;  %v9244_v38 = vld [vmem:[#allocation85_spill] sm:$0xff] }
 0x68b   : > { %1523 = vmatpush.xpose.msra.mxu2 %v1457_v32  ;;  %1546 = vmatpush.xpose.msra.mxu3 %v1458_v3  ;;  %v5142_v41 = vpop.eup %5141  ;;  %v1453_v10 = vmul.f32 %v5140_v25, %v9238_v12  ;;  %v1454_v62 = vmul.f32 %v5140_v25, %v9239_v27  ;;  %5153 = vrcp.f32 %v9240_v36  ;;  %v2151_v51 = vmul.f32 1.442695, %v2068_v21  ;;  %v9250_v27 = vld [vmem:[#allocation65_spill] sm:$0xff]  ;;  %v9251_v36 = vld [vmem:[#allocation72_spill] sm:$0xff] }
 0x68c   : > { %v7187_v42 = vpop.eup %5143  ;;  %v2087_v32 = vsub.f32 %v9241_v19, %v2012_v28  ;;  %5155 = vpow2.f32 %v2197_v22  ;;  %v1451_v13 = vmul.f32 %v5142_v41, %v9243_v23  ;;  %v1452_v63 = vmul.f32 %v5142_v41, %v9244_v38  ;;  %v9248_v22 = vld [vmem:[#allocation80_spill] sm:$0xff]  ;;  %v9249_v28 = vld [vmem:[#allocation81_spill] sm:$0xff] }
 0x68d   : > { %v7189_v53 = vpop.eup %5145  ;;  %5157 = vpow2.f32 %v2199_v18  ;;  %v2062_v0 = vsub.f32 %v9246_v52, %v6989_v31  ;;  %v2191_v14 = vmul.f32 1.442695, %v2088_v24  ;;  %v9253_v24 = vld [vmem:[#allocation76_spill] sm:$0xff]  ;;  %v9257_v52 = vld [vmem:[#allocation50_spill] sm:$0xff] }
 0x68e   : > { %v7192_v54 = vpop.eup %5147  ;;  %5159 = vpow2.f32 %v2149_v4  ;;  %v2322_v25 = vadd.f32 %v7189_v53, %v7187_v42 }
 0x68f   : > { %1524 = vmatpush.xpose.msra.mxu2 %v1455_v35  ;;  %1547 = vmatpush.xpose.msra.mxu3 %v1456_v16  ;;  %v7195_v3 = vpop.eup %5149  ;;  %v2061_v16 = vsub.f32 %v9245_v8, %v6989_v31  ;;  %5161 = vpow2.f32 %v2151_v51  ;;  %v2083_v51 = vsub.f32 %v9251_v36, %v7128_v9  ;;  %v9256_v8 = vld [vmem:[#allocation49_spill] sm:$0xff] }
 0x690   : > { %2314 = vadd.xlane.f32.xlu1 %v2313_v7  ;;  %v5152_v35 = vpop.eup %5151  ;;  %v2189_v7 = vmul.f32 1.442695, %v2087_v32  ;;  %v2271_v6 = vadd.f32 %v7195_v3, %v7192_v54  ;;  %v9252_v32 = vld [vmem:[#allocation73_spill] sm:$0xff] }
 0x691   : > { %v5154_v21 = vpop.eup %5153  ;;  %v1449_v41 = vmul.f32 %v5152_v35, %v9248_v22  ;;  %v1450_v18 = vmul.f32 %v5152_v35, %v9249_v28  ;;  %v2084_v39 = vsub.f32 %v9252_v32, %v7128_v9  ;;  %v9255_v35 = vld [vmem:[#allocation39_spill] sm:$0xff]  ;;  %v9258_v9 = vld [vmem:[#allocation40_spill] sm:$0xff] }
 0x692   : > { %2047 = vmax.xlane.f32.xlu0 %v2046_v58  ;;  %v9247_v58 = vld [vmem:[#allocation38_spill] sm:$0xff]  ;;  %v7211_v12 = vpop.eup %5155  ;;  %v1447_v23 = vmul.f32 %v5154_v21, %v9253_v24 }
 0x693   : > { %1525 = vmatpush.xpose.msra.mxu2 %v1453_v10  ;;  %1548 = vmatpush.xpose.msra.mxu3 %v1454_v62  ;;  %5163 = vrcp.f32 %v9247_v58  ;;  %v2137_v10 = vmul.f32 1.442695, %v2061_v16  ;;  %v7213_v31 = vpop.eup %5157  ;;  %v2139_v62 = vmul.f32 1.442695, %v2062_v0  ;;  %v2055_v16 = vsub.f32 %v9256_v8, %v9255_v35 }
 0x694   : > { %5165 = vrcp.f32 %v9250_v27  ;;  %v7216_v4 = vpop.eup %5159  ;;  %v2056_v0 = vsub.f32 %v9257_v52, %v9255_v35  ;;  %v2181_v58 = vmul.f32 1.442695, %v2083_v51 }
 0x695   : > { %5167 = vpow2.f32 %v2189_v7  ;;  %v7220_v19 = vpop.eup %5161 }
 0x696   : > { %5169 = vpow2.f32 %v2191_v14  ;;  %v2268_v7 = vadd.f32 %v7220_v19, %v7216_v4  ;;  %v9259_v14 = vld [vmem:[#allocation70_spill] sm:$0xff]  ;;  %v2127_v36 = vmul.f32 1.442695, %v2056_v0 }
 0x697   : > { %1526 = vmatpush.xpose.msra.mxu2 %v1451_v13  ;;  %1549 = vmatpush.xpose.msra.mxu3 %v1452_v63  ;;  %v9254_v13 = vld [vmem:[#allocation77_spill] sm:$0xff]  ;;  %5171 = vpow2.f32 %v2137_v10  ;;  %v2125_v10 = vmul.f32 1.442695, %v2055_v16  ;;  %v9265_v16 = vld [vmem:[#allocation98_spill] sm:$0xff] }
 0x698   : > { %2323 = vadd.xlane.f32.xlu1 %v2322_v25  ;;  %v1448_v38 = vmul.f32 %v5154_v21, %v9254_v13  ;;  %v2304_v25 = vadd.f32 %v7213_v31, %v7211_v12  ;;  %5173 = vpow2.f32 %v2139_v62  ;;  %v2183_v21 = vmul.f32 1.442695, %v2084_v39  ;;  %v9261_v62 = vld [vmem:[#allocation54_spill] sm:$0xff] }
 0x699   : > { %v5164_v63 = vpop.eup %5163  ;;  %5175 = vrcp.f32 %v9258_v9  ;;  %v9262_v39 = vld [vmem:[#allocation74_spill] sm:$0xff]  ;;  %v9266_v9 = vld [vmem:[#allocation88_spill] sm:$0xff] }
 0x69a   : > { %2272 = vadd.xlane.f32.xlu0 %v2271_v6  ;;  %v5166_v6 = vpop.eup %5165  ;;  %v1445_v22 = vmul.f32 %v5164_v63, %v9259_v14  ;;  %5177 = vrcp.f32 %v9261_v62 }
 0x69b   : > { %1527 = vmatpush.xpose.msra.mxu2 %v1449_v41  ;;  %1550 = vmatpush.xpose.msra.mxu3 %v1450_v18  ;;  %v9260_v41 = vld [vmem:[#allocation71_spill] sm:$0xff]  ;;  %v7237_v18 = vpop.eup %5167  ;;  %5179 = vpow2.f32 %v2181_v58  ;;  %v1443_v24 = vmul.f32 %v5166_v6, %v9262_v39 }
 0x69c   : > { %v1446_v28 = vmul.f32 %v5164_v63, %v9260_v41  ;;  %v7239_v27 = vpop.eup %5169  ;;  %5181 = vpow2.f32 %v2183_v21  ;;  %v9264_v63 = vld [vmem:[#allocation97_spill] sm:$0xff] }
 0x69d   : > { %v7242_v51 = vpop.eup %5171  ;;  %5183 = vpow2.f32 %v2125_v10  ;;  %v2093_v35 = vsub.f32 %v9264_v63, %v7019_v61  ;;  %v2298_v8 = vadd.f32 %v7239_v27, %v7237_v18  ;;  %v9270_v10 = vld [vmem:[#allocation82_spill] sm:$0xff] }
 0x69e   : > { %v7244_v32 = vpop.eup %5173  ;;  %5185 = vpow2.f32 %v2127_v36  ;;  %v9271_v36 = vld [vmem:[#allocation83_spill] sm:$0xff] }
 0x69f   : > { %1528 = vmatpush.xpose.msra.mxu2 %v1447_v23  ;;  %1551 = vmatpush.xpose.msra.mxu3 %v1448_v38  ;;  %v9263_v23 = vld [vmem:[#allocation75_spill] sm:$0xff]  ;;  %v5176_v38 = vpop.eup %5175  ;;  %v2259_v52 = vadd.f32 %v7244_v32, %v7242_v51  ;;  %v2201_v14 = vmul.f32 1.442695, %v2093_v35 }
 0x6a0   : > { %2305 = vadd.xlane.f32.xlu1 %v2304_v25  ;;  %v1444_v13 = vmul.f32 %v5166_v6, %v9263_v23  ;;  %v2094_v25 = vsub.f32 %v9265_v16, %v7019_v61  ;;  %v5178_v0 = vpop.eup %5177  ;;  %v1441_v58 = vmul.f32 %v5176_v38, %v9266_v9  ;;  %v9274_v16 = vld [vmem:[#allocation29_spill] sm:$0xff] }
 0x6a1   : > { %v7258_v21 = vpop.eup %5179  ;;  %v1439_v62 = vmul.f32 %v5178_v0, %v9270_v10  ;;  %v1440_v39 = vmul.f32 %v5178_v0, %v9271_v36  ;;  %5187 = vpow2.f32 %v2201_v14  ;;  %v228_v10 = vld [vmem:[%s8962_s2 + $0x98] sm:$0xff] }
 0x6a2   : > { %2269 = vadd.xlane.f32.xlu0 %v2268_v7  ;;  %v9267_v7 = vld [vmem:[#allocation89_spill] sm:$0xff]  ;;  %9268 = vst [vmem:[#allocation66_spill] sm:$0xff] %v7258_v21  ;;  %v2203_v41 = vmul.f32 1.442695, %v2094_v25 }
 0x6a3   : > { %1529 = vmatpush.xpose.msra.mxu2 %v1445_v22  ;;  %1552 = vmatpush.xpose.msra.mxu3 %v1446_v28  ;;  %v1442_v6 = vmul.f32 %v5176_v38, %v9267_v7  ;;  %v7260_v22 = vpop.eup %5181  ;;  %v9273_v38 = vld [vmem:[#allocation37_spill] sm:$0xff]  ;;  %v9277_v7 = vld [vmem:[#allocation32_spill] sm:$0xff] }
 0x6a4   : > { %9269 = vst [vmem:[#allocation96_spill] sm:$0xff] %v7260_v22  ;;  %v7262_v61 = vpop.eup %5183  ;;  %5189 = vpow2.f32 %v2203_v41  ;;  %v2100_v63 = vsub.f32 %v9273_v38, %v7075_v60 }
 0x6a5   : > { %v7264_v28 = vpop.eup %5185 }
 0x6a6   : > { %v2250_v35 = vadd.f32 %v7264_v28, %v7262_v61  ;;  %v2215_v25 = vmul.f32 1.442695, %v2100_v63  ;;  %v9278_v63 = vld [vmem:[#allocation45_spill] sm:$0xff] }
 0x6a7   : > { %1530 = vmatpush.xpose.msra.mxu2 %v1443_v24  ;;  %1553 = vmatpush.xpose.msra.mxu3 %v1444_v13  ;;  %v9272_v24 = vld [vmem:[#allocation61_spill] sm:$0xff]  ;;  %v2292_v13 = vadd.f32 %v7260_v22, %v7258_v21  ;;  %v7278_v0 = vpop.eup %5187 }
 0x6a8   : > { %2299 = vadd.xlane.f32.xlu1 %v2298_v8  ;;  %v2099_v23 = vsub.f32 %v9272_v24, %v7075_v60 }
 0x6aa   : > { %2260 = vadd.xlane.f32.xlu0 %v2259_v52  ;;  %v2213_v8 = vmul.f32 1.442695, %v2099_v23  ;;  %v9275_v52 = vld [vmem:[#allocation30_spill] sm:$0xff]  ;;  %v7280_v9 = vpop.eup %5189 }
 0x6ab   : > { %1531 = vmatpush.xpose.msra.mxu2 %v1441_v58  ;;  %1554 = vmatpush.xpose.msra.mxu3 %v1442_v6  ;;  %v2307_v60 = vadd.f32 %v7280_v9, %v7278_v0  ;;  %v9276_v58 = vld [vmem:[#allocation31_spill] sm:$0xff] }
 0x6ac   : > { %5191 = vpow2.f32 %v2213_v8 }
 0x6ad   : > { %5193 = vpow2.f32 %v2215_v25  ;;  %v9279_v25 = vld [vmem:[#allocation46_spill] sm:$0xff] }
 0x6af   : > { %1532 = vmatpush.xpose.msra.mxu2 %v1439_v62  ;;  %1555 = vmatpush.xpose.msra.mxu3 %v1440_v39  ;;  %v7295_v62 = vpop.xlane.xlu1 %2014 }
 0x6b0   : > { %2293 = vadd.xlane.f32.xlu1 %v2292_v13 }
 0x6b2   : > { %2251 = vadd.xlane.f32.xlu0 %v2250_v35  ;;  %1533 = vmatmul.f32.vlgmr.msra.gmra.mxu2 %v9274_v16  ;;  %v7286_v6 = vpop.eup %5191  ;;  %v2049_v35 = vsub.f32 %v9278_v63, %v7093_v2 }
 0x6b3   : > { %1556 = vmatmul.f32.vlgmr.msra.gmra.mxu3 %v9275_v52  ;;  %v7288_v14 = vpop.eup %5193  ;;  %v2050_v52 = vsub.f32 %v9279_v25, %v7093_v2 }
 0x6b4   : > { %v2316_v41 = vadd.f32 %v7288_v14, %v7286_v6 }
 0x6b7   : > { %v2003_v36 = vpop.xlane.xlu1 %2002 }
 0x6ba   : > { %2308 = vadd.xlane.f32.xlu0 %v2307_v60  ;;  %1536 = vmatmul.f32.gmra.mxu2 %v9276_v58  ;;  %v2113_v58 = vmul.f32 1.442695, %v2049_v35 }
 0x6bb   : > { %1559 = vmatmul.f32.gmra.mxu3 %v9277_v7  ;;  %v2115_v7 = vmul.f32 1.442695, %v2050_v52  ;;  %v2279_v52 = vpop.xlane.xlu2 %2278 }
 0x6c2   : > { %2317 = vadd.xlane.f32.xlu0 %v2316_v41 }
 0x6c5   : > { %v7299_v24 = vpop.xlane.xlu1 %2266 }
 0x6c9   : > { %330 = vperm.xlu1 %4909, %v228_v10  }
 0x6cd   : > { %v7307_v60 = vpop.xlane.xlu1 %2257 }
 0x6d5   : > { %v7321_v35 = vpop.xlane.xlu1 %2248 }
 0x6dd   : > { %v7297_v39 = vpop.xlane.xlu0 %2275 }
 0x6e5   : > { %v2039_v23 = vpop.xlane.xlu0 %2038 }
 0x6e6   : > { %v2105_v13 = vsub.f32 %v7079_v1, %v2039_v23  ;;  %v2106_v38 = vsub.f32 %v7083_v43, %v2039_v23  ;;  %v9280_v23 = vld [vmem:[#allocation78_spill] sm:$0xff] }
 0x6e8   : > { %v2225_v8 = vmul.f32 1.442695, %v2105_v13  ;;  %v2227_v16 = vmul.f32 1.442695, %v2106_v38  ;;  %v2085_v13 = vsub.f32 %v9280_v23, %v7156_v48  ;;  %v9282_v23 = vld [vmem:[#allocation68_spill] sm:$0xff] }
 0x6ea   : > { %5195 = vpow2.f32 %v2225_v8  ;;  %v9281_v8 = vld [vmem:[#allocation79_spill] sm:$0xff] }
 0x6eb   : > { %5197 = vpow2.f32 %v2227_v16  ;;  %v2086_v16 = vsub.f32 %v9281_v8, %v7156_v48 }
 0x6ec   : > { %5199 = vpow2.f32 %v2113_v58 }
 0x6ed   : > { %v2042_v41 = vpop.xlane.xlu0 %2041  ;;  %5201 = vpow2.f32 %v2115_v7  ;;  %v2187_v25 = vmul.f32 1.442695, %v2086_v16  ;;  %v9283_v16 = vld [vmem:[#allocation69_spill] sm:$0xff] }
 0x6ee   : > { %v2107_v10 = vsub.f32 %v7091_v33, %v2042_v41  ;;  %v2108_v1 = vsub.f32 %v7097_v49, %v2042_v41  ;;  %v2185_v49 = vmul.f32 1.442695, %v2085_v13 }
 0x6f0   : > { %v7311_v43 = vpop.eup %5195  ;;  %v2229_v38 = vmul.f32 1.442695, %v2107_v10  ;;  %v2231_v63 = vmul.f32 1.442695, %v2108_v1 }
 0x6f1   : > { %v7315_v2 = vpop.eup %5197 }
 0x6f2   : > { %5203 = vpow2.f32 %v2229_v38  ;;  %v2325_v33 = vadd.f32 %v7315_v2, %v7311_v43  ;;  %v7323_v41 = vpop.eup %5199  ;;  %v2081_v38 = vsub.f32 %v9282_v23, %v2003_v36 }
 0x6f3   : > { %5205 = vpow2.f32 %v2231_v63  ;;  %v7327_v48 = vpop.eup %5201 }
 0x6f4   : > { %2326 = vadd.xlane.f32.xlu0 %v2325_v33  ;;  %5207 = vpow2.f32 %v2185_v49  ;;  %v2082_v33 = vsub.f32 %v9283_v16, %v2003_v36  ;;  %v2177_v22 = vmul.f32 1.442695, %v2081_v38  ;;  %v2282_v36 = vpop.xlane.xlu2 %2281 }
 0x6f5   : > { %v2045_v58 = vpop.xlane.xlu0 %2044  ;;  %5209 = vpow2.f32 %v2187_v25 }
 0x6f6   : > { %v2109_v10 = vsub.f32 %v7120_v44, %v2045_v58  ;;  %v2110_v1 = vsub.f32 %v7122_v56, %v2045_v58  ;;  %v2241_v56 = vadd.f32 %v7327_v48, %v7323_v41  ;;  %v2179_v49 = vmul.f32 1.442695, %v2082_v33 }
 0x6f8   : > { %v7329_v7 = vpop.eup %5203  ;;  %v2233_v8 = vmul.f32 1.442695, %v2109_v10  ;;  %v2235_v63 = vmul.f32 1.442695, %v2110_v1 }
 0x6f9   : > { %v7332_v13 = vpop.eup %5205 }
 0x6fa   : > { %5211 = vpow2.f32 %v2233_v8  ;;  %v2328_v44 = vadd.f32 %v7332_v13, %v7329_v7  ;;  %v7339_v1 = vpop.eup %5207 }
 0x6fb   : > { %5213 = vpow2.f32 %v2235_v63  ;;  %v2288_v58 = vpop.xlane.xlu1 %2287  ;;  %9284 = vst [vmem:[#allocation94_spill] sm:$0xff] %v7339_v1  ;;  %v7341_v25 = vpop.eup %5209 }
 0x6fc   : > { %2329 = vadd.xlane.f32.xlu2 %v2328_v44  ;;  %2242 = vadd.xlane.f32.xlu0 %v2241_v56  ;;  %5215 = vrcp.f32 %v2288_v58  ;;  %9285 = vst [vmem:[#allocation95_spill] sm:$0xff] %v7341_v25  ;;  %v2295_v16 = vadd.f32 %v7341_v25, %v7339_v1 }
 0x6fd   : > { %v2285_v10 = vpop.xlane.xlu0 %2284 }
 0x6fe   : > { %5217 = vrcp.f32 %v2285_v10 }
 0x6ff   : > { %5219 = vpow2.f32 %v2177_v22 }
 0x700   : > { %v7343_v23 = vpop.eup %5211  ;;  %5221 = vpow2.f32 %v2179_v49 }
 0x701   : > { %v7345_v8 = vpop.eup %5213  ;;  %5223 = vrcp.f32 %v2282_v36 }
 0x702   : > { %v5216_v63 = vpop.eup %5215  ;;  %v2331_v38 = vadd.f32 %v7345_v8, %v7343_v23  ;;  %5225 = vrcp.f32 %v2279_v52 }
 0x703   : > { %v2399_v33 = vmul.f32 %v5216_v63, %v7142_v20  ;;  %v2400_v44 = vmul.f32 %v5216_v63, %v7145_v26  ;;  %v9286_v63 = vld [vmem:[#allocation57_spill] sm:$0xff]  ;;  %5227 = vrcp.f32 %v7297_v39 }
 0x704   : > { %v5218_v56 = vpop.eup %5217  ;;  %2332 = vadd.xlane.f32.xlu2 %v2331_v38  ;;  %2296 = vadd.xlane.f32.xlu0 %v2295_v16  ;;  %v9287_v38 = vld [vmem:[#allocation47_spill] sm:$0xff] }
 0x705   : > { %v2048_v58 = vpop.xlane.xlu0 %2047  ;;  %2433 = vmatpush.xpose.msrb.mxu2 %v2399_v33  ;;  %2456 = vmatpush.xpose.msrb.mxu3 %v2400_v44  ;;  %v7353_v22 = vpop.eup %5219  ;;  %v2397_v21 = vmul.f32 %v5218_v56, %v7137_v34  ;;  %v2398_v20 = vmul.f32 %v5218_v56, %v7139_v55  ;;  %v2051_v16 = vsub.f32 %v9287_v38, %v9286_v63  ;;  %v9288_v44 = vld [vmem:[#allocation48_spill] sm:$0xff] }
 0x706   : > { %v2111_v49 = vsub.f32 %v7168_v5, %v2048_v58  ;;  %v2112_v10 = vsub.f32 %v7170_v50, %v2048_v58  ;;  %v7357_v36 = vpop.eup %5221  ;;  %v2052_v1 = vsub.f32 %v9288_v44, %v9286_v63 }
 0x707   : > { %v5224_v26 = vpop.eup %5223  ;;  %v2289_v5 = vadd.f32 %v7357_v36, %v7353_v22  ;;  %v2117_v52 = vmul.f32 1.442695, %v2051_v16 }
 0x708   : > { %v2237_v25 = vmul.f32 1.442695, %v2111_v49  ;;  %v2239_v33 = vmul.f32 1.442695, %v2112_v10  ;;  %v2395_v34 = vmul.f32 %v5224_v26, %v7007_v11  ;;  %v2396_v55 = vmul.f32 %v5224_v26, %v7012_v59  ;;  %v5226_v50 = vpop.eup %5225  ;;  %v9290_v10 = vld [vmem:[#allocation41_spill] sm:$0xff] }
 0x709   : > { %2434 = vmatpush.xpose.msrb.mxu2 %v2397_v21  ;;  %2457 = vmatpush.xpose.msrb.mxu3 %v2398_v20  ;;  %v2119_v56 = vmul.f32 1.442695, %v2052_v1  ;;  %v5228_v39 = vpop.eup %5227  ;;  %v9289_v21 = vld [vmem:[#allocation92_spill] sm:$0xff]  ;;  %v2393_v49 = vmul.f32 %v5226_v50, %v6995_v46  ;;  %v2394_v20 = vmul.f32 %v5226_v50, %v9290_v10  ;;  %v9291_v59 = vld [vmem:[#allocation93_spill] sm:$0xff] }
 0x70a   : > { %5229 = vpow2.f32 %v2237_v25  ;;  %v2089_v25 = vsub.f32 %v9289_v21, %v7295_v62  ;;  %v2090_v1 = vsub.f32 %v9291_v59, %v7295_v62  ;;  %v2391_v16 = vmul.f32 %v5228_v39, %v7077_v45  ;;  %v2264_v45 = vpop.xlane.xlu2 %2263 }
 0x70b   : > { %5231 = vpow2.f32 %v2239_v33  ;;  %v2392_v46 = vmul.f32 %v5228_v39, %v7081_v57 }
 0x70c   : > { %2290 = vadd.xlane.f32.xlu0 %v2289_v5  ;;  %v2193_v38 = vmul.f32 1.442695, %v2089_v25  ;;  %v2195_v44 = vmul.f32 1.442695, %v2090_v1  ;;  %v9292_v1 = vld [vmem:[#allocation42_spill] sm:$0xff] }
 0x70d   : > { %v2273_v58 = vpop.xlane.xlu0 %2272  ;;  %2435 = vmatpush.xpose.msrb.mxu2 %v2395_v34  ;;  %2458 = vmatpush.xpose.msrb.mxu3 %v2396_v55 }
 0x70e   : > { %5233 = vrcp.f32 %v2273_v58 }
 0x70f   : > { %5235 = vpow2.f32 %v2117_v52 }
 0x710   : > { %v7374_v63 = vpop.eup %5229  ;;  %5237 = vpow2.f32 %v2119_v56 }
 0x711   : > { %v7376_v11 = vpop.eup %5231  ;;  %2436 = vmatpush.xpose.msrb.mxu2 %v2393_v49  ;;  %2459 = vmatpush.xpose.msrb.mxu3 %v2394_v20 }
 0x712   : > { %v2334_v26 = vadd.f32 %v7376_v11, %v7374_v63 }
 0x714   : > { %v5234_v33 = vpop.eup %5233  ;;  %2335 = vadd.xlane.f32.xlu2 %v2334_v26 }
 0x715   : > { %v2270_v5 = vpop.xlane.xlu0 %2269  ;;  %2437 = vmatpush.xpose.msrb.mxu2 %v2391_v16  ;;  %2460 = vmatpush.xpose.msrb.mxu3 %v2392_v46  ;;  %v7384_v34 = vpop.eup %5235  ;;  %v2389_v55 = vmul.f32 %v5234_v33, %v7192_v54  ;;  %v2390_v50 = vmul.f32 %v5234_v33, %v7195_v3  ;;  %v213_v54 = vld [vmem:[%s8962_s2 + $0x20] sm:$0xff]  ;;  %v9293_v46 = vld [vmem:[#allocation60_spill] sm:$0xff] }
 0x716   : > { %5239 = vrcp.f32 %v2270_v5  ;;  %v7386_v62 = vpop.eup %5237 }
 0x717   : > { %5241 = vpow2.f32 %v2193_v38  ;;  %v2244_v57 = vadd.f32 %v7386_v62, %v7384_v34 }
 0x718   : > { %5243 = vrcp.f32 %v7299_v24 }
 0x719   : > { %5245 = vpow2.f32 %v2195_v44  ;;  %2438 = vmatpush.xpose.msrb.mxu2 %v2389_v55  ;;  %2461 = vmatpush.xpose.msrb.mxu3 %v2390_v50  ;;  %v9294_v44 = vld [vmem:[#allocation43_spill] sm:$0xff] }
 0x71a   : > { %5247 = vrcp.f32 %v2264_v45  ;;  %v9295_v55 = vld [vmem:[#allocation59_spill] sm:$0xff]  ;;  %v9296_v45 = vld [vmem:[#allocation58_spill] sm:$0xff] }
 0x71c   : > { %v5240_v52 = vpop.eup %5239  ;;  %2245 = vadd.xlane.f32.xlu2 %v2244_v57 }
 0x71d   : > { %v7393_v56 = vpop.eup %5241  ;;  %v2261_v58 = vpop.xlane.xlu0 %2260  ;;  %v2387_v3 = vmul.f32 %v5240_v52, %v7216_v4  ;;  %v2388_v24 = vmul.f32 %v5240_v52, %v7220_v19  ;;  %v221_v19 = vld [vmem:[%s8962_s2 + $0x60] sm:$0xff] }
 0x71e   : > { %v5244_v39 = vpop.eup %5243  ;;  %5249 = vrcp.f32 %v2261_v58  ;;  %v2255_v4 = vpop.xlane.xlu2 %2254 }
 0x71f   : > { %v7400_v21 = vpop.eup %5245  ;;  %2439 = vmatpush.xpose.msrb.mxu2 %v2387_v3  ;;  %2462 = vmatpush.xpose.msrb.mxu3 %v2388_v24  ;;  %v2385_v25 = vmul.f32 %v5244_v39, %v7033_v17  ;;  %v2386_v49 = vmul.f32 %v5244_v39, %v7037_v37  ;;  %5251 = vrcp.f32 %v7307_v60  ;;  %v9297_v39 = vld [vmem:[#allocation44_spill] sm:$0xff] }
 0x720   : > { %255 = vperm.xlu0 %4908, %v213_v54   ;;  %v5248_v10 = vpop.eup %5247  ;;  %v2301_v20 = vadd.f32 %v7400_v21, %v7393_v56  ;;  %5253 = vrcp.f32 %v2255_v4  ;;  %v214_v4 = vld [vmem:[%s8962_s2 + $0x28] sm:$0xff] }
 0x721   : > { %v2383_v59 = vmul.f32 %v5248_v10, %v7023_v47  ;;  %v2384_v17 = vmul.f32 %v5248_v10, %v9292_v1 }
 0x723   : > { %2440 = vmatpush.xpose.msrb.mxu2 %v2385_v25  ;;  %2463 = vmatpush.xpose.msrb.mxu3 %v2386_v49  ;;  %v9298_v49 = vld [vmem:[#allocation63_spill] sm:$0xff] }
 0x724   : > { %2302 = vadd.xlane.f32.xlu2 %v2301_v20  ;;  %v5250_v26 = vpop.eup %5249 }
 0x725   : > { %v2252_v37 = vpop.xlane.xlu0 %2251  ;;  %v2381_v38 = vmul.f32 %v5250_v26, %v7242_v51  ;;  %v2382_v60 = vmul.f32 %v5250_v26, %v7244_v32  ;;  %v5252_v16 = vpop.eup %5251 }
 0x726   : > { %5255 = vrcp.f32 %v2252_v37  ;;  %v2379_v33 = vmul.f32 %v5252_v16, %v9293_v46  ;;  %v2380_v47 = vmul.f32 %v5252_v16, %v9294_v44  ;;  %v5254_v5 = vpop.eup %5253 }
 0x727   : > { %2441 = vmatpush.xpose.msrb.mxu2 %v2383_v59  ;;  %2464 = vmatpush.xpose.msrb.mxu3 %v2384_v17  ;;  %5257 = vrcp.f32 %v7321_v35  ;;  %v2377_v50 = vmul.f32 %v5254_v5, %v9295_v55  ;;  %v2378_v51 = vmul.f32 %v5254_v5, %v9296_v45  ;;  %v227_v35 = vld [vmem:[%s8962_s2 + $0x90] sm:$0xff]  ;;  %v7438_v17 = vpop.xlane.xlu2 %2311 }
 0x728   : > { %295 = vperm.xlu0 %4908, %v221_v19   ;;  %v222_v19 = vld [vmem:[%s8962_s2 + $0x68] sm:$0xff] }
 0x72b   : > { %2442 = vmatpush.xpose.msrb.mxu2 %v2381_v38  ;;  %2465 = vmatpush.xpose.msrb.mxu3 %v2382_v60  ;;  %v7440_v38 = vpop.xlane.xlu1 %2314 }
 0x72c   : > { %v5256_v57 = vpop.eup %5255 }
 0x72d   : > { %v2375_v32 = vmul.f32 %v5256_v57, %v7262_v61  ;;  %v2376_v52 = vmul.f32 %v5256_v57, %v7264_v28  ;;  %v5258_v54 = vpop.eup %5257  ;;  %v7434_v59 = vpop.xlane.xlu0 %2308  ;;  %v9299_v57 = vld [vmem:[#allocation5_spill] sm:$0xff] }
 0x72e   : > { %v2373_v25 = vmul.f32 %v5258_v54, %v9297_v39  ;;  %v2374_v10 = vmul.f32 %v5258_v54, %v9298_v49 }
 0x72f   : > { %2443 = vmatpush.xpose.msrb.mxu2 %v2379_v33  ;;  %2466 = vmatpush.xpose.msrb.mxu3 %v2380_v47  ;;  %v2321_v37 = vpop.xlane.xlu2 %2320 }
 0x733   : > { %2444 = vmatpush.xpose.msrb.mxu2 %v2377_v50  ;;  %2467 = vmatpush.xpose.msrb.mxu3 %v2378_v51  ;;  %v2324_v46 = vpop.xlane.xlu1 %2323 }
 0x735   : > { %v1534_v58 = vpop.f32.mrf.mxu2  ;;  %v7436_v1 = vpop.xlane.xlu0 %2317 }
 0x736   : > { %v1557_v3 = vpop.f32.mrf.mxu3 }
 0x737   : > { %2445 = vmatpush.xpose.msrb.mxu2 %v2375_v32  ;;  %2468 = vmatpush.xpose.msrb.mxu3 %v2376_v52  ;;  %v1558_v24 = vadd.f32 %v1557_v3, %v1534_v58  ;;  %v9300_v52 = vld [vmem:[#allocation6_spill] sm:$0xff] }
 0x739   : > { %1564 = vst [vmem:[%s6463_s27 + $0x8] sm:$0xff] %v1558_v24 }
 0x73b   : > { %2446 = vmatpush.xpose.msrb.mxu2 %v2373_v25  ;;  %2469 = vmatpush.xpose.msrb.mxu3 %v2374_v10  ;;  %v7444_v5 = vpop.xlane.xlu1 %2305 }
 0x73c   : > { %325 = vperm.xlu2 %4910, %v227_v35  }
 0x73d   : > { %v1537_v61 = vpop.f32.mrf.mxu2 }
 0x73e   : > { %v1560_v28 = vpop.f32.mrf.mxu3 }
 0x73f   : > { %v1561_v20 = vadd.f32 %v1560_v28, %v1537_v61 }
 0x741   : > { %1566 = vst [vmem:[%s6463_s27 + $0x18] sm:$0xff] %v1561_v20 }
 0x743   : > { %v7448_v51 = vpop.xlane.xlu1 %2299 }
 0x744   : > { %260 = vperm.xlu2 %4910, %v214_v4   ;;  %v9301_v4 = vld [vmem:[#allocation33_spill] sm:$0xff] }
 0x74b   : > { %v7460_v20 = vpop.xlane.xlu1 %2293 }
 0x74c   : > { %300 = vperm.xlu2 %4910, %v222_v19  }
 0x767   : > { %v2327_v26 = vpop.xlane.xlu0 %2326 }
 0x76f   : > { %v2330_v60 = vpop.xlane.xlu2 %2329  ;;  %v2243_v16 = vpop.xlane.xlu0 %2242 }
 0x777   : > { %v2333_v33 = vpop.xlane.xlu2 %2332  ;;  %v7442_v44 = vpop.xlane.xlu0 %2296 }
 0x77f   : > { %v7446_v55 = vpop.xlane.xlu0 %2290 }
 0x787   : > { %v2336_v47 = vpop.xlane.xlu2 %2335 }
 0x78f   : > { %v2246_v50 = vpop.xlane.xlu2 %2245 }
 0x790   : > { %5259 = vrcp.f32 %v2246_v50  ;;  %v9303_v50 = vld [vmem:[#allocation35_spill] sm:$0xff] }
 0x791   : > { %5261 = vrcp.f32 %v2243_v16 }
 0x792   : > { %v256_v45 = vpop.permute.xlu0 %255  ;;  %5263 = vrcp.f32 %v2336_v47 }
 0x793   : > { %v456_v32 = vadd.f32 %v9299_v57, %v256_v45  ;;  %v545_v58 = vadd.f32 %v9300_v52, %v256_v45  ;;  %5265 = vrcp.f32 %v2333_v33  ;;  %v9304_v45 = vld [vmem:[#allocation36_spill] sm:$0xff] }
 0x794   : > { %5267 = vrcp.f32 %v2330_v60  ;;  %v331_v60 = vpop.permute.xlu1 %330 }
 0x795   : > { %2561 = vxpose.xlu2.b32.start [1/2] (short) %v545_v58, 128  ;;  %2529 = vxpose.xlu1.b32.start [1/2] (short) %v456_v32, 128  ;;  %5269 = vrcp.f32 %v2327_v26  ;;  %v7478_v57 = vadd.f32 %v9304_v45, %v331_v60  ;;  %v9305_v32 = vld [vmem:[#allocation7_spill] sm:$0xff]  ;;  %v9306_v58 = vld [vmem:[#allocation8_spill] sm:$0xff] }
 0x796   : > { %v5260_v54 = vpop.eup %5259  ;;  %5271 = vrcp.f32 %v2324_v46 }
 0x797   : > { %v7452_v3 = vpop.xlane.xlu2 %2302  ;;  %v2371_v24 = vmul.f32 %v5260_v54, %v7384_v34  ;;  %v2372_v35 = vmul.f32 %v5260_v54, %v7386_v62  ;;  %v5262_v39 = vpop.eup %5261  ;;  %5273 = vrcp.f32 %v2321_v37 }
 0x798   : > { %v5264_v25 = vpop.eup %5263  ;;  %v2369_v49 = vmul.f32 %v5262_v39, %v7323_v41  ;;  %v2370_v10 = vmul.f32 %v5262_v39, %v7327_v48  ;;  %v9302_v41 = vld [vmem:[#allocation34_spill] sm:$0xff]  ;;  %5275 = vrcp.f32 %v7436_v1 }
 0x799   : > { %2447 = vmatpush.xpose.msrb.mxu2 %v2371_v24  ;;  %2470 = vmatpush.xpose.msrb.mxu3 %v2372_v35  ;;  %v2431_v61 = vmul.f32 %v5264_v25, %v7374_v63  ;;  %v2432_v28 = vmul.f32 %v5264_v25, %v7376_v11  ;;  %v5266_v34 = vpop.eup %5265  ;;  %5277 = vrcp.f32 %v7440_v38 }
 0x79a   : > { %v2429_v48 = vmul.f32 %v5266_v34, %v7343_v23  ;;  %v2430_v63 = vmul.f32 %v5266_v34, %v7345_v8  ;;  %v5268_v11 = vpop.eup %5267  ;;  %v7475_v8 = vadd.f32 %v9303_v50, %v331_v60  ;;  %5279 = vrcp.f32 %v7438_v17  ;;  %v9310_v34 = vld [vmem:[#allocation95_spill] sm:$0xff]  ;;  %v9316_v50 = vld [vmem:[#allocation22_spill] sm:$0xff] }
 0x79b   : > { %v2427_v26 = vmul.f32 %v5268_v11, %v7329_v7  ;;  %v2428_v33 = vmul.f32 %v5268_v11, %v7332_v13  ;;  %v5270_v47 = vpop.eup %5269  ;;  %5281 = vrcp.f32 %v7434_v59  ;;  %v9313_v11 = vld [vmem:[#allocation23_spill] sm:$0xff] }
 0x79c   : > { %v2425_v54 = vmul.f32 %v5270_v47, %v7311_v43  ;;  %v2426_v7 = vmul.f32 %v5270_v47, %v7315_v2  ;;  %v5272_v13 = vpop.eup %5271  ;;  %5283 = vrcp.f32 %v7444_v5  ;;  %v9315_v47 = vld [vmem:[#allocation21_spill] sm:$0xff] }
 0x79d   : > { %2448 = vmatpush.xpose.msrb.mxu2 %v2369_v49  ;;  %2471 = vmatpush.xpose.msrb.mxu3 %v2370_v10  ;;  %v5274_v37 = vpop.eup %5273  ;;  %v2423_v24 = vmul.f32 %v5272_v13, %v7187_v42  ;;  %v2424_v35 = vmul.f32 %v5272_v13, %v7189_v53  ;;  %v9308_v49 = vld [vmem:[#allocation67_spill] sm:$0xff]  ;;  %5285 = vrcp.f32 %v7452_v3 }
 0x79e   : > { %v2421_v43 = vmul.f32 %v5274_v37, %v7099_v30  ;;  %v2422_v2 = vmul.f32 %v5274_v37, %v7104_v29  ;;  %v5276_v39 = vpop.eup %5275  ;;  %v9307_v29 = vld [vmem:[#allocation62_spill] sm:$0xff]  ;;  %5287 = vrcp.f32 %v7448_v51 }
 0x79f   : > { %v326_v62 = vpop.permute.xlu2 %325  ;;  %v2419_v1 = vmul.f32 %v5276_v39, %v7286_v6  ;;  %v2420_v25 = vmul.f32 %v5276_v39, %v7288_v14  ;;  %v5278_v42 = vpop.eup %5277  ;;  %5289 = vrcp.f32 %v7442_v44 }
 0x7a0   : > { %v7463_v19 = vadd.f32 %v9301_v4, %v326_v62  ;;  %v7466_v16 = vadd.f32 %v9302_v41, %v326_v62  ;;  %v2417_v53 = vmul.f32 %v5278_v42, %v7163_v40  ;;  %v2418_v30 = vmul.f32 %v5278_v42, %v7165_v15  ;;  %v5280_v38 = vpop.eup %5279  ;;  %v9312_v41 = vld [vmem:[#allocation96_spill] sm:$0xff] }
 0x7a1   : > { %2479 = vmatpush.xpose.msra.mxu2 %v2431_v61  ;;  %2502 = vmatpush.xpose.msra.mxu3 %v2432_v28  ;;  %v2415_v17 = vmul.f32 %v5280_v38, %v9307_v29  ;;  %v2416_v6 = vmul.f32 %v5280_v38, %v9308_v49  ;;  %v5282_v10 = vpop.eup %5281  ;;  %5291 = vrcp.f32 %v7460_v20 }
 0x7a2   : > { %2449 = vmatmul.f32.vlgmr.msrb.gmra.mxu2 %v7463_v19  ;;  %2472 = vmatmul.f32.vlgmr.msrb.gmra.mxu3 %v7466_v16  ;;  %v2413_v14 = vmul.f32 %v5282_v10, %v7278_v0  ;;  %v2414_v40 = vmul.f32 %v5282_v10, %v7280_v9  ;;  %v5284_v59 = vpop.eup %5283  ;;  %5293 = vrcp.f32 %v7446_v55  ;;  %v296_v55 = vpop.permute.xlu0 %295 }
 0x7a3   : > { %v2411_v15 = vmul.f32 %v5284_v59, %v7211_v12  ;;  %v2412_v5 = vmul.f32 %v5284_v59, %v7213_v31  ;;  %v5286_v61 = vpop.eup %5285  ;;  %v9309_v31 = vld [vmem:[#allocation94_spill] sm:$0xff]  ;;  %v569_v45 = vadd.f32 %v9316_v50, %v296_v55 }
 0x7a4   : > { %v2409_v3 = vmul.f32 %v5286_v61, %v7393_v56  ;;  %v2410_v0 = vmul.f32 %v5286_v61, %v7400_v21  ;;  %v5288_v28 = vpop.eup %5287  ;;  %v9311_v21 = vld [vmem:[#allocation66_spill] sm:$0xff] }
 0x7a5   : > { %2480 = vmatpush.xpose.msra.mxu2 %v2429_v48  ;;  %2503 = vmatpush.xpose.msra.mxu3 %v2430_v63  ;;  %v2407_v9 = vmul.f32 %v5288_v28, %v7237_v18  ;;  %v2408_v12 = vmul.f32 %v5288_v28, %v7239_v27  ;;  %v5290_v51 = vpop.eup %5289 }
 0x7a6   : > { %v2405_v44 = vmul.f32 %v5290_v51, %v9309_v31  ;;  %v2406_v56 = vmul.f32 %v5290_v51, %v9310_v34 }
 0x7a7   : > { %v261_v23 = vpop.permute.xlu2 %260  ;;  %v5292_v62 = vpop.eup %5291 }
 0x7a8   : > { %v459_v52 = vadd.f32 %v9305_v32, %v261_v23  ;;  %v548_v46 = vadd.f32 %v9306_v58, %v261_v23  ;;  %v2403_v4 = vmul.f32 %v5292_v62, %v9311_v21  ;;  %v2404_v20 = vmul.f32 %v5292_v62, %v9312_v41  ;;  %v5294_v48 = vpop.eup %5293 }
 0x7a9   : > { %2481 = vmatpush.xpose.msra.mxu2 %v2427_v26  ;;  %2504 = vmatpush.xpose.msra.mxu3 %v2428_v33  ;;  %v2401_v27 = vmul.f32 %v5294_v48, %v7353_v22  ;;  %v2402_v63 = vmul.f32 %v5294_v48, %v7357_v36  ;;  %v9314_v26 = vld [vmem:[#allocation24_spill] sm:$0xff]  ;;  %v480_v23 = vadd.f32 %v9315_v47, %v296_v55 }
 0x7aa   : > { %2452 = vmatmul.f32.gmra.mxu2 %v7475_v8  ;;  %2475 = vmatmul.f32.gmra.mxu3 %v7478_v57 }
 0x7ab   : > { %2562 = vxpose.xlu2.b32.end [2/2] (short) %v548_v46, 128  ;;  %2530 = vxpose.xlu1.b32.end [2/2] (short) %v459_v52, 128 }
 0x7ad   : > { %2482 = vmatpush.xpose.msra.mxu2 %v2425_v54  ;;  %2505 = vmatpush.xpose.msra.mxu3 %v2426_v7 }
 0x7af   : > { %v301_v18 = vpop.permute.xlu2 %300 }
 0x7b0   : > { %v483_v60 = vadd.f32 %v9313_v11, %v301_v18  ;;  %v572_v33 = vadd.f32 %v9314_v26, %v301_v18 }
 0x7b1   : > { %2483 = vmatpush.xpose.msra.mxu2 %v2423_v24  ;;  %2506 = vmatpush.xpose.msra.mxu3 %v2424_v35 }
 0x7b5   : > { %2484 = vmatpush.xpose.msra.mxu2 %v2421_v43  ;;  %2507 = vmatpush.xpose.msra.mxu3 %v2422_v2 }
 0x7b9   : > { %2485 = vmatpush.xpose.msra.mxu2 %v2419_v1  ;;  %2508 = vmatpush.xpose.msra.mxu3 %v2420_v25 }
 0x7bd   : > { %2486 = vmatpush.xpose.msra.mxu2 %v2417_v53  ;;  %2509 = vmatpush.xpose.msra.mxu3 %v2418_v30 }
 0x7c1   : > { %2487 = vmatpush.xpose.msra.mxu2 %v2415_v17  ;;  %2510 = vmatpush.xpose.msra.mxu3 %v2416_v6 }
 0x7c5   : > { %2488 = vmatpush.xpose.msra.mxu2 %v2413_v14  ;;  %2511 = vmatpush.xpose.msra.mxu3 %v2414_v40 }
 0x7c9   : > { %2489 = vmatpush.xpose.msra.mxu2 %v2411_v15  ;;  %2512 = vmatpush.xpose.msra.mxu3 %v2412_v5 }
 0x7cd   : > { %2490 = vmatpush.xpose.msra.mxu2 %v2409_v3  ;;  %2513 = vmatpush.xpose.msra.mxu3 %v2410_v0 }
 0x7d1   : > { %2491 = vmatpush.xpose.msra.mxu2 %v2407_v9  ;;  %2514 = vmatpush.xpose.msra.mxu3 %v2408_v12 }
 0x7d5   : > { %2492 = vmatpush.xpose.msra.mxu2 %v2405_v44  ;;  %2515 = vmatpush.xpose.msra.mxu3 %v2406_v56 }
 0x7d9   : > { %2493 = vmatpush.xpose.msra.mxu2 %v2403_v4  ;;  %2516 = vmatpush.xpose.msra.mxu3 %v2404_v20 }
 0x7dd   : > { %2494 = vmatpush.xpose.msra.mxu2 %v2401_v27  ;;  %2517 = vmatpush.xpose.msra.mxu3 %v2402_v63 }
 0x7e0   : > { %2495 = vmatmul.f32.vlgmr.msra.gmra.mxu2 %v7463_v19  ;;  %2518 = vmatmul.f32.vlgmr.msra.gmra.mxu3 %v7466_v16 }
 0x7e1   : > { %2703 = vmatpush.msrb.mxu2 %v483_v60  ;;  %2816 = vmatpush.msrb.mxu3 %v572_v33 }
 0x7e3   : > { %2704 = vmatpush.msrb.mxu2 %v480_v23  ;;  %2817 = vmatpush.msrb.mxu3 %v569_v45 }
 0x7e8   : > { %2498 = vmatmul.f32.gmra.mxu2 %v7475_v8  ;;  %2521 = vmatmul.f32.gmra.mxu3 %v7478_v57 }
 0x825   : > { %v2450_v22 = vpop.f32.mrf.mxu2  ;;  %v2473_v36 = vpop.f32.mrf.mxu3 }
 0x826   : > { %v2474_v32 = vadd.f32 %v2473_v36, %v2450_v22 }
 0x828   : > { %2525 = vst [vmem:[%s6463_s27 + $0x20] sm:$0xff] %v2474_v32 }
 0x82d   : > { %v2453_v52 = vpop.f32.mrf.mxu2  ;;  %v2476_v58 = vpop.f32.mrf.mxu3 }
 0x82e   : > { %v2477_v46 = vadd.f32 %v2476_v58, %v2453_v52 }
 0x830   : > { %2527 = vst [vmem:[%s6463_s27 + $0x30] sm:$0xff] %v2477_v46 }
 0x83c   : > { %v2577_v29 = vpop.trf.xlu2 }
 0x844   : > { %v2578_v6 = vpop.trf.xlu2 }
 0x847   : > { %v2545_v54 = vpop.trf.xlu1 }
 0x848   : > { %4714 = vmatmul.msk.f32.vlgmr.msrb.gmra.mxu2 %vm668_vm1, %v2545_v54  ;;  %4746 = vmatmul.msk.f32.vlgmr.msrb.gmra.mxu3 %vm668_vm1, %v2545_v54 }
 0x84c   : > { %v2579_v14 = vpop.trf.xlu2 }
 0x84f   : > { %v2546_v19 = vpop.trf.xlu1 }
 0x850   : > { %4715 = vmatmul.msk.f32.gmra.mxu2 %vm668_vm1, %v2546_v19  ;;  %4747 = vmatmul.msk.f32.gmra.mxu3 %vm668_vm1, %v2546_v19 }
 0x854   : > { %v2580_v5 = vpop.trf.xlu2 }
 0x857   : > { %v2547_v16 = vpop.trf.xlu1 }
 0x858   : > { %4716 = vmatmul.msk.f32.gmra.mxu2 %vm668_vm1, %v2547_v16  ;;  %4748 = vmatmul.msk.f32.gmra.mxu3 %vm668_vm1, %v2547_v16 }
 0x85c   : > { %v2581_v28 = vpop.trf.xlu2 }
 0x85f   : > { %v2548_v8 = vpop.trf.xlu1 }
 0x860   : > { %4717 = vmatmul.msk.f32.gmra.mxu2 %vm668_vm1, %v2548_v8  ;;  %4749 = vmatmul.msk.f32.gmra.mxu3 %vm668_vm1, %v2548_v8 }
 0x863   : > { %v2496_v57 = vpop.f32.mrf.mxu2  ;;  %v2519_v7 = vpop.f32.mrf.mxu3 }
 0x864   : > { %v2520_v13 = vadd.f32 %v2519_v7, %v2496_v57  ;;  %v2582_v31 = vpop.trf.xlu2 }
 0x866   : > { %2526 = vst [vmem:[%s6463_s27 + $0x28] sm:$0xff] %v2520_v13 }
 0x867   : > { %v2549_v37 = vpop.trf.xlu1 }
 0x868   : > { %4718 = vmatmul.msk.f32.gmra.mxu2 %vm668_vm1, %v2549_v37  ;;  %4750 = vmatmul.msk.f32.gmra.mxu3 %vm668_vm1, %v2549_v37 }
 0x86b   : > { %v2499_v24 = vpop.f32.mrf.mxu2  ;;  %v2522_v35 = vpop.f32.mrf.mxu3 }
 0x86c   : > { %v2523_v43 = vadd.f32 %v2522_v35, %v2499_v24  ;;  %v2583_v62 = vpop.trf.xlu2 }
 0x86e   : > { %2528 = vst [vmem:[%s6463_s27 + $0x38] sm:$0xff] %v2523_v43 }
 0x86f   : > { %v2550_v2 = vpop.trf.xlu1 }
 0x870   : > { %4719 = vmatmul.msk.f32.gmra.mxu2 %vm668_vm1, %v2550_v2  ;;  %4751 = vmatmul.msk.f32.gmra.mxu3 %vm668_vm1, %v2550_v2 }
 0x874   : > { %v2584_v27 = vpop.trf.xlu2 }
 0x877   : > { %v2551_v39 = vpop.trf.xlu1 }
 0x878   : > { %4720 = vmatmul.msk.f32.gmra.mxu2 %vm668_vm1, %v2551_v39  ;;  %4752 = vmatmul.msk.f32.gmra.mxu3 %vm668_vm1, %v2551_v39 }
 0x87c   : > { %v2585_v60 = vpop.trf.xlu2 }
 0x87f   : > { %v2552_v1 = vpop.trf.xlu1 }
 0x880   : > { %4721 = vmatmul.msk.f32.gmra.mxu2 %vm668_vm1, %v2552_v1  ;;  %4753 = vmatmul.msk.f32.gmra.mxu3 %vm668_vm1, %v2552_v1 }
 0x884   : > { %v2586_v23 = vpop.trf.xlu2 }
 0x887   : > { %v2553_v25 = vpop.trf.xlu1 }
 0x888   : > { %4722 = vmatmul.msk.f32.gmra.mxu2 %vm668_vm1, %v2553_v25  ;;  %4754 = vmatmul.msk.f32.gmra.mxu3 %vm668_vm1, %v2553_v25 }
 0x88c   : > { %v2587_v36 = vpop.trf.xlu2 }
 0x88f   : > { %v2554_v42 = vpop.trf.xlu1 }
 0x890   : > { %4723 = vmatmul.msk.f32.gmra.mxu2 %vm668_vm1, %v2554_v42  ;;  %4755 = vmatmul.msk.f32.gmra.mxu3 %vm668_vm1, %v2554_v42 }
 0x894   : > { %v2588_v46 = vpop.trf.xlu2 }
 0x897   : > { %v2555_v53 = vpop.trf.xlu1 }
 0x898   : > { %4724 = vmatmul.msk.f32.gmra.mxu2 %vm668_vm1, %v2555_v53  ;;  %4756 = vmatmul.msk.f32.gmra.mxu3 %vm668_vm1, %v2555_v53 }
 0x89c   : > { %v2589_v13 = vpop.trf.xlu2 }
 0x89f   : > { %v2556_v30 = vpop.trf.xlu1 }
 0x8a0   : > { %4725 = vmatmul.msk.f32.gmra.mxu2 %vm668_vm1, %v2556_v30  ;;  %4757 = vmatmul.msk.f32.gmra.mxu3 %vm668_vm1, %v2556_v30 }
 0x8a4   : > { %v2590_v43 = vpop.trf.xlu2 }
 0x8a7   : > { %v2557_v38 = vpop.trf.xlu1 }
 0x8a8   : > { %4726 = vmatmul.msk.f32.gmra.mxu2 %vm668_vm1, %v2557_v38  ;;  %4758 = vmatmul.msk.f32.gmra.mxu3 %vm668_vm1, %v2557_v38 }
 0x8ac   : > { %v2591_v25 = vpop.trf.xlu2 }
 0x8af   : > { %v2558_v17 = vpop.trf.xlu1 }
 0x8b0   : > { %4727 = vmatmul.msk.f32.gmra.mxu2 %vm668_vm1, %v2558_v17  ;;  %4759 = vmatmul.msk.f32.gmra.mxu3 %vm668_vm1, %v2558_v17 }
 0x8b4   : > { %v2592_v38 = vpop.trf.xlu2 }
 0x8b7   : > { %v2559_v49 = vpop.trf.xlu1 }
 0x8b8   : > { %4728 = vmatmul.msk.f32.gmra.mxu2 %vm668_vm1, %v2559_v49  ;;  %4760 = vmatmul.msk.f32.gmra.mxu3 %vm668_vm1, %v2559_v49 }
 0x8bf   : > { %v2560_v10 = vpop.trf.xlu1 }
 0x8c0   : > { %4729 = vmatmul.msk.f32.gmra.mxu2 %vm668_vm1, %v2560_v10  ;;  %4761 = vmatmul.msk.f32.gmra.mxu3 %vm668_vm1, %v2560_v10 }
 0x8c8   : > { %4730 = vmatmul.msk.f32.gmra.mxu2 %vm668_vm1, %v2577_v29  ;;  %4762 = vmatmul.msk.f32.gmra.mxu3 %vm668_vm1, %v2577_v29 }
 0x8cb   : > { %v7566_v40 = vpop.f32.mrf.mxu2  ;;  %v7568_v59 = vpop.f32.mrf.mxu3 }
 0x8cc   : > { %v2915_v15 = vmax.f32 %v7566_v40, %v7568_v59 }
 0x8ce   : > { %2916 = vmax.xlane.f32.xlu0 %v2915_v15 }
 0x8d0   : > { %4731 = vmatmul.msk.f32.gmra.mxu2 %vm668_vm1, %v2578_v6  ;;  %4763 = vmatmul.msk.f32.gmra.mxu3 %vm668_vm1, %v2578_v6 }
 0x8d3   : > { %v7574_v61 = vpop.f32.mrf.mxu2  ;;  %v7576_v3 = vpop.f32.mrf.mxu3 }
 0x8d4   : > { %v2918_v0 = vmax.f32 %v7574_v61, %v7576_v3 }
 0x8d6   : > { %2919 = vmax.xlane.f32.xlu0 %v2918_v0 }
 0x8d8   : > { %4732 = vmatmul.msk.f32.gmra.mxu2 %vm668_vm1, %v2579_v14  ;;  %4764 = vmatmul.msk.f32.gmra.mxu3 %vm668_vm1, %v2579_v14 }
 0x8db   : > { %v7582_v9 = vpop.f32.mrf.mxu2  ;;  %v7584_v12 = vpop.f32.mrf.mxu3 }
 0x8dc   : > { %v2921_v51 = vmax.f32 %v7582_v9, %v7584_v12 }
 0x8de   : > { %2922 = vmax.xlane.f32.xlu0 %v2921_v51 }
 0x8e0   : > { %4733 = vmatmul.msk.f32.gmra.mxu2 %vm668_vm1, %v2580_v5  ;;  %4765 = vmatmul.msk.f32.gmra.mxu3 %vm668_vm1, %v2580_v5 }
 0x8e3   : > { %v7590_v44 = vpop.f32.mrf.mxu2  ;;  %v7592_v34 = vpop.f32.mrf.mxu3 }
 0x8e4   : > { %v2924_v56 = vmax.f32 %v7590_v44, %v7592_v34 }
 0x8e6   : > { %2925 = vmax.xlane.f32.xlu0 %v2924_v56 }
 0x8e8   : > { %4734 = vmatmul.msk.f32.gmra.mxu2 %vm668_vm1, %v2581_v28  ;;  %4766 = vmatmul.msk.f32.gmra.mxu3 %vm668_vm1, %v2581_v28 }
 0x8eb   : > { %v7598_v21 = vpop.f32.mrf.mxu2  ;;  %v7600_v4 = vpop.f32.mrf.mxu3 }
 0x8ec   : > { %v2927_v41 = vmax.f32 %v7598_v21, %v7600_v4 }
 0x8ee   : > { %2928 = vmax.xlane.f32.xlu0 %v2927_v41 }
 0x8f0   : > { %4735 = vmatmul.msk.f32.gmra.mxu2 %vm668_vm1, %v2582_v31  ;;  %4767 = vmatmul.msk.f32.gmra.mxu3 %vm668_vm1, %v2582_v31 }
 0x8f3   : > { %v7606_v20 = vpop.f32.mrf.mxu2  ;;  %v7608_v48 = vpop.f32.mrf.mxu3 }
 0x8f4   : > { %v2930_v18 = vmax.f32 %v7606_v20, %v7608_v48 }
 0x8f6   : > { %2931 = vmax.xlane.f32.xlu0 %v2930_v18 }
 0x8f8   : > { %4736 = vmatmul.msk.f32.gmra.mxu2 %vm668_vm1, %v2583_v62  ;;  %4768 = vmatmul.msk.f32.gmra.mxu3 %vm668_vm1, %v2583_v62 }
 0x8fb   : > { %v7614_v63 = vpop.f32.mrf.mxu2  ;;  %v7616_v55 = vpop.f32.mrf.mxu3 }
 0x8fc   : > { %v2933_v11 = vmax.f32 %v7614_v63, %v7616_v55 }
 0x8fe   : > { %2934 = vmax.xlane.f32.xlu0 %v2933_v11 }
 0x900   : > { %4737 = vmatmul.msk.f32.gmra.mxu2 %vm668_vm1, %v2584_v27  ;;  %4769 = vmatmul.msk.f32.gmra.mxu3 %vm668_vm1, %v2584_v27 }
 0x903   : > { %v7622_v26 = vpop.f32.mrf.mxu2  ;;  %v7624_v33 = vpop.f32.mrf.mxu3 }
 0x904   : > { %v2936_v47 = vmax.f32 %v7622_v26, %v7624_v33 }
 0x906   : > { %2937 = vmax.xlane.f32.xlu0 %v2936_v47 }
 0x908   : > { %4738 = vmatmul.msk.f32.gmra.mxu2 %vm668_vm1, %v2585_v60  ;;  %4770 = vmatmul.msk.f32.gmra.mxu3 %vm668_vm1, %v2585_v60 }
 0x90b   : > { %v7630_v50 = vpop.f32.mrf.mxu2  ;;  %v7632_v45 = vpop.f32.mrf.mxu3 }
 0x90c   : > { %v2939_v22 = vmax.f32 %v7630_v50, %v7632_v45 }
 0x90e   : > { %2940 = vmax.xlane.f32.xlu0 %v2939_v22 }
 0x910   : > { %4739 = vmatmul.msk.f32.gmra.mxu2 %vm668_vm1, %v2586_v23  ;;  %4771 = vmatmul.msk.f32.gmra.mxu3 %vm668_vm1, %v2586_v23 }
 0x913   : > { %v7638_v32 = vpop.f32.mrf.mxu2  ;;  %v7640_v52 = vpop.f32.mrf.mxu3 }
 0x914   : > { %v2942_v58 = vmax.f32 %v7638_v32, %v7640_v52 }
 0x916   : > { %2943 = vmax.xlane.f32.xlu0 %v2942_v58 }
 0x918   : > { %4740 = vmatmul.msk.f32.gmra.mxu2 %vm668_vm1, %v2587_v36  ;;  %4772 = vmatmul.msk.f32.gmra.mxu3 %vm668_vm1, %v2587_v36 }
 0x91b   : > { %v7646_v54 = vpop.f32.mrf.mxu2  ;;  %v7648_v19 = vpop.f32.mrf.mxu3 }
 0x91c   : > { %v2945_v16 = vmax.f32 %v7646_v54, %v7648_v19 }
 0x91e   : > { %2946 = vmax.xlane.f32.xlu0 %v2945_v16 }
 0x920   : > { %4741 = vmatmul.msk.f32.gmra.mxu2 %vm668_vm1, %v2588_v46  ;;  %4773 = vmatmul.msk.f32.gmra.mxu3 %vm668_vm1, %v2588_v46 }
 0x923   : > { %v7654_v8 = vpop.f32.mrf.mxu2  ;;  %v7656_v57 = vpop.f32.mrf.mxu3 }
 0x924   : > { %v2948_v7 = vmax.f32 %v7654_v8, %v7656_v57 }
 0x926   : > { %2949 = vmax.xlane.f32.xlu1 %v2948_v7 }
 0x928   : > { %4742 = vmatmul.msk.f32.gmra.mxu2 %vm668_vm1, %v2589_v13  ;;  %4774 = vmatmul.msk.f32.gmra.mxu3 %vm668_vm1, %v2589_v13 }
 0x92b   : > { %v7662_v37 = vpop.f32.mrf.mxu2  ;;  %v7664_v24 = vpop.f32.mrf.mxu3 }
 0x92c   : > { %v2951_v35 = vmax.f32 %v7662_v37, %v7664_v24 }
 0x92e   : > { %2952 = vmax.xlane.f32.xlu0 %v2951_v35 }
 0x930   : > { %4743 = vmatmul.msk.f32.gmra.mxu2 %vm668_vm1, %v2590_v43  ;;  %4775 = vmatmul.msk.f32.gmra.mxu3 %vm668_vm1, %v2590_v43 }
 0x933   : > { %v7670_v2 = vpop.f32.mrf.mxu2  ;;  %v7672_v39 = vpop.f32.mrf.mxu3 }
 0x934   : > { %v2954_v1 = vmax.f32 %v7670_v2, %v7672_v39 }
 0x936   : > { %2955 = vmax.xlane.f32.xlu2 %v2954_v1 }
 0x938   : > { %4744 = vmatmul.msk.f32.gmra.mxu2 %vm668_vm1, %v2591_v25  ;;  %4776 = vmatmul.msk.f32.gmra.mxu3 %vm668_vm1, %v2591_v25 }
 0x93b   : > { %v7678_v42 = vpop.f32.mrf.mxu2  ;;  %v7680_v53 = vpop.f32.mrf.mxu3 }
 0x93c   : > { %v2957_v30 = vmax.f32 %v7678_v42, %v7680_v53 }
 0x93e   : > { %2958 = vmax.xlane.f32.xlu0 %v2957_v30 }
 0x940   : > { %4745 = vmatmul.msk.f32.gmra.mxu2 %vm668_vm1, %v2592_v38  ;;  %4777 = vmatmul.msk.f32.gmra.mxu3 %vm668_vm1, %v2592_v38 }
 0x941   : > { %v7686_v29 = vpop.xlane.xlu0 %2916 }
 0x943   : > { %v7688_v17 = vpop.f32.mrf.mxu2  ;;  %v7690_v49 = vpop.f32.mrf.mxu3 }
 0x944   : > { %v2960_v6 = vmax.f32 %v7688_v17, %v7690_v49 }
 0x946   : > { %2961 = vmax.xlane.f32.xlu0 %v2960_v6 }
 0x949   : > { %v7694_v10 = vpop.xlane.xlu0 %2919 }
 0x94b   : > { %v7696_v14 = vpop.f32.mrf.mxu2  ;;  %v7698_v15 = vpop.f32.mrf.mxu3 }
 0x94c   : > { %v2963_v5 = vmax.f32 %v7696_v14, %v7698_v15 }
 0x94e   : > { %2964 = vmax.xlane.f32.xlu2 %v2963_v5 }
 0x951   : > { %v7702_v0 = vpop.xlane.xlu0 %2922 }
 0x953   : > { %v7704_v28 = vpop.f32.mrf.mxu2  ;;  %v7706_v51 = vpop.f32.mrf.mxu3 }
 0x954   : > { %v2966_v31 = vmax.f32 %v7704_v28, %v7706_v51 }
 0x956   : > { %2967 = vmax.xlane.f32.xlu2 %v2966_v31 }
 0x959   : > { %v7710_v56 = vpop.xlane.xlu0 %2925 }
 0x95b   : > { %v7712_v62 = vpop.f32.mrf.mxu2  ;;  %v7714_v41 = vpop.f32.mrf.mxu3 }
 0x95c   : > { %v2969_v18 = vmax.f32 %v7712_v62, %v7714_v41 }
 0x95e   : > { %2970 = vmax.xlane.f32.xlu2 %v2969_v18 }
 0x961   : > { %v7718_v27 = vpop.xlane.xlu0 %2928 }
 0x963   : > { %v7720_v11 = vpop.f32.mrf.mxu2  ;;  %v7722_v60 = vpop.f32.mrf.mxu3 }
 0x964   : > { %v2972_v47 = vmax.f32 %v7720_v11, %v7722_v60 }
 0x966   : > { %2973 = vmax.xlane.f32.xlu1 %v2972_v47 }
 0x969   : > { %v2932_v23 = vpop.xlane.xlu0 %2931 }
 0x96a   : > { %v3021_v22 = vsub.f32 %v7606_v20, %v2932_v23  ;;  %v3022_v36 = vsub.f32 %v7608_v48, %v2932_v23 }
 0x96b   : > { %v7728_v58 = vpop.f32.mrf.mxu2  ;;  %v7730_v46 = vpop.f32.mrf.mxu3 }
 0x96c   : > { %v3095_v16 = vmul.f32 1.442695, %v3021_v22  ;;  %v3097_v7 = vmul.f32 1.442695, %v3022_v36  ;;  %v2975_v13 = vmax.f32 %v7728_v58, %v7730_v46 }
 0x96e   : > { %5295 = vpow2.f32 %v3095_v16  ;;  %2976 = vmax.xlane.f32.xlu0 %v2975_v13 }
 0x96f   : > { %5297 = vpow2.f32 %v3097_v7 }
 0x971   : > { %v2935_v35 = vpop.xlane.xlu0 %2934 }
 0x972   : > { %v3023_v43 = vsub.f32 %v7614_v63, %v2935_v35  ;;  %v3024_v1 = vsub.f32 %v7616_v55, %v2935_v35 }
 0x973   : > { %v7736_v20 = vpop.f32.mrf.mxu2  ;;  %v7738_v48 = vpop.f32.mrf.mxu3 }
 0x974   : > { %v7740_v25 = vpop.eup %5295  ;;  %v3099_v30 = vmul.f32 1.442695, %v3023_v43  ;;  %v3101_v38 = vmul.f32 1.442695, %v3024_v1  ;;  %v2978_v6 = vmax.f32 %v7736_v20, %v7738_v48 }
 0x975   : > { %9317 = vst [vmem:[#allocation55_spill] sm:$0xff] %v7740_v25  ;;  %v7744_v5 = vpop.eup %5297 }
 0x976   : > { %9318 = vst [vmem:[#allocation56_spill] sm:$0xff] %v7744_v5  ;;  %5299 = vpow2.f32 %v3099_v30  ;;  %2979 = vmax.xlane.f32.xlu0 %v2978_v6  ;;  %v3218_v63 = vadd.f32 %v7744_v5, %v7740_v25 }
 0x977   : > { %5301 = vpow2.f32 %v3101_v38  ;;  %v3015_v38 = vsub.f32 %v7582_v9, %v7702_v0 }
 0x978   : > { %3219 = vadd.xlane.f32.xlu2 %v3218_v63 }
 0x979   : > { %v2938_v55 = vpop.xlane.xlu0 %2937 }
 0x97a   : > { %v3025_v31 = vsub.f32 %v7622_v26, %v2938_v55  ;;  %v3026_v18 = vsub.f32 %v7624_v33, %v2938_v55 }
 0x97b   : > { %v7750_v47 = vpop.f32.mrf.mxu2  ;;  %v7752_v23 = vpop.f32.mrf.mxu3 }
 0x97c   : > { %v7754_v22 = vpop.eup %5299  ;;  %v2981_v36 = vmax.f32 %v7750_v47, %v7752_v23  ;;  %v3103_v7 = vmul.f32 1.442695, %v3025_v31  ;;  %v3105_v35 = vmul.f32 1.442695, %v3026_v18  ;;  %v3016_v31 = vsub.f32 %v7584_v12, %v7702_v0 }
 0x97d   : > { %9319 = vst [vmem:[#allocation53_spill] sm:$0xff] %v7754_v22  ;;  %v7758_v16 = vpop.eup %5301 }
 0x97e   : > { %9320 = vst [vmem:[#allocation90_spill] sm:$0xff] %v7758_v16  ;;  %2982 = vmax.xlane.f32.xlu0 %v2981_v36  ;;  %v3221_v13 = vadd.f32 %v7758_v16, %v7754_v22  ;;  %5303 = vpow2.f32 %v3103_v7  ;;  %v3085_v36 = vmul.f32 1.442695, %v3016_v31 }
 0x97f   : > { %5305 = vpow2.f32 %v3105_v35 }
 0x980   : > { %3222 = vadd.xlane.f32.xlu1 %v3221_v13 }
 0x981   : > { %v2941_v26 = vpop.xlane.xlu0 %2940 }
 0x982   : > { %v3027_v33 = vsub.f32 %v7630_v50, %v2941_v26  ;;  %v3028_v43 = vsub.f32 %v7632_v45, %v2941_v26  ;;  %v3083_v45 = vmul.f32 1.442695, %v3015_v38 }
 0x983   : > { %v7764_v1 = vpop.f32.mrf.mxu2  ;;  %v7766_v30 = vpop.f32.mrf.mxu3 }
 0x984   : > { %v3107_v6 = vmul.f32 1.442695, %v3027_v33  ;;  %v3109_v63 = vmul.f32 1.442695, %v3028_v43  ;;  %v2984_v55 = vmax.f32 %v7764_v1, %v7766_v30  ;;  %v7774_v50 = vpop.eup %5303 }
 0x985   : > { %9321 = vst [vmem:[#allocation91_spill] sm:$0xff] %v7774_v50  ;;  %v7776_v18 = vpop.eup %5305 }
 0x986   : > { %5307 = vpow2.f32 %v3107_v6  ;;  %2985 = vmax.xlane.f32.xlu0 %v2984_v55  ;;  %9322 = vst [vmem:[#allocation64_spill] sm:$0xff] %v7776_v18  ;;  %v3224_v43 = vadd.f32 %v7776_v18, %v7774_v50 }
 0x987   : > { %5309 = vpow2.f32 %v3109_v63 }
 0x988   : > { %5311 = vpow2.f32 %v3083_v45 }
 0x989   : > { %v2944_v7 = vpop.xlane.xlu0 %2943  ;;  %5313 = vpow2.f32 %v3085_v36 }
 0x98a   : > { %v3029_v9 = vsub.f32 %v7638_v32, %v2944_v7  ;;  %v3030_v13 = vsub.f32 %v7640_v52, %v2944_v7 }
 0x98b   : > { %v7780_v35 = vpop.f32.mrf.mxu2  ;;  %v7782_v26 = vpop.f32.mrf.mxu3 }
 0x98c   : > { %v7784_v33 = vpop.eup %5307  ;;  %v3111_v12 = vmul.f32 1.442695, %v3029_v9  ;;  %v3113_v0 = vmul.f32 1.442695, %v3030_v13  ;;  %v2987_v31 = vmax.f32 %v7780_v35, %v7782_v26 }
 0x98d   : > { %9323 = vst [vmem:[#allocation86_spill] sm:$0xff] %v7784_v33  ;;  %v7788_v38 = vpop.eup %5309 }
 0x98e   : > { %9324 = vst [vmem:[#allocation87_spill] sm:$0xff] %v7788_v38  ;;  %5315 = vpow2.f32 %v3111_v12  ;;  %3225 = vadd.xlane.f32.xlu0 %v3224_v43  ;;  %v3227_v32 = vadd.f32 %v7788_v38, %v7784_v33  ;;  %v7792_v6 = vpop.eup %5311 }
 0x98f   : > { %5317 = vpow2.f32 %v3113_v0  ;;  %9325 = vst [vmem:[#allocation84_spill] sm:$0xff] %v7792_v6  ;;  %v7798_v45 = vpop.eup %5313 }
 0x990   : > { %3228 = vadd.xlane.f32.xlu2 %v3227_v32  ;;  %9326 = vst [vmem:[#allocation85_spill] sm:$0xff] %v7798_v45 }
 0x991   : > { %v2947_v52 = vpop.xlane.xlu0 %2946 }
 0x992   : > { %v3031_v63 = vsub.f32 %v7646_v54, %v2947_v52  ;;  %v3032_v55 = vsub.f32 %v7648_v19, %v2947_v52  ;;  %v3209_v54 = vadd.f32 %v7798_v45, %v7792_v6  ;;  %v3017_v45 = vsub.f32 %v7590_v44, %v7710_v56 }
 0x993   : > { %v7800_v36 = vpop.f32.mrf.mxu2  ;;  %v7802_v7 = vpop.f32.mrf.mxu3 }
 0x994   : > { %v7804_v9 = vpop.eup %5315  ;;  %v3115_v13 = vmul.f32 1.442695, %v3031_v63  ;;  %v3117_v12 = vmul.f32 1.442695, %v3032_v55  ;;  %v2990_v63 = vmax.f32 %v7800_v36, %v7802_v7 }
 0x995   : > { %9327 = vst [vmem:[#allocation51_spill] sm:$0xff] %v7804_v9  ;;  %v7806_v0 = vpop.eup %5317 }
 0x996   : > { %9328 = vst [vmem:[#allocation52_spill] sm:$0xff] %v7806_v0  ;;  %5319 = vpow2.f32 %v3115_v13  ;;  %2988 = vmax.xlane.f32.xlu0 %v2987_v31  ;;  %v3230_v19 = vadd.f32 %v7806_v0, %v7804_v9 }
 0x997   : > { %5321 = vpow2.f32 %v3117_v12 }
 0x998   : > { %3210 = vadd.xlane.f32.xlu2 %v3209_v54  ;;  %3231 = vadd.xlane.f32.xlu1 %v3230_v19 }
 0x999   : > { %v2950_v43 = vpop.xlane.xlu1 %2949 }
 0x99a   : > { %v3033_v32 = vsub.f32 %v7654_v8, %v2950_v43  ;;  %v3034_v52 = vsub.f32 %v7656_v57, %v2950_v43  ;;  %v3018_v8 = vsub.f32 %v7592_v34, %v7710_v56  ;;  %v3087_v43 = vmul.f32 1.442695, %v3017_v45 }
 0x99b   : > { %v7816_v55 = vpop.f32.mrf.mxu2  ;;  %v7818_v31 = vpop.f32.mrf.mxu3 }
 0x99c   : > { %v7820_v13 = vpop.eup %5319  ;;  %v3119_v12 = vmul.f32 1.442695, %v3033_v32  ;;  %v3121_v54 = vmul.f32 1.442695, %v3034_v52  ;;  %v3089_v6 = vmul.f32 1.442695, %v3018_v8  ;;  %v2993_v5 = vmax.f32 %v7816_v55, %v7818_v31 }
 0x99d   : > { %v7824_v19 = vpop.eup %5321 }
 0x99e   : > { %5323 = vpow2.f32 %v3119_v12  ;;  %2991 = vmax.xlane.f32.xlu0 %v2990_v63  ;;  %v3233_v57 = vadd.f32 %v7824_v19, %v7820_v13 }
 0x99f   : > { %5325 = vpow2.f32 %v3121_v54 }
 0x9a0   : > { %3234 = vadd.xlane.f32.xlu1 %v3233_v57  ;;  %5327 = vpow2.f32 %v3087_v43 }
 0x9a1   : > { %5329 = vpow2.f32 %v3089_v6  ;;  %v2953_v45 = vpop.xlane.xlu0 %2952 }
 0x9a2   : > { %v3035_v12 = vsub.f32 %v7662_v37, %v2953_v45  ;;  %v3036_v6 = vsub.f32 %v7664_v24, %v2953_v45 }
 0x9a3   : > { %v7836_v52 = vpop.f32.mrf.mxu2  ;;  %v7838_v34 = vpop.f32.mrf.mxu3 }
 0x9a4   : > { %v7832_v44 = vpop.eup %5323  ;;  %v2996_v54 = vmax.f32 %v7836_v52, %v7838_v34  ;;  %v3123_v57 = vmul.f32 1.442695, %v3035_v12  ;;  %v3125_v43 = vmul.f32 1.442695, %v3036_v6 }
 0x9a5   : > { %v7834_v32 = vpop.eup %5325 }
 0x9a6   : > { %2994 = vmax.xlane.f32.xlu0 %v2993_v5  ;;  %v3236_v56 = vadd.f32 %v7834_v32, %v7832_v44  ;;  %v7842_v63 = vpop.eup %5327  ;;  %5331 = vpow2.f32 %v3123_v57 }
 0x9a7   : > { %9329 = vst [vmem:[#allocation38_spill] sm:$0xff] %v7842_v63  ;;  %v7847_v8 = vpop.eup %5329  ;;  %5333 = vpow2.f32 %v3125_v43 }
 0x9a8   : > { %3237 = vadd.xlane.f32.xlu1 %v3236_v56  ;;  %9330 = vst [vmem:[#allocation80_spill] sm:$0xff] %v7847_v8  ;;  %v3212_v5 = vadd.f32 %v7847_v8, %v7842_v63 }
 0x9a9   : > { %v2956_v16 = vpop.xlane.xlu2 %2955 }
 0x9aa   : > { %v3037_v45 = vsub.f32 %v7670_v2, %v2956_v16  ;;  %v3038_v12 = vsub.f32 %v7672_v39, %v2956_v16 }
 0x9ab   : > { %v7852_v25 = vpop.f32.mrf.mxu2  ;;  %v7854_v56 = vpop.f32.mrf.mxu3 }
 0x9ac   : > { %v2999_v37 = vmax.f32 %v7852_v25, %v7854_v56  ;;  %v7858_v22 = vpop.eup %5331  ;;  %v3127_v6 = vmul.f32 1.442695, %v3037_v45  ;;  %v3129_v57 = vmul.f32 1.442695, %v3038_v12 }
 0x9ad   : > { %v7860_v24 = vpop.eup %5333 }
 0x9ae   : > { %2997 = vmax.xlane.f32.xlu0 %v2996_v54  ;;  %v3239_v54 = vadd.f32 %v7860_v24, %v7858_v22  ;;  %5335 = vpow2.f32 %v3127_v6 }
 0x9af   : > { %5337 = vpow2.f32 %v3129_v57 }
 0x9b0   : > { %3213 = vadd.xlane.f32.xlu1 %v3212_v5 }
 0x9b3   : > { %v7866_v5 = vpop.f32.mrf.mxu2  ;;  %v7868_v8 = vpop.f32.mrf.mxu3 }
 0x9b4   : > { %v3002_v43 = vmax.f32 %v7866_v5, %v7868_v8  ;;  %v7872_v2 = vpop.eup %5335 }
 0x9b5   : > { %v7874_v39 = vpop.eup %5337 }
 0x9b6   : > { %3000 = vmax.xlane.f32.xlu0 %v2999_v37  ;;  %v2959_v37 = vpop.xlane.xlu0 %2958  ;;  %v3242_v12 = vadd.f32 %v7874_v39, %v7872_v2 }
 0x9b7   : > { %v3039_v16 = vsub.f32 %v7678_v42, %v2959_v37  ;;  %v3040_v45 = vsub.f32 %v7680_v53, %v2959_v37  ;;  %v3019_v37 = vsub.f32 %v7598_v21, %v7718_v27 }
 0x9b9   : > { %v3133_v6 = vmul.f32 1.442695, %v3040_v45 }
 0x9bb   : > { %v7880_v63 = vpop.f32.mrf.mxu2  ;;  %v7882_v18 = vpop.f32.mrf.mxu3 }
 0x9bc   : > { %v3005_v57 = vmax.f32 %v7880_v63, %v7882_v18 }
 0x9be   : > { %3240 = vadd.xlane.f32.xlu0 %v3239_v54  ;;  %v3131_v54 = vmul.f32 1.442695, %v3039_v16  ;;  %v2962_v53 = vpop.xlane.xlu0 %2961  ;;  %v3020_v16 = vsub.f32 %v7600_v4, %v7718_v27 }
 0x9bf   : > { %v3041_v38 = vsub.f32 %v7688_v17, %v2962_v53  ;;  %v3042_v4 = vsub.f32 %v7690_v49, %v2962_v53 }
 0x9c0   : > { %5339 = vpow2.f32 %v3131_v54  ;;  %v3093_v54 = vmul.f32 1.442695, %v3020_v16 }
 0x9c1   : > { %5341 = vpow2.f32 %v3133_v6  ;;  %v3135_v27 = vmul.f32 1.442695, %v3041_v38 }
 0x9c3   : > { %v7896_v50 = vpop.f32.mrf.mxu2  ;;  %v7898_v6 = vpop.f32.mrf.mxu3 }
 0x9c4   : > { %v3008_v21 = vmax.f32 %v7896_v50, %v7898_v6 }
 0x9c6   : > { %3003 = vmax.xlane.f32.xlu0 %v3002_v43  ;;  %v7886_v43 = vpop.eup %5339 }
 0x9c7   : > { %v7888_v42 = vpop.eup %5341 }
 0x9c8   : > { %v3245_v45 = vadd.f32 %v7888_v42, %v7886_v43 }
 0x9ce   : > { %3243 = vadd.xlane.f32.xlu0 %v3242_v12  ;;  %v3091_v12 = vmul.f32 1.442695, %v3019_v37  ;;  %v3137_v37 = vmul.f32 1.442695, %v3042_v4 }
 0x9d0   : > { %5343 = vpow2.f32 %v3091_v12 }
 0x9d1   : > { %5345 = vpow2.f32 %v3093_v54 }
 0x9d2   : > { %5347 = vpow2.f32 %v3135_v27 }
 0x9d3   : > { %5349 = vpow2.f32 %v3137_v37 }
 0x9d6   : > { %3006 = vmax.xlane.f32.xlu0 %v3005_v57 }
 0x9de   : > { %3246 = vadd.xlane.f32.xlu0 %v3245_v45  ;;  %v7906_v45 = vpop.eup %5343 }
 0x9df   : > { %9331 = vst [vmem:[#allocation81_spill] sm:$0xff] %v7906_v45  ;;  %v7908_v16 = vpop.eup %5345 }
 0x9e0   : > { %9332 = vst [vmem:[#allocation65_spill] sm:$0xff] %v7908_v16  ;;  %v3215_v17 = vadd.f32 %v7908_v16, %v7906_v45  ;;  %v7914_v12 = vpop.eup %5347 }
 0x9e1   : > { %v7900_v57 = vpop.xlane.xlu0 %2976  ;;  %v7916_v54 = vpop.eup %5349 }
 0x9e2   : > { %v3248_v0 = vadd.f32 %v7916_v54, %v7914_v12 }
 0x9e6   : > { %3009 = vmax.xlane.f32.xlu0 %v3008_v21 }
 0x9e9   : > { %v7910_v33 = vpop.xlane.xlu0 %2979 }
 0x9ee   : > { %3216 = vadd.xlane.f32.xlu0 %v3215_v17 }
 0x9f1   : > { %v2983_v49 = vpop.xlane.xlu0 %2982 }
 0x9f2   : > { %v3055_v38 = vsub.f32 %v7750_v47, %v2983_v49  ;;  %v3056_v53 = vsub.f32 %v7752_v23, %v2983_v49 }
 0x9f4   : > { %v3163_v21 = vmul.f32 1.442695, %v3055_v38  ;;  %v3165_v4 = vmul.f32 1.442695, %v3056_v53 }
 0x9f6   : > { %5351 = vpow2.f32 %v3163_v21  ;;  %3249 = vadd.xlane.f32.xlu0 %v3248_v0 }
 0x9f7   : > { %5353 = vpow2.f32 %v3165_v4 }
 0x9f9   : > { %v2986_v27 = vpop.xlane.xlu0 %2985 }
 0x9fa   : > { %v3057_v37 = vsub.f32 %v7764_v1, %v2986_v27  ;;  %v3058_v17 = vsub.f32 %v7766_v30, %v2986_v27 }
 0x9fc   : > { %v7924_v16 = vpop.eup %5351  ;;  %v3167_v45 = vmul.f32 1.442695, %v3057_v37  ;;  %v3169_v9 = vmul.f32 1.442695, %v3058_v17 }
 0x9fd   : > { %9333 = vst [vmem:[#allocation72_spill] sm:$0xff] %v7924_v16  ;;  %v7926_v47 = vpop.eup %5353 }
 0x9fe   : > { %9334 = vst [vmem:[#allocation73_spill] sm:$0xff] %v7926_v47  ;;  %5355 = vpow2.f32 %v3167_v45  ;;  %v3269_v23 = vadd.f32 %v7926_v47, %v7924_v16 }
 0x9ff   : > { %5357 = vpow2.f32 %v3169_v9 }
 0xa00   : > { %3270 = vadd.xlane.f32.xlu1 %v3269_v23 }
 0xa01   : > { %v7930_v49 = vpop.xlane.xlu0 %3225 }
 0xa04   : > { %v7932_v0 = vpop.eup %5355 }
 0xa05   : > { %v7934_v38 = vpop.eup %5357 }
 0xa06   : > { %v3272_v1 = vadd.f32 %v7934_v38, %v7932_v0 }
 0xa08   : > { %3273 = vadd.xlane.f32.xlu0 %v3272_v1 }
 0xa09   : > { %v2989_v30 = vpop.xlane.xlu0 %2988 }
 0xa0a   : > { %v3059_v53 = vsub.f32 %v7780_v35, %v2989_v30  ;;  %v3060_v45 = vsub.f32 %v7782_v26, %v2989_v30 }
 0xa0c   : > { %v3171_v21 = vmul.f32 1.442695, %v3059_v53  ;;  %v3173_v4 = vmul.f32 1.442695, %v3060_v45 }
 0xa0e   : > { %5359 = vpow2.f32 %v3171_v21  ;;  %v7954_v21 = vpop.xlane.xlu2 %2964 }
 0xa0f   : > { %5361 = vpow2.f32 %v3173_v4 }
 0xa11   : > { %v2992_v9 = vpop.xlane.xlu0 %2991 }
 0xa12   : > { %v3061_v27 = vsub.f32 %v7800_v36, %v2992_v9  ;;  %v3062_v37 = vsub.f32 %v7802_v7, %v2992_v9 }
 0xa14   : > { %v7942_v17 = vpop.eup %5359  ;;  %v3175_v23 = vmul.f32 1.442695, %v3061_v27  ;;  %v3177_v47 = vmul.f32 1.442695, %v3062_v37  ;;  %v3053_v27 = vsub.f32 %v7736_v20, %v7910_v33  ;;  %v3011_v20 = vsub.f32 %v7566_v40, %v7686_v29 }
 0xa15   : > { %v7944_v16 = vpop.eup %5361 }
 0xa16   : > { %5363 = vpow2.f32 %v3175_v23  ;;  %v3275_v35 = vadd.f32 %v7944_v16, %v7942_v17  ;;  %v3075_v40 = vmul.f32 1.442695, %v3011_v20 }
 0xa17   : > { %5365 = vpow2.f32 %v3177_v47 }
 0xa18   : > { %3276 = vadd.xlane.f32.xlu2 %v3275_v35 }
 0xa19   : > { %v2995_v26 = vpop.xlane.xlu0 %2994 }
 0xa1a   : > { %v3063_v1 = vsub.f32 %v7816_v55, %v2995_v26  ;;  %v3064_v30 = vsub.f32 %v7818_v31, %v2995_v26  ;;  %v3054_v26 = vsub.f32 %v7738_v48, %v7910_v33  ;;  %v3012_v48 = vsub.f32 %v7568_v59, %v7686_v29 }
 0xa1c   : > { %v7950_v36 = vpop.eup %5363  ;;  %v3179_v7 = vmul.f32 1.442695, %v3063_v1  ;;  %v3181_v53 = vmul.f32 1.442695, %v3064_v30  ;;  %v2968_v30 = vpop.xlane.xlu2 %2967 }
 0xa1d   : > { %v7952_v45 = vpop.eup %5365 }
 0xa1e   : > { %5367 = vpow2.f32 %v3179_v7  ;;  %v3278_v4 = vadd.f32 %v7952_v45, %v7950_v36  ;;  %v3161_v7 = vmul.f32 1.442695, %v3054_v26 }
 0xa1f   : > { %5369 = vpow2.f32 %v3181_v53 }
 0xa20   : > { %3279 = vadd.xlane.f32.xlu1 %v3278_v4 }
 0xa21   : > { %v2998_v47 = vpop.xlane.xlu0 %2997 }
 0xa22   : > { %v3065_v9 = vsub.f32 %v7836_v52, %v2998_v47  ;;  %v3066_v55 = vsub.f32 %v7838_v34, %v2998_v47  ;;  %v3159_v52 = vmul.f32 1.442695, %v3053_v27  ;;  %v2974_v34 = vpop.xlane.xlu1 %2973 }
 0xa24   : > { %v7960_v31 = vpop.eup %5367  ;;  %v3183_v37 = vmul.f32 1.442695, %v3065_v9  ;;  %v3185_v23 = vmul.f32 1.442695, %v3066_v55  ;;  %v3049_v9 = vsub.f32 %v7720_v11, %v2974_v34  ;;  %v2971_v29 = vpop.xlane.xlu2 %2970 }
 0xa25   : > { %v7964_v35 = vpop.eup %5369 }
 0xa26   : > { %5371 = vpow2.f32 %v3183_v37  ;;  %v3281_v1 = vadd.f32 %v7964_v35, %v7960_v31  ;;  %v3151_v59 = vmul.f32 1.442695, %v3049_v9 }
 0xa27   : > { %5373 = vpow2.f32 %v3185_v23  ;;  %v3050_v23 = vsub.f32 %v7722_v60, %v2974_v34  ;;  %v3046_v34 = vsub.f32 %v7706_v51, %v2968_v30 }
 0xa28   : > { %3282 = vadd.xlane.f32.xlu0 %v3281_v1  ;;  %5375 = vpow2.f32 %v3159_v52  ;;  %v3045_v52 = vsub.f32 %v7704_v28, %v2968_v30 }
 0xa29   : > { %v3001_v53 = vpop.xlane.xlu0 %3000  ;;  %5377 = vpow2.f32 %v3161_v7  ;;  %v3153_v26 = vmul.f32 1.442695, %v3050_v23  ;;  %v3145_v9 = vmul.f32 1.442695, %v3046_v34 }
 0xa2a   : > { %v3067_v4 = vsub.f32 %v7852_v25, %v3001_v53  ;;  %v3068_v47 = vsub.f32 %v7854_v56, %v3001_v53  ;;  %v3077_v56 = vmul.f32 1.442695, %v3012_v48  ;;  %v3047_v53 = vsub.f32 %v7712_v62, %v2971_v29 }
 0xa2c   : > { %v7976_v33 = vpop.eup %5371  ;;  %v3187_v55 = vmul.f32 1.442695, %v3067_v4  ;;  %v3189_v27 = vmul.f32 1.442695, %v3068_v47  ;;  %v3048_v4 = vsub.f32 %v7714_v41, %v2971_v29  ;;  %v3143_v47 = vmul.f32 1.442695, %v3045_v52 }
 0xa2d   : > { %v7979_v37 = vpop.eup %5373  ;;  %v3147_v51 = vmul.f32 1.442695, %v3047_v53  ;;  %v3043_v29 = vsub.f32 %v7696_v14, %v7954_v21 }
 0xa2e   : > { %5379 = vpow2.f32 %v3187_v55  ;;  %v3284_v25 = vadd.f32 %v7979_v37, %v7976_v33  ;;  %v7986_v1 = vpop.eup %5375  ;;  %v3149_v30 = vmul.f32 1.442695, %v3048_v4 }
 0xa2f   : > { %5381 = vpow2.f32 %v3189_v27  ;;  %v7989_v60 = vpop.eup %5377  ;;  %v3139_v53 = vmul.f32 1.442695, %v3043_v29 }
 0xa30   : > { %3285 = vadd.xlane.f32.xlu2 %v3284_v25  ;;  %5383 = vpow2.f32 %v3075_v40  ;;  %v3266_v48 = vadd.f32 %v7989_v60, %v7986_v1 }
 0xa31   : > { %v7984_v11 = vpop.xlane.xlu0 %3240  ;;  %5385 = vpow2.f32 %v3077_v56 }
 0xa32   : > { %5387 = vpow2.f32 %v3151_v59 }
 0xa33   : > { %5389 = vpow2.f32 %v3153_v26  ;;  %v3044_v26 = vsub.f32 %v7698_v15, %v7954_v21 }
 0xa34   : > { %v7992_v7 = vpop.eup %5379  ;;  %5391 = vpow2.f32 %v3143_v47 }
 0xa35   : > { %v7995_v20 = vpop.eup %5381  ;;  %5393 = vpow2.f32 %v3145_v9  ;;  %v3141_v15 = vmul.f32 1.442695, %v3044_v26 }
 0xa36   : > { %v3287_v28 = vadd.f32 %v7995_v20, %v7992_v7  ;;  %v8002_v55 = vpop.eup %5383  ;;  %5395 = vpow2.f32 %v3147_v51 }
 0xa37   : > { %v8004_v62 = vpop.eup %5385  ;;  %5397 = vpow2.f32 %v3149_v30 }
 0xa38   : > { %3267 = vadd.xlane.f32.xlu2 %v3266_v48  ;;  %3288 = vadd.xlane.f32.xlu1 %v3287_v28  ;;  %v8006_v23 = vpop.eup %5387 }
 0xa39   : > { %v3004_v27 = vpop.xlane.xlu0 %3003  ;;  %v8010_v25 = vpop.eup %5389 }
 0xa3a   : > { %v3069_v41 = vsub.f32 %v7866_v5, %v3004_v27  ;;  %v3070_v40 = vsub.f32 %v7868_v8, %v3004_v27  ;;  %v3260_v52 = vadd.f32 %v8010_v25, %v8006_v23  ;;  %v3203_v8 = vadd.f32 %v8004_v62, %v8002_v55  ;;  %v8020_v5 = vpop.eup %5391 }
 0xa3b   : > { %v8022_v34 = vpop.eup %5393 }
 0xa3c   : > { %v3191_v56 = vmul.f32 1.442695, %v3069_v41  ;;  %v3193_v59 = vmul.f32 1.442695, %v3070_v40  ;;  %v8026_v4 = vpop.eup %5395  ;;  %v3254_v9 = vadd.f32 %v8022_v34, %v8020_v5 }
 0xa3d   : > { %v8028_v21 = vpop.eup %5397 }
 0xa3e   : > { %5399 = vpow2.f32 %v3191_v56  ;;  %v3257_v51 = vadd.f32 %v8028_v21, %v8026_v4 }
 0xa3f   : > { %5401 = vpow2.f32 %v3193_v59 }
 0xa40   : > { %3261 = vadd.xlane.f32.xlu2 %v3260_v52  ;;  %3204 = vadd.xlane.f32.xlu1 %v3203_v8  ;;  %5403 = vpow2.f32 %v3139_v53 }
 0xa41   : > { %v8024_v14 = vpop.xlane.xlu0 %3243  ;;  %5405 = vpow2.f32 %v3141_v15 }
 0xa44   : > { %v8030_v47 = vpop.eup %5399 }
 0xa45   : > { %v8032_v48 = vpop.eup %5401 }
 0xa46   : > { %v3290_v28 = vadd.f32 %v8032_v48, %v8030_v47  ;;  %v8042_v40 = vpop.eup %5403 }
 0xa47   : > { %v8044_v56 = vpop.eup %5405 }
 0xa48   : > { %3291 = vadd.xlane.f32.xlu0 %v3290_v28  ;;  %3255 = vadd.xlane.f32.xlu2 %v3254_v9  ;;  %v3251_v26 = vadd.f32 %v8044_v56, %v8042_v40 }
 0xa49   : > { %3258 = vadd.xlane.f32.xlu1 %v3257_v51  ;;  %v3007_v30 = vpop.xlane.xlu0 %3006  ;;  %v3013_v51 = vsub.f32 %v7574_v61, %v7694_v10  ;;  %v3051_v61 = vsub.f32 %v7728_v58, %v7900_v57  ;;  %v215_v58 = vld [vmem:[%s8962_s2 + $0x30] sm:$0xff] }
 0xa4a   : > { %v3071_v27 = vsub.f32 %v7880_v63, %v3007_v30  ;;  %v3072_v41 = vsub.f32 %v7882_v18, %v3007_v30  ;;  %v8054_v63 = vpop.xlane.xlu1 %3222 }
 0xa4c   : > { %v3195_v59 = vmul.f32 1.442695, %v3071_v27  ;;  %v3197_v29 = vmul.f32 1.442695, %v3072_v41  ;;  %v3014_v41 = vsub.f32 %v7576_v3, %v7694_v10  ;;  %v3052_v3 = vsub.f32 %v7730_v46, %v7900_v57  ;;  %v223_v10 = vld [vmem:[%s8962_s2 + $0x70] sm:$0xff] }
 0xa4e   : > { %5407 = vpow2.f32 %v3195_v59  ;;  %v230_v59 = vld [vmem:[%s8962_s2 + $0xa8] sm:$0xff] }
 0xa4f   : > { %5409 = vpow2.f32 %v3197_v29  ;;  %v3079_v29 = vmul.f32 1.442695, %v3013_v51  ;;  %v3157_v51 = vmul.f32 1.442695, %v3052_v3 }
 0xa51   : > { %3252 = vadd.xlane.f32.xlu1 %v3251_v26  ;;  %v3247_v52 = vpop.xlane.xlu0 %3246  ;;  %v3081_v26 = vmul.f32 1.442695, %v3014_v41 }
 0xa54   : > { %v8048_v8 = vpop.eup %5407 }
 0xa55   : > { %v8050_v53 = vpop.eup %5409 }
 0xa56   : > { %v3293_v18 = vadd.f32 %v8050_v53, %v8048_v8 }
 0xa58   : > { %3294 = vadd.xlane.f32.xlu0 %v3293_v18 }
 0xa59   : > { %v3010_v15 = vpop.xlane.xlu0 %3009 }
 0xa5a   : > { %v3073_v28 = vsub.f32 %v7896_v50, %v3010_v15  ;;  %v3074_v9 = vsub.f32 %v7898_v6, %v3010_v15  ;;  %v3232_v50 = vpop.xlane.xlu1 %3231 }
 0xa5c   : > { %v3199_v30 = vmul.f32 1.442695, %v3073_v28  ;;  %v3201_v27 = vmul.f32 1.442695, %v3074_v9  ;;  %v3155_v9 = vmul.f32 1.442695, %v3051_v61 }
 0xa5e   : > { %5411 = vpow2.f32 %v3199_v30 }
 0xa5f   : > { %5413 = vpow2.f32 %v3201_v27 }
 0xa60   : > { %340 = vperm.xlu2 %4910, %v230_v59   ;;  %5415 = vpow2.f32 %v3079_v29 }
 0xa61   : > { %v8065_v18 = vpop.xlane.xlu0 %3216  ;;  %5417 = vpow2.f32 %v3081_v26 }
 0xa62   : > { %v3235_v57 = vpop.xlane.xlu1 %3234 }
 0xa64   : > { %v8069_v6 = vpop.eup %5411 }
 0xa65   : > { %v8071_v15 = vpop.eup %5413 }
 0xa66   : > { %v3296_v28 = vadd.f32 %v8071_v15, %v8069_v6  ;;  %v8083_v27 = vpop.eup %5415 }
 0xa67   : > { %v8085_v46 = vpop.eup %5417 }
 0xa68   : > { %3297 = vadd.xlane.f32.xlu0 %v3296_v28  ;;  %305 = vperm.xlu2 %4910, %v223_v10   ;;  %v3206_v41 = vadd.f32 %v8085_v46, %v8083_v27 }
 0xa69   : > { %v3250_v30 = vpop.xlane.xlu0 %3249 }
 0xa6a   : > { %265 = vperm.xlu1 %4909, %v215_v58   ;;  %5419 = vrcp.f32 %v3250_v30 }
 0xa6b   : > { %5421 = vpow2.f32 %v3155_v9 }
 0xa6c   : > { %5423 = vrcp.f32 %v3247_v52  ;;  %v3238_v52 = vpop.xlane.xlu1 %3237 }
 0xa6d   : > { %5425 = vpow2.f32 %v3157_v51 }
 0xa6e   : > { %5427 = vrcp.f32 %v8024_v14 }
 0xa6f   : > { %5429 = vrcp.f32 %v7984_v11 }
 0xa70   : > { %v5420_v59 = vpop.eup %5419  ;;  %3207 = vadd.xlane.f32.xlu0 %v3206_v41  ;;  %5431 = vrcp.f32 %v3238_v52  ;;  %v9338_v52 = vld [vmem:[#allocation87_spill] sm:$0xff] }
 0xa71   : > { %v8090_v29 = vpop.eup %5421  ;;  %v3361_v26 = vmul.f32 %v5420_v59, %v7914_v12  ;;  %v3362_v61 = vmul.f32 %v5420_v59, %v7916_v54  ;;  %v3220_v12 = vpop.xlane.xlu2 %3219  ;;  %5433 = vrcp.f32 %v3235_v57 }
 0xa72   : > { %v5424_v3 = vpop.eup %5423  ;;  %5435 = vrcp.f32 %v3232_v50 }
 0xa73   : > { %v8094_v10 = vpop.eup %5425  ;;  %3395 = vmatpush.xpose.msrb.mxu0 %v3361_v26  ;;  %3418 = vmatpush.xpose.msrb.mxu1 %v3362_v61  ;;  %v3359_v28 = vmul.f32 %v5424_v3, %v7886_v43  ;;  %v3360_v9 = vmul.f32 %v5424_v3, %v7888_v42 }
 0xa74   : > { %v5428_v14 = vpop.eup %5427  ;;  %v3263_v58 = vadd.f32 %v8094_v10, %v8090_v29 }
 0xa75   : > { %v3357_v54 = vmul.f32 %v5428_v14, %v7872_v2  ;;  %v3358_v51 = vmul.f32 %v5428_v14, %v7874_v39  ;;  %v5430_v30 = vpop.eup %5429  ;;  %v9339_v14 = vld [vmem:[#allocation91_spill] sm:$0xff] }
 0xa76   : > { %v3355_v43 = vmul.f32 %v5430_v30, %v7858_v22  ;;  %v3356_v42 = vmul.f32 %v5430_v30, %v7860_v24  ;;  %v5432_v11 = vpop.eup %5431  ;;  %v229_v24 = vld [vmem:[%s8962_s2 + $0xa0] sm:$0xff] }
 0xa77   : > { %3396 = vmatpush.xpose.msrb.mxu0 %v3359_v28  ;;  %3419 = vmatpush.xpose.msrb.mxu1 %v3360_v9  ;;  %v3353_v59 = vmul.f32 %v5432_v11, %v7832_v44  ;;  %v3354_v26 = vmul.f32 %v5432_v11, %v7834_v32  ;;  %v5434_v2 = vpop.eup %5433  ;;  %v9335_v44 = vld [vmem:[#allocation51_spill] sm:$0xff]  ;;  %v9336_v32 = vld [vmem:[#allocation52_spill] sm:$0xff]  ;;  %v9342_v11 = vld [vmem:[#allocation90_spill] sm:$0xff] }
 0xa78   : > { %3264 = vadd.xlane.f32.xlu0 %v3263_v58  ;;  %v3351_v39 = vmul.f32 %v5434_v2, %v7820_v13  ;;  %v3352_v57 = vmul.f32 %v5434_v2, %v7824_v19  ;;  %v5436_v22 = vpop.eup %5435  ;;  %v9337_v13 = vld [vmem:[#allocation86_spill] sm:$0xff]  ;;  %v9343_v2 = vld [vmem:[#allocation55_spill] sm:$0xff] }
 0xa79   : > { %v3229_v41 = vpop.xlane.xlu2 %3228  ;;  %v3349_v50 = vmul.f32 %v5436_v22, %v9335_v44  ;;  %v3350_v61 = vmul.f32 %v5436_v22, %v9336_v32 }
 0xa7a   : > { %5437 = vrcp.f32 %v3229_v41 }
 0xa7b   : > { %3397 = vmatpush.xpose.msrb.mxu0 %v3357_v54  ;;  %3420 = vmatpush.xpose.msrb.mxu1 %v3358_v51  ;;  %5439 = vrcp.f32 %v7930_v49  ;;  %v216_v49 = vld [vmem:[%s8962_s2 + $0x38] sm:$0xff] }
 0xa7c   : > { %5441 = vrcp.f32 %v8054_v63  ;;  %v9340_v54 = vld [vmem:[#allocation64_spill] sm:$0xff]  ;;  %v3214_v63 = vpop.xlane.xlu1 %3213 }
 0xa7d   : > { %5443 = vrcp.f32 %v3220_v12 }
 0xa7e   : > { %5445 = vrcp.f32 %v8065_v18 }
 0xa7f   : > { %3398 = vmatpush.xpose.msrb.mxu0 %v3355_v43  ;;  %3421 = vmatpush.xpose.msrb.mxu1 %v3356_v42  ;;  %v9341_v43 = vld [vmem:[#allocation53_spill] sm:$0xff]  ;;  %5447 = vrcp.f32 %v3214_v63  ;;  %v8141_v63 = vpop.xlane.xlu0 %3273 }
 0xa80   : > { %v5438_v3 = vpop.eup %5437 }
 0xa81   : > { %v3347_v19 = vmul.f32 %v5438_v3, %v9337_v13  ;;  %v3348_v28 = vmul.f32 %v5438_v3, %v9338_v52  ;;  %v5440_v9 = vpop.eup %5439  ;;  %v9347_v3 = vld [vmem:[#allocation38_spill] sm:$0xff] }
 0xa82   : > { %v3345_v58 = vmul.f32 %v5440_v9, %v9339_v14  ;;  %v3346_v51 = vmul.f32 %v5440_v9, %v9340_v54  ;;  %v5442_v30 = vpop.eup %5441  ;;  %v9349_v9 = vld [vmem:[#allocation84_spill] sm:$0xff]  ;;  %v9350_v14 = vld [vmem:[#allocation85_spill] sm:$0xff] }
 0xa83   : > { %3399 = vmatpush.xpose.msrb.mxu0 %v3353_v59  ;;  %3422 = vmatpush.xpose.msrb.mxu1 %v3354_v26  ;;  %v3343_v42 = vmul.f32 %v5442_v30, %v9341_v43  ;;  %v3344_v41 = vmul.f32 %v5442_v30, %v9342_v11  ;;  %v5444_v12 = vpop.eup %5443  ;;  %v3211_v59 = vpop.xlane.xlu2 %3210  ;;  %v224_v26 = vld [vmem:[%s8962_s2 + $0x78] sm:$0xff] }
 0xa84   : > { %v5446_v18 = vpop.eup %5445  ;;  %5449 = vrcp.f32 %v3211_v59  ;;  %v8137_v54 = vpop.xlane.xlu1 %3270 }
 0xa87   : > { %3400 = vmatpush.xpose.msrb.mxu0 %v3351_v39  ;;  %3423 = vmatpush.xpose.msrb.mxu1 %v3352_v57  ;;  %v3341_v39 = vmul.f32 %v5444_v12, %v9343_v2  ;;  %v9344_v57 = vld [vmem:[#allocation56_spill] sm:$0xff] }
 0xa88   : > { %v3342_v22 = vmul.f32 %v5444_v12, %v9344_v57 }
 0xa8b   : > { %3401 = vmatpush.xpose.msrb.mxu0 %v3349_v50  ;;  %3424 = vmatpush.xpose.msrb.mxu1 %v3350_v61  ;;  %v9346_v50 = vld [vmem:[#allocation65_spill] sm:$0xff]  ;;  %v5448_v61 = vpop.eup %5447 }
 0xa8c   : > { %335 = vperm.xlu0 %4908, %v229_v24   ;;  %v9345_v24 = vld [vmem:[#allocation81_spill] sm:$0xff]  ;;  %v3340_v32 = vmul.f32 %v5446_v18, %v9346_v50  ;;  %v3337_v13 = vmul.f32 %v5448_v61, %v9347_v3 }
 0xa8d   : > { %v3339_v44 = vmul.f32 %v5446_v18, %v9345_v24  ;;  %v9352_v24 = vld [vmem:[#allocation10_spill] sm:$0xff] }
 0xa8f   : > { %3402 = vmatpush.xpose.msrb.mxu0 %v3347_v19  ;;  %3425 = vmatpush.xpose.msrb.mxu1 %v3348_v28  ;;  %v9348_v19 = vld [vmem:[#allocation80_spill] sm:$0xff]  ;;  %v5450_v28 = vpop.eup %5449 }
 0xa90   : > { %v3338_v52 = vmul.f32 %v5448_v61, %v9348_v19 }
 0xa93   : > { %3403 = vmatpush.xpose.msrb.mxu0 %v3345_v58  ;;  %3426 = vmatpush.xpose.msrb.mxu1 %v3346_v51  ;;  %v3336_v58 = vmul.f32 %v5450_v28, %v9350_v14  ;;  %v8139_v51 = vpop.xlane.xlu1 %3279 }
 0xa94   : > { %270 = vperm.xlu0 %4908, %v216_v49   ;;  %v3335_v49 = vmul.f32 %v5450_v28, %v9349_v9 }
 0xa97   : > { %3404 = vmatpush.xpose.msrb.mxu0 %v3343_v42  ;;  %3427 = vmatpush.xpose.msrb.mxu1 %v3344_v41 }
 0xa9b   : > { %3405 = vmatpush.xpose.msrb.mxu0 %v3341_v39  ;;  %3428 = vmatpush.xpose.msrb.mxu1 %v3342_v22  ;;  %v3283_v42 = vpop.xlane.xlu0 %3282  ;;  %v9351_v22 = vld [vmem:[#allocation9_spill] sm:$0xff] }
 0xa9c   : > { %310 = vperm.xlu0 %4908, %v224_v26   ;;  %v3277_v26 = vpop.xlane.xlu2 %3276 }
 0xa9f   : > { %3406 = vmatpush.xpose.msrb.mxu0 %v3339_v44  ;;  %3429 = vmatpush.xpose.msrb.mxu1 %v3340_v32 }
 0xaa3   : > { %3407 = vmatpush.xpose.msrb.mxu0 %v3337_v13  ;;  %3430 = vmatpush.xpose.msrb.mxu1 %v3338_v52 }
 0xaa4   : > { %v3286_v57 = vpop.xlane.xlu2 %3285 }
 0xaa7   : > { %3408 = vmatpush.xpose.msrb.mxu0 %v3335_v49  ;;  %3431 = vmatpush.xpose.msrb.mxu1 %v3336_v58 }
 0xaab   : > { %v3289_v30 = vpop.xlane.xlu1 %3288 }
 0xaac   : > { %v8149_v32 = vpop.xlane.xlu2 %3267 }
 0xab3   : > { %v3205_v43 = vpop.xlane.xlu1 %3204 }
 0xabb   : > { %v3292_v41 = vpop.xlane.xlu0 %3291 }
 0xabc   : > { %v8143_v11 = vpop.xlane.xlu1 %3258 }
 0xac4   : > { %v8145_v59 = vpop.xlane.xlu1 %3252 }
 0xacb   : > { %v3295_v12 = vpop.xlane.xlu0 %3294 }
 0xadb   : > { %v3298_v2 = vpop.xlane.xlu0 %3297 }
 0xadc   : > { %v266_v39 = vpop.permute.xlu1 %265 }
 0xadd   : > { %v462_v18 = vadd.f32 %v9351_v22, %v266_v39  ;;  %v551_v44 = vadd.f32 %v9352_v24, %v266_v39  ;;  %v9353_v39 = vld [vmem:[#allocation13_spill] sm:$0xff] }
 0xadf   : > { %3523 = vxpose.xlu1.b32.start [1/2] (short) %v551_v44, 128  ;;  %3491 = vxpose.xlu0.b32.start [1/2] (short) %v462_v18, 128 }
 0xae3   : > { %v3208_v50 = vpop.xlane.xlu0 %3207 }
 0xae4   : > { %5451 = vrcp.f32 %v3208_v50 }
 0xae5   : > { %5453 = vrcp.f32 %v3205_v43  ;;  %v8157_v43 = vpop.xlane.xlu2 %3261 }
 0xae6   : > { %5455 = vrcp.f32 %v3298_v2 }
 0xae7   : > { %5457 = vrcp.f32 %v3295_v12 }
 0xae8   : > { %5459 = vrcp.f32 %v3292_v41 }
 0xae9   : > { %5461 = vrcp.f32 %v3289_v30 }
 0xaea   : > { %v5452_v61 = vpop.eup %5451  ;;  %5463 = vrcp.f32 %v3286_v57 }
 0xaeb   : > { %v3333_v3 = vmul.f32 %v5452_v61, %v8083_v27  ;;  %v3334_v13 = vmul.f32 %v5452_v61, %v8085_v46  ;;  %v5454_v19 = vpop.eup %5453  ;;  %5465 = vrcp.f32 %v3283_v42 }
 0xaec   : > { %v5456_v52 = vpop.eup %5455  ;;  %v3331_v28 = vmul.f32 %v5454_v19, %v8002_v55  ;;  %v3332_v9 = vmul.f32 %v5454_v19, %v8004_v62  ;;  %v3265_v55 = vpop.xlane.xlu0 %3264  ;;  %5467 = vrcp.f32 %v8139_v51  ;;  %v9358_v19 = vld [vmem:[#allocation16_spill] sm:$0xff] }
 0xaed   : > { %3409 = vmatpush.xpose.msrb.mxu0 %v3333_v3  ;;  %3432 = vmatpush.xpose.msrb.mxu1 %v3334_v13  ;;  %v3393_v49 = vmul.f32 %v5456_v52, %v8069_v6  ;;  %v3394_v14 = vmul.f32 %v5456_v52, %v8071_v15  ;;  %v5458_v58 = vpop.eup %5457  ;;  %v8163_v12 = vpop.xlane.xlu2 %3255  ;;  %5469 = vrcp.f32 %v3277_v26  ;;  %v9357_v3 = vld [vmem:[#allocation15_spill] sm:$0xff] }
 0xaee   : > { %v3391_v27 = vmul.f32 %v5458_v58, %v8048_v8  ;;  %v3392_v46 = vmul.f32 %v5458_v58, %v8050_v53  ;;  %v5460_v41 = vpop.eup %5459  ;;  %5471 = vrcp.f32 %v8141_v63 }
 0xaef   : > { %v3389_v62 = vmul.f32 %v5460_v41, %v8030_v47  ;;  %v3390_v6 = vmul.f32 %v5460_v41, %v8032_v48  ;;  %v5462_v15 = vpop.eup %5461  ;;  %v9354_v47 = vld [vmem:[#allocation14_spill] sm:$0xff]  ;;  %5473 = vrcp.f32 %v8137_v54  ;;  %v9360_v54 = vld [vmem:[#allocation73_spill] sm:$0xff] }
 0xaf0   : > { %v3387_v30 = vmul.f32 %v5462_v15, %v7992_v7  ;;  %v3388_v8 = vmul.f32 %v5462_v15, %v7995_v20  ;;  %v5464_v53 = vpop.eup %5463  ;;  %5475 = vrcp.f32 %v8149_v32 }
 0xaf1   : > { %3410 = vmatpush.xpose.msrb.mxu0 %v3331_v28  ;;  %3433 = vmatpush.xpose.msrb.mxu1 %v3332_v9  ;;  %v3385_v48 = vmul.f32 %v5464_v53, %v7976_v33  ;;  %v3386_v42 = vmul.f32 %v5464_v53, %v7979_v37  ;;  %v5466_v18 = vpop.eup %5465  ;;  %v9355_v33 = vld [vmem:[#allocation11_spill] sm:$0xff]  ;;  %v9356_v37 = vld [vmem:[#allocation12_spill] sm:$0xff]  ;;  %5477 = vrcp.f32 %v3265_v55 }
 0xaf2   : > { %v3383_v7 = vmul.f32 %v5466_v18, %v7960_v31  ;;  %v3384_v20 = vmul.f32 %v5466_v18, %v7964_v35  ;;  %v5468_v44 = vpop.eup %5467  ;;  %5479 = vrcp.f32 %v8157_v43 }
 0xaf3   : > { %v3381_v31 = vmul.f32 %v5468_v44, %v7950_v36  ;;  %v3382_v35 = vmul.f32 %v5468_v44, %v7952_v45  ;;  %v5470_v52 = vpop.eup %5469  ;;  %5481 = vrcp.f32 %v8143_v11 }
 0xaf4   : > { %v3379_v63 = vmul.f32 %v5470_v52, %v7942_v17  ;;  %v3380_v28 = vmul.f32 %v5470_v52, %v7944_v16  ;;  %v5472_v9 = vpop.eup %5471  ;;  %5483 = vrcp.f32 %v8163_v12  ;;  %v9361_v12 = vld [vmem:[#allocation27_spill] sm:$0xff] }
 0xaf5   : > { %3441 = vmatpush.xpose.msra.mxu0 %v3393_v49  ;;  %3464 = vmatpush.xpose.msra.mxu1 %v3394_v14  ;;  %v341_v24 = vpop.permute.xlu2 %340  ;;  %v3377_v36 = vmul.f32 %v5472_v9, %v7932_v0  ;;  %v3378_v45 = vmul.f32 %v5472_v9, %v7934_v38  ;;  %v5474_v49 = vpop.eup %5473  ;;  %v9359_v14 = vld [vmem:[#allocation72_spill] sm:$0xff]  ;;  %5485 = vrcp.f32 %v8145_v59 }
 0xaf6   : > { %v8184_v13 = vadd.f32 %v9357_v3, %v341_v24  ;;  %v8187_v26 = vadd.f32 %v9358_v19, %v341_v24  ;;  %v3375_v58 = vmul.f32 %v5474_v49, %v9359_v14  ;;  %v5476_v17 = vpop.eup %5475 }
 0xaf7   : > { %v3373_v16 = vmul.f32 %v5476_v17, %v7986_v1  ;;  %v3374_v32 = vmul.f32 %v5476_v17, %v7989_v60  ;;  %v5478_v0 = vpop.eup %5477 }
 0xaf8   : > { %v3371_v38 = vmul.f32 %v5478_v0, %v8090_v29  ;;  %v5480_v41 = vpop.eup %5479 }
 0xaf9   : > { %3442 = vmatpush.xpose.msra.mxu0 %v3391_v27  ;;  %3465 = vmatpush.xpose.msra.mxu1 %v3392_v46  ;;  %v3376_v27 = vmul.f32 %v5474_v49, %v9360_v54  ;;  %v3372_v46 = vmul.f32 %v5478_v0, %v8094_v10  ;;  %v3369_v43 = vmul.f32 %v5480_v41, %v8006_v23  ;;  %v5482_v55 = vpop.eup %5481 }
 0xafa   : > { %v3370_v1 = vmul.f32 %v5480_v41, %v8010_v25  ;;  %v3367_v60 = vmul.f32 %v5482_v55, %v8026_v4  ;;  %v3368_v29 = vmul.f32 %v5482_v55, %v8028_v21  ;;  %v5484_v11 = vpop.eup %5483 }
 0xafb   : > { %v3365_v10 = vmul.f32 %v5484_v11, %v8020_v5  ;;  %v9363_v5 = vld [vmem:[#allocation25_spill] sm:$0xff] }
 0xafd   : > { %3443 = vmatpush.xpose.msra.mxu0 %v3389_v62  ;;  %3466 = vmatpush.xpose.msra.mxu1 %v3390_v6  ;;  %v3366_v62 = vmul.f32 %v5484_v11, %v8022_v34  ;;  %v5486_v6 = vpop.eup %5485  ;;  %v306_v59 = vpop.permute.xlu2 %305 }
 0xafe   : > { %v336_v2 = vpop.permute.xlu0 %335  ;;  %v3363_v25 = vmul.f32 %v5486_v6, %v8042_v40  ;;  %v3364_v15 = vmul.f32 %v5486_v6, %v8044_v56  ;;  %v486_v34 = vadd.f32 %v9363_v5, %v306_v59 }
 0xaff   : > { %v8168_v57 = vadd.f32 %v9353_v39, %v336_v2  ;;  %v8171_v22 = vadd.f32 %v9354_v47, %v336_v2 }
 0xb01   : > { %3444 = vmatpush.xpose.msra.mxu0 %v3387_v30  ;;  %3467 = vmatpush.xpose.msra.mxu1 %v3388_v8  ;;  %v9362_v30 = vld [vmem:[#allocation28_spill] sm:$0xff]  ;;  %v9364_v8 = vld [vmem:[#allocation26_spill] sm:$0xff] }
 0xb02   : > { %3411 = vmatmul.f32.vlgmr.msrb.gmra.mxu0 %v8168_v57  ;;  %3434 = vmatmul.f32.vlgmr.msrb.gmra.mxu1 %v8171_v22  ;;  %v575_v53 = vadd.f32 %v9364_v8, %v306_v59 }
 0xb05   : > { %3445 = vmatpush.xpose.msra.mxu0 %v3385_v48  ;;  %3468 = vmatpush.xpose.msra.mxu1 %v3386_v42 }
 0xb06   : > { %v271_v50 = vpop.permute.xlu0 %270 }
 0xb07   : > { %v465_v51 = vadd.f32 %v9355_v33, %v271_v50  ;;  %v554_v61 = vadd.f32 %v9356_v37, %v271_v50 }
 0xb09   : > { %3446 = vmatpush.xpose.msra.mxu0 %v3383_v7  ;;  %3469 = vmatpush.xpose.msra.mxu1 %v3384_v20 }
 0xb0a   : > { %3524 = vxpose.xlu1.b32.end [2/2] (short) %v554_v61, 128  ;;  %3492 = vxpose.xlu0.b32.end [2/2] (short) %v465_v51, 128 }
 0xb0b   : > { %3414 = vmatmul.f32.gmra.mxu0 %v8184_v13  ;;  %3437 = vmatmul.f32.gmra.mxu1 %v8187_v26 }
 0xb0d   : > { %3447 = vmatpush.xpose.msra.mxu0 %v3381_v31  ;;  %3470 = vmatpush.xpose.msra.mxu1 %v3382_v35 }
 0xb0e   : > { %v311_v23 = vpop.permute.xlu0 %310 }
 0xb0f   : > { %v489_v4 = vadd.f32 %v9361_v12, %v311_v23  ;;  %v578_v21 = vadd.f32 %v9362_v30, %v311_v23 }
 0xb11   : > { %3448 = vmatpush.xpose.msra.mxu0 %v3379_v63  ;;  %3471 = vmatpush.xpose.msra.mxu1 %v3380_v28 }
 0xb15   : > { %3449 = vmatpush.xpose.msra.mxu0 %v3377_v36  ;;  %3472 = vmatpush.xpose.msra.mxu1 %v3378_v45 }
 0xb19   : > { %3450 = vmatpush.xpose.msra.mxu0 %v3375_v58  ;;  %3473 = vmatpush.xpose.msra.mxu1 %v3376_v27 }
 0xb1d   : > { %3451 = vmatpush.xpose.msra.mxu0 %v3373_v16  ;;  %3474 = vmatpush.xpose.msra.mxu1 %v3374_v32 }
 0xb21   : > { %3452 = vmatpush.xpose.msra.mxu0 %v3371_v38  ;;  %3475 = vmatpush.xpose.msra.mxu1 %v3372_v46 }
 0xb25   : > { %3453 = vmatpush.xpose.msra.mxu0 %v3369_v43  ;;  %3476 = vmatpush.xpose.msra.mxu1 %v3370_v1 }
 0xb29   : > { %3454 = vmatpush.xpose.msra.mxu0 %v3367_v60  ;;  %3477 = vmatpush.xpose.msra.mxu1 %v3368_v29 }
 0xb2d   : > { %3455 = vmatpush.xpose.msra.mxu0 %v3365_v10  ;;  %3478 = vmatpush.xpose.msra.mxu1 %v3366_v62 }
 0xb31   : > { %3456 = vmatpush.xpose.msra.mxu0 %v3363_v25  ;;  %3479 = vmatpush.xpose.msra.mxu1 %v3364_v15 }
 0xb34   : > { %3457 = vmatmul.f32.vlgmr.msra.gmra.mxu0 %v8168_v57  ;;  %3480 = vmatmul.f32.vlgmr.msra.gmra.mxu1 %v8171_v22 }
 0xb35   : > { %3665 = vmatpush.msrb.mxu0 %v489_v4  ;;  %3778 = vmatpush.msrb.mxu1 %v578_v21 }
 0xb37   : > { %3666 = vmatpush.msrb.mxu0 %v486_v34  ;;  %3779 = vmatpush.msrb.mxu1 %v575_v53 }
 0xb3c   : > { %3460 = vmatmul.f32.gmra.mxu0 %v8184_v13  ;;  %3483 = vmatmul.f32.gmra.mxu1 %v8187_v26 }
 0xb7f   : > { %v3412_v40 = vpop.f32.mrf.mxu0  ;;  %v3435_v56 = vpop.f32.mrf.mxu1 }
 0xb80   : > { %v3436_v2 = vadd.f32 %v3435_v56, %v3412_v40 }
 0xb82   : > { %3487 = vst [vmem:[%s6463_s27 + $0x40] sm:$0xff] %v3436_v2 }
 0xb88   : > { %v3415_v39 = vpop.f32.mrf.mxu0  ;;  %v3438_v47 = vpop.f32.mrf.mxu1 }
 0xb89   : > { %v3439_v48 = vadd.f32 %v3438_v47, %v3415_v39 }
 0xb8b   : > { %3489 = vst [vmem:[%s6463_s27 + $0x50] sm:$0xff] %v3439_v48 }
 0xba6   : > { %v3507_v42 = vpop.trf.xlu0  ;;  %v3539_v35 = vpop.trf.xlu1 }
 0xba7   : > { %4778 = vmatmul.msk.f32.vlgmr.msrb.gmra.mxu0 %vm668_vm1, %v3507_v42  ;;  %4810 = vmatmul.msk.f32.vlgmr.msrb.gmra.mxu1 %vm668_vm1, %v3507_v42 }
 0xbae   : > { %v3508_v57 = vpop.trf.xlu0  ;;  %v3540_v28 = vpop.trf.xlu1 }
 0xbaf   : > { %4779 = vmatmul.msk.f32.gmra.mxu0 %vm668_vm1, %v3508_v57  ;;  %4811 = vmatmul.msk.f32.gmra.mxu1 %vm668_vm1, %v3508_v57 }
 0xbb1   : > { %v3458_v22 = vpop.f32.mrf.mxu0  ;;  %v3481_v18 = vpop.f32.mrf.mxu1 }
 0xbb2   : > { %v3482_v7 = vadd.f32 %v3481_v18, %v3458_v22 }
 0xbb4   : > { %3488 = vst [vmem:[%s6463_s27 + $0x48] sm:$0xff] %v3482_v7 }
 0xbb6   : > { %v3509_v20 = vpop.trf.xlu0  ;;  %v3541_v36 = vpop.trf.xlu1 }
 0xbb7   : > { %4780 = vmatmul.msk.f32.gmra.mxu0 %vm668_vm1, %v3509_v20  ;;  %4812 = vmatmul.msk.f32.gmra.mxu1 %vm668_vm1, %v3509_v20 }
 0xbb9   : > { %v3461_v24 = vpop.f32.mrf.mxu0  ;;  %v3484_v44 = vpop.f32.mrf.mxu1 }
 0xbba   : > { %v3485_v50 = vadd.f32 %v3484_v44, %v3461_v24 }
 0xbbc   : > { %3490 = vst [vmem:[%s6463_s27 + $0x58] sm:$0xff] %v3485_v50 }
 0xbbe   : > { %v3510_v33 = vpop.trf.xlu0  ;;  %v3542_v49 = vpop.trf.xlu1 }
 0xbbf   : > { %4781 = vmatmul.msk.f32.gmra.mxu0 %vm668_vm1, %v3510_v33  ;;  %4813 = vmatmul.msk.f32.gmra.mxu1 %vm668_vm1, %v3510_v33 }
 0xbc6   : > { %v3511_v51 = vpop.trf.xlu0  ;;  %v3543_v17 = vpop.trf.xlu1 }
 0xbc7   : > { %4782 = vmatmul.msk.f32.gmra.mxu0 %vm668_vm1, %v3511_v51  ;;  %4814 = vmatmul.msk.f32.gmra.mxu1 %vm668_vm1, %v3511_v51 }
 0xbce   : > { %v3512_v37 = vpop.trf.xlu0  ;;  %v3544_v0 = vpop.trf.xlu1 }
 0xbcf   : > { %4783 = vmatmul.msk.f32.gmra.mxu0 %vm668_vm1, %v3512_v37  ;;  %4815 = vmatmul.msk.f32.gmra.mxu1 %vm668_vm1, %v3512_v37 }
 0xbd6   : > { %v3513_v61 = vpop.trf.xlu0  ;;  %v3545_v41 = vpop.trf.xlu1 }
 0xbd7   : > { %4784 = vmatmul.msk.f32.gmra.mxu0 %vm668_vm1, %v3513_v61  ;;  %4816 = vmatmul.msk.f32.gmra.mxu1 %vm668_vm1, %v3513_v61 }
 0xbde   : > { %v3514_v3 = vpop.trf.xlu0  ;;  %v3546_v55 = vpop.trf.xlu1 }
 0xbdf   : > { %4785 = vmatmul.msk.f32.gmra.mxu0 %vm668_vm1, %v3514_v3  ;;  %4817 = vmatmul.msk.f32.gmra.mxu1 %vm668_vm1, %v3514_v3 }
 0xbe6   : > { %v3515_v13 = vpop.trf.xlu0  ;;  %v3547_v62 = vpop.trf.xlu1 }
 0xbe7   : > { %4786 = vmatmul.msk.f32.gmra.mxu0 %vm668_vm1, %v3515_v13  ;;  %4818 = vmatmul.msk.f32.gmra.mxu1 %vm668_vm1, %v3515_v13 }
 0xbee   : > { %v3516_v19 = vpop.trf.xlu0  ;;  %v3548_v25 = vpop.trf.xlu1 }
 0xbef   : > { %4787 = vmatmul.msk.f32.gmra.mxu0 %vm668_vm1, %v3516_v19  ;;  %4819 = vmatmul.msk.f32.gmra.mxu1 %vm668_vm1, %v3516_v19 }
 0xbf6   : > { %v3517_v26 = vpop.trf.xlu0  ;;  %v3549_v12 = vpop.trf.xlu1 }
 0xbf7   : > { %4788 = vmatmul.msk.f32.gmra.mxu0 %vm668_vm1, %v3517_v26  ;;  %4820 = vmatmul.msk.f32.gmra.mxu1 %vm668_vm1, %v3517_v26 }
 0xbfe   : > { %v3518_v31 = vpop.trf.xlu0  ;;  %v3550_v21 = vpop.trf.xlu1 }
 0xbff   : > { %4789 = vmatmul.msk.f32.gmra.mxu0 %vm668_vm1, %v3518_v31  ;;  %4821 = vmatmul.msk.f32.gmra.mxu1 %vm668_vm1, %v3518_v31 }
 0xc06   : > { %v3519_v52 = vpop.trf.xlu0  ;;  %v3551_v40 = vpop.trf.xlu1 }
 0xc07   : > { %4790 = vmatmul.msk.f32.gmra.mxu0 %vm668_vm1, %v3519_v52  ;;  %4822 = vmatmul.msk.f32.gmra.mxu1 %vm668_vm1, %v3519_v52 }
 0xc0e   : > { %v3520_v63 = vpop.trf.xlu0  ;;  %v3552_v39 = vpop.trf.xlu1 }
 0xc0f   : > { %4791 = vmatmul.msk.f32.gmra.mxu0 %vm668_vm1, %v3520_v63  ;;  %4823 = vmatmul.msk.f32.gmra.mxu1 %vm668_vm1, %v3520_v63 }
 0xc16   : > { %v3521_v9 = vpop.trf.xlu0  ;;  %v3553_v57 = vpop.trf.xlu1 }
 0xc17   : > { %4792 = vmatmul.msk.f32.gmra.mxu0 %vm668_vm1, %v3521_v9  ;;  %4824 = vmatmul.msk.f32.gmra.mxu1 %vm668_vm1, %v3521_v9 }
 0xc1e   : > { %v3522_v45 = vpop.trf.xlu0  ;;  %v3554_v24 = vpop.trf.xlu1 }
 0xc1f   : > { %4793 = vmatmul.msk.f32.gmra.mxu0 %vm668_vm1, %v3522_v45  ;;  %4825 = vmatmul.msk.f32.gmra.mxu1 %vm668_vm1, %v3522_v45 }
 0xc24   : > { %v8261_v14 = vpop.f32.mrf.mxu0  ;;  %v8263_v58 = vpop.f32.mrf.mxu1 }
 0xc25   : > { %9365 = vst [vmem:[#allocation76_spill] sm:$0xff] %v8261_v14 }
 0xc26   : > { %9366 = vst [vmem:[#allocation77_spill] sm:$0xff] %v8263_v58 }
 0xc27   : > { %4794 = vmatmul.msk.f32.gmra.mxu0 %vm668_vm1, %v3539_v35  ;;  %4826 = vmatmul.msk.f32.gmra.mxu1 %vm668_vm1, %v3539_v35 }
 0xc2c   : > { %v8267_v54 = vpop.f32.mrf.mxu0  ;;  %v8269_v27 = vpop.f32.mrf.mxu1 }
 0xc2d   : > { %9367 = vst [vmem:[#allocation39_spill] sm:$0xff] %v8267_v54 }
 0xc2e   : > { %9368 = vst [vmem:[#allocation49_spill] sm:$0xff] %v8269_v27 }
 0xc2f   : > { %4795 = vmatmul.msk.f32.gmra.mxu0 %vm668_vm1, %v3540_v28  ;;  %4827 = vmatmul.msk.f32.gmra.mxu1 %vm668_vm1, %v3540_v28 }
 0xc34   : > { %v8273_v16 = vpop.f32.mrf.mxu0  ;;  %v8275_v32 = vpop.f32.mrf.mxu1 }
 0xc37   : > { %4796 = vmatmul.msk.f32.gmra.mxu0 %vm668_vm1, %v3541_v36  ;;  %4828 = vmatmul.msk.f32.gmra.mxu1 %vm668_vm1, %v3541_v36 }
 0xc3c   : > { %v8279_v38 = vpop.f32.mrf.mxu0  ;;  %v8281_v46 = vpop.f32.mrf.mxu1 }
 0xc3f   : > { %4797 = vmatmul.msk.f32.gmra.mxu0 %vm668_vm1, %v3542_v49  ;;  %4829 = vmatmul.msk.f32.gmra.mxu1 %vm668_vm1, %v3542_v49 }
 0xc44   : > { %v8285_v43 = vpop.f32.mrf.mxu0  ;;  %v8287_v1 = vpop.f32.mrf.mxu1 }
 0xc47   : > { %4798 = vmatmul.msk.f32.gmra.mxu0 %vm668_vm1, %v3543_v17  ;;  %4830 = vmatmul.msk.f32.gmra.mxu1 %vm668_vm1, %v3543_v17 }
 0xc4c   : > { %v8291_v60 = vpop.f32.mrf.mxu0  ;;  %v8293_v29 = vpop.f32.mrf.mxu1 }
 0xc4f   : > { %4799 = vmatmul.msk.f32.gmra.mxu0 %vm668_vm1, %v3544_v0  ;;  %4831 = vmatmul.msk.f32.gmra.mxu1 %vm668_vm1, %v3544_v0 }
 0xc54   : > { %v8297_v11 = vpop.f32.mrf.mxu0  ;;  %v8299_v10 = vpop.f32.mrf.mxu1 }
 0xc55   : > { %v3895_v17 = vmax.f32 %v8297_v11, %v8299_v10 }
 0xc57   : > { %4800 = vmatmul.msk.f32.gmra.mxu0 %vm668_vm1, %v3545_v41  ;;  %4832 = vmatmul.msk.f32.gmra.mxu1 %vm668_vm1, %v3545_v41 }
 0xc5c   : > { %v8303_v6 = vpop.f32.mrf.mxu0  ;;  %v8305_v23 = vpop.f32.mrf.mxu1 }
 0xc5d   : > { %v3898_v36 = vmax.f32 %v8303_v6, %v8305_v23 }
 0xc5f   : > { %4801 = vmatmul.msk.f32.gmra.mxu0 %vm668_vm1, %v3546_v55  ;;  %4833 = vmatmul.msk.f32.gmra.mxu1 %vm668_vm1, %v3546_v55  ;;  %v3892_v55 = vmax.f32 %v8291_v60, %v8293_v29 }
 0xc64   : > { %v8309_v15 = vpop.f32.mrf.mxu0  ;;  %v8311_v59 = vpop.f32.mrf.mxu1 }
 0xc65   : > { %v3901_v52 = vmax.f32 %v8309_v15, %v8311_v59 }
 0xc67   : > { %4802 = vmatmul.msk.f32.gmra.mxu0 %vm668_vm1, %v3547_v62  ;;  %4834 = vmatmul.msk.f32.gmra.mxu1 %vm668_vm1, %v3547_v62 }
 0xc6c   : > { %v8315_v4 = vpop.f32.mrf.mxu0  ;;  %v8317_v30 = vpop.f32.mrf.mxu1 }
 0xc6d   : > { %v3904_v19 = vmax.f32 %v8315_v4, %v8317_v30 }
 0xc6f   : > { %4803 = vmatmul.msk.f32.gmra.mxu0 %vm668_vm1, %v3548_v25  ;;  %4835 = vmatmul.msk.f32.gmra.mxu1 %vm668_vm1, %v3548_v25 }
 0xc74   : > { %v8321_v5 = vpop.f32.mrf.mxu0  ;;  %v8323_v34 = vpop.f32.mrf.mxu1 }
 0xc75   : > { %v3907_v61 = vmax.f32 %v8321_v5, %v8323_v34 }
 0xc77   : > { %4804 = vmatmul.msk.f32.gmra.mxu0 %vm668_vm1, %v3549_v12  ;;  %4836 = vmatmul.msk.f32.gmra.mxu1 %vm668_vm1, %v3549_v12  ;;  %v3889_v12 = vmax.f32 %v8285_v43, %v8287_v1 }
 0xc7c   : > { %v8327_v8 = vpop.f32.mrf.mxu0  ;;  %v8329_v53 = vpop.f32.mrf.mxu1 }
 0xc7d   : > { %v3910_v33 = vmax.f32 %v8327_v8, %v8329_v53 }
 0xc7f   : > { %4805 = vmatmul.msk.f32.gmra.mxu0 %vm668_vm1, %v3550_v21  ;;  %4837 = vmatmul.msk.f32.gmra.mxu1 %vm668_vm1, %v3550_v21 }
 0xc84   : > { %v8333_v56 = vpop.f32.mrf.mxu0  ;;  %v8335_v2 = vpop.f32.mrf.mxu1 }
 0xc85   : > { %v3913_v20 = vmax.f32 %v8333_v56, %v8335_v2 }
 0xc87   : > { %4806 = vmatmul.msk.f32.gmra.mxu0 %vm668_vm1, %v3551_v40  ;;  %4838 = vmatmul.msk.f32.gmra.mxu1 %vm668_vm1, %v3551_v40 }
 0xc8c   : > { %v8339_v47 = vpop.f32.mrf.mxu0  ;;  %v8341_v48 = vpop.f32.mrf.mxu1 }
 0xc8d   : > { %v3916_v42 = vmax.f32 %v8339_v47, %v8341_v48 }
 0xc8f   : > { %4807 = vmatmul.msk.f32.gmra.mxu0 %vm668_vm1, %v3552_v39  ;;  %4839 = vmatmul.msk.f32.gmra.mxu1 %vm668_vm1, %v3552_v39  ;;  %v3886_v39 = vmax.f32 %v8279_v38, %v8281_v46 }
 0xc90   : > { %3917 = vmax.xlane.f32.xlu2 %v3916_v42 }
 0xc94   : > { %v8347_v22 = vpop.f32.mrf.mxu0  ;;  %v8349_v18 = vpop.f32.mrf.mxu1 }
 0xc95   : > { %v3919_v7 = vmax.f32 %v8347_v22, %v8349_v18 }
 0xc97   : > { %4808 = vmatmul.msk.f32.gmra.mxu0 %vm668_vm1, %v3553_v57  ;;  %4840 = vmatmul.msk.f32.gmra.mxu1 %vm668_vm1, %v3553_v57 }
 0xc98   : > { %3914 = vmax.xlane.f32.xlu2 %v3913_v20  ;;  %3920 = vmax.xlane.f32.xlu0 %v3919_v7  ;;  %v3883_v7 = vmax.f32 %v8273_v16, %v8275_v32 }
 0xc9c   : > { %v8357_v44 = vpop.f32.mrf.mxu0  ;;  %v8359_v50 = vpop.f32.mrf.mxu1 }
 0xc9f   : > { %4809 = vmatmul.msk.f32.gmra.mxu0 %vm668_vm1, %v3554_v24  ;;  %4841 = vmatmul.msk.f32.gmra.mxu1 %vm668_vm1, %v3554_v24 }
 0xca0   : > { %3911 = vmax.xlane.f32.xlu2 %v3910_v33  ;;  %v3880_v33 = vmax.f32 %v8267_v54, %v8269_v27 }
 0xca4   : > { %v8365_v51 = vpop.f32.mrf.mxu0  ;;  %v8367_v37 = vpop.f32.mrf.mxu1 }
 0xca8   : > { %3908 = vmax.xlane.f32.xlu2 %v3907_v61 }
 0xcac   : > { %v8371_v3 = vpop.f32.mrf.mxu0  ;;  %v8373_v13 = vpop.f32.mrf.mxu1 }
 0xcb0   : > { %3905 = vmax.xlane.f32.xlu2 %v3904_v19 }
 0xcb4   : > { %v8377_v26 = vpop.f32.mrf.mxu0  ;;  %v8379_v31 = vpop.f32.mrf.mxu1 }
 0xcb5   : > { %9369 = vst [vmem:[#allocation50_spill] sm:$0xff] %v8377_v26  ;;  %v3931_v35 = vmax.f32 %v8377_v26, %v8379_v31 }
 0xcb6   : > { %9370 = vst [vmem:[#allocation40_spill] sm:$0xff] %v8379_v31 }
 0xcb7   : > { %3932 = vmax.xlane.f32.xlu1 %v3931_v35  ;;  %v3877_v35 = vmax.f32 %v8261_v14, %v8263_v58 }
 0xcb8   : > { %3902 = vmax.xlane.f32.xlu2 %v3901_v52 }
 0xcbc   : > { %v8385_v63 = vpop.f32.mrf.mxu0  ;;  %v8387_v28 = vpop.f32.mrf.mxu1 }
 0xcbd   : > { %9371 = vst [vmem:[#allocation70_spill] sm:$0xff] %v8387_v28  ;;  %v3934_v9 = vmax.f32 %v8385_v63, %v8387_v28 }
 0xcbf   : > { %3935 = vmax.xlane.f32.xlu0 %v3934_v9 }
 0xcc0   : > { %3899 = vmax.xlane.f32.xlu2 %v3898_v36  ;;  %v3922_v36 = vmax.f32 %v8357_v44, %v8359_v50 }
 0xcc4   : > { %v8393_v45 = vpop.f32.mrf.mxu0  ;;  %v8395_v49 = vpop.f32.mrf.mxu1 }
 0xcc5   : > { %9372 = vst [vmem:[#allocation71_spill] sm:$0xff] %v8393_v45 }
 0xcc6   : > { %9373 = vst [vmem:[#allocation54_spill] sm:$0xff] %v8395_v49 }
 0xcc8   : > { %3896 = vmax.xlane.f32.xlu2 %v3895_v17 }
 0xccc   : > { %v8399_v0 = vpop.f32.mrf.mxu0  ;;  %v8401_v41 = vpop.f32.mrf.mxu1 }
 0xcd0   : > { %3893 = vmax.xlane.f32.xlu2 %v3892_v55  ;;  %v3937_v55 = vmax.f32 %v8393_v45, %v8395_v49 }
 0xcd4   : > { %v8405_v62 = vpop.f32.mrf.mxu0  ;;  %v8407_v25 = vpop.f32.mrf.mxu1 }
 0xcd5   : > { %9374 = vst [vmem:[#allocation74_spill] sm:$0xff] %v8407_v25  ;;  %v3943_v54 = vmax.f32 %v8405_v62, %v8407_v25 }
 0xcd8   : > { %3890 = vmax.xlane.f32.xlu2 %v3889_v12 }
 0xcdc   : > { %v8411_v21 = vpop.f32.mrf.mxu0  ;;  %v8413_v40 = vpop.f32.mrf.mxu1 }
 0xce0   : > { %3887 = vmax.xlane.f32.xlu2 %v3886_v39 }
 0xce4   : > { %v8417_v42 = vpop.f32.mrf.mxu0  ;;  %v8419_v57 = vpop.f32.mrf.mxu1 }
 0xce8   : > { %3884 = vmax.xlane.f32.xlu2 %v3883_v7 }
 0xcec   : > { %v8423_v20 = vpop.f32.mrf.mxu0  ;;  %v8425_v24 = vpop.f32.mrf.mxu1 }
 0xcf0   : > { %3881 = vmax.xlane.f32.xlu2 %v3880_v33  ;;  %v3940_v33 = vmax.f32 %v8399_v0, %v8401_v41 }
 0xcf4   : > { %v8429_v61 = vpop.f32.mrf.mxu0  ;;  %v8431_v19 = vpop.f32.mrf.mxu1 }
 0xcf8   : > { %3878 = vmax.xlane.f32.xlu2 %v3877_v35 }
 0xcfc   : > { %v8435_v52 = vpop.f32.mrf.mxu0  ;;  %v8437_v9 = vpop.f32.mrf.mxu1 }
 0xd00   : > { %3923 = vmax.xlane.f32.xlu2 %v3922_v36 }
 0xd03   : > { %v8441_v17 = vpop.xlane.xlu2 %3917 }
 0xd04   : > { %v8445_v12 = vpop.f32.mrf.mxu0  ;;  %v8447_v39 = vpop.f32.mrf.mxu1 }
 0xd08   : > { %3938 = vmax.xlane.f32.xlu2 %v3937_v55 }
 0xd0b   : > { %v8449_v7 = vpop.xlane.xlu2 %3914 }
 0xd0c   : > { %v8453_v35 = vpop.f32.mrf.mxu0  ;;  %v8455_v27 = vpop.f32.mrf.mxu1 }
 0xd10   : > { %3941 = vmax.xlane.f32.xlu2 %v3940_v33  ;;  %v3946_v33 = vmax.f32 %v8411_v21, %v8413_v40 }
 0xd13   : > { %v3912_v36 = vpop.xlane.xlu2 %3911 }
 0xd14   : > { %v3995_v49 = vsub.f32 %v8327_v8, %v3912_v36  ;;  %v3996_v45 = vsub.f32 %v8329_v53, %v3912_v36  ;;  %v8461_v31 = vpop.f32.mrf.mxu0  ;;  %v8463_v55 = vpop.f32.mrf.mxu1 }
 0xd16   : > { %v4081_v26 = vmul.f32 1.442695, %v3995_v49  ;;  %v4083_v58 = vmul.f32 1.442695, %v3996_v45 }
 0xd18   : > { %5487 = vpow2.f32 %v4081_v26  ;;  %3944 = vmax.xlane.f32.xlu2 %v3943_v54 }
 0xd19   : > { %5489 = vpow2.f32 %v4083_v58 }
 0xd1b   : > { %v3909_v14 = vpop.xlane.xlu2 %3908 }
 0xd1c   : > { %v3993_v28 = vsub.f32 %v8321_v5, %v3909_v14  ;;  %v3994_v25 = vsub.f32 %v8323_v34, %v3909_v14  ;;  %v8469_v8 = vpop.f32.mrf.mxu0  ;;  %v8471_v53 = vpop.f32.mrf.mxu1  ;;  %v3949_v34 = vmax.f32 %v8417_v42, %v8419_v57 }
 0xd1d   : > { %9375 = vst [vmem:[#allocation75_spill] sm:$0xff] %v8471_v53  ;;  %v3970_v36 = vmax.f32 %v8469_v8, %v8471_v53 }
 0xd1e   : > { %v8475_v49 = vpop.eup %5487  ;;  %v4077_v26 = vmul.f32 1.442695, %v3993_v28  ;;  %v4079_v54 = vmul.f32 1.442695, %v3994_v25  ;;  %v3928_v28 = vmax.f32 %v8371_v3, %v8373_v13 }
 0xd1f   : > { %v8477_v58 = vpop.eup %5489  ;;  %3971 = vmax.xlane.f32.xlu1 %v3970_v36 }
 0xd20   : > { %5491 = vpow2.f32 %v4077_v26  ;;  %3947 = vmax.xlane.f32.xlu2 %v3946_v33  ;;  %v4198_v5 = vadd.f32 %v8477_v58, %v8475_v49 }
 0xd21   : > { %5493 = vpow2.f32 %v4079_v54 }
 0xd22   : > { %4199 = vadd.xlane.f32.xlu0 %v4198_v5 }
 0xd23   : > { %v3906_v14 = vpop.xlane.xlu2 %3905 }
 0xd24   : > { %v3991_v45 = vsub.f32 %v8315_v4, %v3906_v14  ;;  %v3992_v53 = vsub.f32 %v8317_v30, %v3906_v14  ;;  %v3952_v30 = vmax.f32 %v8423_v20, %v8425_v24 }
 0xd26   : > { %v8487_v25 = vpop.eup %5491  ;;  %v4073_v36 = vmul.f32 1.442695, %v3991_v45  ;;  %v4075_v33 = vmul.f32 1.442695, %v3992_v53  ;;  %v3925_v53 = vmax.f32 %v8365_v51, %v8367_v37 }
 0xd27   : > { %9376 = vst [vmem:[#allocation97_spill] sm:$0xff] %v8487_v25  ;;  %v8489_v26 = vpop.eup %5493  ;;  %3929 = vmax.xlane.f32.xlu1 %v3928_v28 }
 0xd28   : > { %9377 = vst [vmem:[#allocation98_spill] sm:$0xff] %v8489_v26  ;;  %5495 = vpow2.f32 %v4073_v36  ;;  %3950 = vmax.xlane.f32.xlu2 %v3949_v34  ;;  %v4195_v54 = vadd.f32 %v8489_v26, %v8487_v25 }
 0xd29   : > { %5497 = vpow2.f32 %v4075_v33 }
 0xd2a   : > { %4196 = vadd.xlane.f32.xlu0 %v4195_v54 }
 0xd2b   : > { %v3903_v4 = vpop.xlane.xlu2 %3902 }
 0xd2c   : > { %v3989_v5 = vsub.f32 %v8309_v15, %v3903_v4  ;;  %v3990_v14 = vsub.f32 %v8311_v59, %v3903_v4  ;;  %v3955_v59 = vmax.f32 %v8429_v61, %v8431_v19 }
 0xd2e   : > { %v8499_v45 = vpop.eup %5495  ;;  %v4069_v28 = vmul.f32 1.442695, %v3989_v5  ;;  %v4071_v34 = vmul.f32 1.442695, %v3990_v14  ;;  %v3958_v14 = vmax.f32 %v8435_v52, %v8437_v9 }
 0xd2f   : > { %9378 = vst [vmem:[#allocation88_spill] sm:$0xff] %v8499_v45  ;;  %v8501_v36 = vpop.eup %5497  ;;  %3926 = vmax.xlane.f32.xlu1 %v3925_v53  ;;  %v3997_v53 = vsub.f32 %v8333_v56, %v8449_v7 }
 0xd30   : > { %9379 = vst [vmem:[#allocation89_spill] sm:$0xff] %v8501_v36  ;;  %5499 = vpow2.f32 %v4069_v28  ;;  %3953 = vmax.xlane.f32.xlu2 %v3952_v30  ;;  %v4192_v33 = vadd.f32 %v8501_v36, %v8499_v45 }
 0xd31   : > { %5501 = vpow2.f32 %v4071_v34  ;;  %v4085_v45 = vmul.f32 1.442695, %v3997_v53 }
 0xd32   : > { %4193 = vadd.xlane.f32.xlu0 %v4192_v33  ;;  %v3998_v33 = vsub.f32 %v8335_v2, %v8449_v7 }
 0xd33   : > { %v8505_v15 = vpop.xlane.xlu2 %3899 }
 0xd36   : > { %v8509_v54 = vpop.eup %5499 }
 0xd37   : > { %9380 = vst [vmem:[#allocation82_spill] sm:$0xff] %v8509_v54  ;;  %v8511_v4 = vpop.eup %5501 }
 0xd38   : > { %9381 = vst [vmem:[#allocation83_spill] sm:$0xff] %v8511_v4  ;;  %3956 = vmax.xlane.f32.xlu2 %v3955_v59  ;;  %v4189_v5 = vadd.f32 %v8511_v4, %v8509_v54  ;;  %v3961_v54 = vmax.f32 %v8445_v12, %v8447_v39 }
 0xd3a   : > { %4190 = vadd.xlane.f32.xlu1 %v4189_v5  ;;  %v4087_v5 = vmul.f32 1.442695, %v3998_v33 }
 0xd3b   : > { %v3897_v30 = vpop.xlane.xlu2 %3896 }
 0xd3c   : > { %v3985_v28 = vsub.f32 %v8297_v11, %v3897_v30  ;;  %v3986_v34 = vsub.f32 %v8299_v10, %v3897_v30 }
 0xd3e   : > { %v4061_v36 = vmul.f32 1.442695, %v3985_v28  ;;  %v4063_v59 = vmul.f32 1.442695, %v3986_v34 }
 0xd40   : > { %5503 = vpow2.f32 %v4061_v36  ;;  %3959 = vmax.xlane.f32.xlu2 %v3958_v14 }
 0xd41   : > { %5505 = vpow2.f32 %v4063_v59 }
 0xd42   : > { %5507 = vpow2.f32 %v4085_v45 }
 0xd43   : > { %v3894_v4 = vpop.xlane.xlu2 %3893  ;;  %5509 = vpow2.f32 %v4087_v5 }
 0xd44   : > { %v3983_v56 = vsub.f32 %v8291_v60, %v3894_v4  ;;  %v3984_v11 = vsub.f32 %v8293_v29, %v3894_v4  ;;  %v3999_v29 = vsub.f32 %v8339_v47, %v8441_v17  ;;  %v4000_v4 = vsub.f32 %v8341_v48, %v8441_v17  ;;  %v3921_v48 = vpop.xlane.xlu0 %3920 }
 0xd45   : > { %v3964_v47 = vmax.f32 %v8453_v35, %v8455_v27 }
 0xd46   : > { %v8527_v10 = vpop.eup %5503  ;;  %v4057_v2 = vmul.f32 1.442695, %v3983_v56  ;;  %v4059_v7 = vmul.f32 1.442695, %v3984_v11  ;;  %v4089_v34 = vmul.f32 1.442695, %v3999_v29 }
 0xd47   : > { %9382 = vst [vmem:[#allocation61_spill] sm:$0xff] %v8527_v10  ;;  %v8529_v30 = vpop.eup %5505  ;;  %v4091_v59 = vmul.f32 1.442695, %v4000_v4 }
 0xd48   : > { %9383 = vst [vmem:[#allocation37_spill] sm:$0xff] %v8529_v30  ;;  %5511 = vpow2.f32 %v4057_v2  ;;  %3962 = vmax.xlane.f32.xlu2 %v3961_v54  ;;  %v4183_v36 = vadd.f32 %v8529_v30, %v8527_v10  ;;  %v8533_v14 = vpop.eup %5507  ;;  %v4001_v2 = vsub.f32 %v8347_v22, %v3921_v48  ;;  %v3988_v22 = vsub.f32 %v8305_v23, %v8505_v15 }
 0xd49   : > { %5513 = vpow2.f32 %v4059_v7  ;;  %v8535_v45 = vpop.eup %5509  ;;  %v4002_v7 = vsub.f32 %v8349_v18, %v3921_v48 }
 0xd4a   : > { %4184 = vadd.xlane.f32.xlu0 %v4183_v36  ;;  %v4201_v54 = vadd.f32 %v8535_v45, %v8533_v14  ;;  %5515 = vpow2.f32 %v4089_v34  ;;  %v4093_v29 = vmul.f32 1.442695, %v4001_v2  ;;  %v3967_v34 = vmax.f32 %v8461_v31, %v8463_v55 }
 0xd4b   : > { %v8537_v60 = vpop.xlane.xlu2 %3890  ;;  %5517 = vpow2.f32 %v4091_v59  ;;  %v4095_v4 = vmul.f32 1.442695, %v4002_v7  ;;  %v4067_v59 = vmul.f32 1.442695, %v3988_v22 }
 0xd4c   : > { %5519 = vpow2.f32 %v4093_v29 }
 0xd4d   : > { %5521 = vpow2.f32 %v4095_v4 }
 0xd4e   : > { %v8543_v53 = vpop.eup %5511 }
 0xd4f   : > { %9384 = vst [vmem:[#allocation29_spill] sm:$0xff] %v8543_v53  ;;  %v8547_v28 = vpop.eup %5513 }
 0xd50   : > { %9385 = vst [vmem:[#allocation30_spill] sm:$0xff] %v8547_v28  ;;  %4202 = vadd.xlane.f32.xlu2 %v4201_v54  ;;  %v4180_v33 = vadd.f32 %v8547_v28, %v8543_v53  ;;  %v8555_v17 = vpop.eup %5515  ;;  %v3981_v28 = vsub.f32 %v8285_v43, %v8537_v60 }
 0xd51   : > { %v8557_v56 = vpop.eup %5517 }
 0xd52   : > { %4181 = vadd.xlane.f32.xlu1 %v4180_v33  ;;  %v4204_v36 = vadd.f32 %v8557_v56, %v8555_v17  ;;  %v3987_v33 = vsub.f32 %v8303_v6, %v8505_v15  ;;  %v4053_v10 = vmul.f32 1.442695, %v3981_v28 }
 0xd53   : > { %v8551_v5 = vpop.xlane.xlu2 %3887 }
 0xd54   : > { %v4065_v18 = vmul.f32 1.442695, %v3987_v33 }
 0xd56   : > { %5523 = vpow2.f32 %v4065_v18 }
 0xd57   : > { %5525 = vpow2.f32 %v4067_v59 }
 0xd58   : > { %3965 = vmax.xlane.f32.xlu2 %v3964_v47  ;;  %v8573_v47 = vpop.eup %5519 }
 0xd59   : > { %v8575_v48 = vpop.eup %5521 }
 0xd5a   : > { %v4207_v7 = vadd.f32 %v8575_v48, %v8573_v47 }
 0xd5b   : > { %v8559_v11 = vpop.xlane.xlu2 %3884 }
 0xd5c   : > { %v8581_v6 = vpop.eup %5523 }
 0xd5d   : > { %9386 = vst [vmem:[#allocation31_spill] sm:$0xff] %v8581_v6 }
 0xd60   : > { %4205 = vadd.xlane.f32.xlu2 %v4204_v36  ;;  %v8583_v36 = vpop.eup %5525 }
 0xd61   : > { %9387 = vst [vmem:[#allocation32_spill] sm:$0xff] %v8583_v36  ;;  %v4186_v33 = vadd.f32 %v8583_v36, %v8581_v6 }
 0xd63   : > { %v8565_v54 = vpop.xlane.xlu2 %3881 }
 0xd68   : > { %3968 = vmax.xlane.f32.xlu2 %v3967_v34 }
 0xd6b   : > { %v8577_v2 = vpop.xlane.xlu2 %3878 }
 0xd70   : > { %4208 = vadd.xlane.f32.xlu2 %v4207_v7 }
 0xd73   : > { %v3924_v23 = vpop.xlane.xlu2 %3923 }
 0xd74   : > { %v4003_v15 = vsub.f32 %v8357_v44, %v3924_v23  ;;  %v4004_v29 = vsub.f32 %v8359_v50, %v3924_v23 }
 0xd76   : > { %v4097_v4 = vmul.f32 1.442695, %v4003_v15  ;;  %v4099_v34 = vmul.f32 1.442695, %v4004_v29 }
 0xd78   : > { %5527 = vpow2.f32 %v4097_v4  ;;  %4187 = vadd.xlane.f32.xlu2 %v4186_v33 }
 0xd79   : > { %5529 = vpow2.f32 %v4099_v34 }
 0xd7b   : > { %v8589_v22 = vpop.xlane.xlu2 %3938 }
 0xd7e   : > { %v8591_v18 = vpop.eup %5527 }
 0xd7f   : > { %v8593_v59 = vpop.eup %5529 }
 0xd80   : > { %v4210_v7 = vadd.f32 %v8593_v59, %v8591_v18 }
 0xd82   : > { %4211 = vadd.xlane.f32.xlu2 %v4210_v7  ;;  %v3982_v7 = vsub.f32 %v8287_v1, %v8537_v60 }
 0xd83   : > { %v8597_v44 = vpop.xlane.xlu2 %3941 }
 0xd84   : > { %v4055_v36 = vmul.f32 1.442695, %v3982_v7 }
 0xd8b   : > { %v8599_v50 = vpop.xlane.xlu2 %3944 }
 0xd93   : > { %v3948_v23 = vpop.xlane.xlu2 %3947 }
 0xd94   : > { %v4019_v26 = vsub.f32 %v8411_v21, %v3948_v23 }
 0xd9b   : > { %v3951_v15 = vpop.xlane.xlu2 %3950 }
 0xd9c   : > { %v4021_v43 = vsub.f32 %v8417_v42, %v3951_v15 }
 0xda3   : > { %v3954_v29 = vpop.xlane.xlu2 %3953 }
 0xdab   : > { %v3957_v4 = vpop.xlane.xlu2 %3956 }
 0xdac   : > { %v4025_v34 = vsub.f32 %v8429_v61, %v3957_v4  ;;  %v4026_v33 = vsub.f32 %v8431_v19, %v3957_v4  ;;  %v4020_v19 = vsub.f32 %v8413_v40, %v3948_v23  ;;  %v4133_v40 = vmul.f32 1.442695, %v4021_v43 }
 0xdae   : > { %v4141_v53 = vmul.f32 1.442695, %v4025_v34  ;;  %v4143_v30 = vmul.f32 1.442695, %v4026_v33 }
 0xdb0   : > { %5531 = vpow2.f32 %v4141_v53  ;;  %v4129_v53 = vmul.f32 1.442695, %v4019_v26 }
 0xdb1   : > { %5533 = vpow2.f32 %v4143_v30  ;;  %v4022_v30 = vsub.f32 %v8419_v57, %v3951_v15  ;;  %v3977_v57 = vsub.f32 %v8273_v16, %v8559_v11 }
 0xdb2   : > { %5535 = vpow2.f32 %v4053_v10 }
 0xdb3   : > { %v3960_v6 = vpop.xlane.xlu2 %3959  ;;  %5537 = vpow2.f32 %v4055_v36  ;;  %v4023_v36 = vsub.f32 %v8423_v20, %v3954_v29  ;;  %v4045_v20 = vmul.f32 1.442695, %v3977_v57 }
 0xdb4   : > { %v4027_v25 = vsub.f32 %v8435_v52, %v3960_v6  ;;  %v4028_v61 = vsub.f32 %v8437_v9, %v3960_v6  ;;  %v4131_v52 = vmul.f32 1.442695, %v4020_v19  ;;  %v4135_v9 = vmul.f32 1.442695, %v4022_v30 }
 0xdb5   : > { %v4137_v43 = vmul.f32 1.442695, %v4023_v36 }
 0xdb6   : > { %v8611_v4 = vpop.eup %5531  ;;  %v4145_v34 = vmul.f32 1.442695, %v4027_v25  ;;  %v4147_v1 = vmul.f32 1.442695, %v4028_v61  ;;  %v8639_v61 = vpop.xlane.xlu1 %3932 }
 0xdb7   : > { %v8614_v60 = vpop.eup %5533 }
 0xdb8   : > { %5539 = vpow2.f32 %v4145_v34  ;;  %v4243_v21 = vadd.f32 %v8614_v60, %v8611_v4  ;;  %v8619_v28 = vpop.eup %5535  ;;  %v3979_v34 = vsub.f32 %v8279_v38, %v8551_v5 }
 0xdb9   : > { %5541 = vpow2.f32 %v4147_v1  ;;  %v8623_v6 = vpop.eup %5537 }
 0xdba   : > { %4244 = vadd.xlane.f32.xlu2 %v4243_v21  ;;  %5543 = vpow2.f32 %v4129_v53  ;;  %v4177_v16 = vadd.f32 %v8623_v6, %v8619_v28  ;;  %v3980_v53 = vsub.f32 %v8281_v46, %v8551_v5  ;;  %v4049_v38 = vmul.f32 1.442695, %v3979_v34  ;;  %v9388_v34 = vld [vmem:[#allocation74_spill] sm:$0xff] }
 0xdbb   : > { %v3963_v10 = vpop.xlane.xlu2 %3962  ;;  %5545 = vpow2.f32 %v4131_v52  ;;  %v4015_v52 = vsub.f32 %v8399_v0, %v8597_v44 }
 0xdbc   : > { %v4029_v42 = vsub.f32 %v8445_v12, %v3963_v10  ;;  %v4030_v25 = vsub.f32 %v8447_v39, %v3963_v10  ;;  %5547 = vpow2.f32 %v4133_v40  ;;  %v4024_v12 = vsub.f32 %v8425_v24, %v3954_v29 }
 0xdbd   : > { %5549 = vpow2.f32 %v4135_v9  ;;  %v3978_v39 = vsub.f32 %v8275_v32, %v8559_v11  ;;  %v4016_v9 = vsub.f32 %v8401_v41, %v8597_v44  ;;  %v4051_v5 = vmul.f32 1.442695, %v3980_v53 }
 0xdbe   : > { %v8627_v26 = vpop.eup %5539  ;;  %v4149_v23 = vmul.f32 1.442695, %v4029_v42  ;;  %v4151_v15 = vmul.f32 1.442695, %v4030_v25  ;;  %v4139_v29 = vmul.f32 1.442695, %v4024_v12  ;;  %v8667_v42 = vpop.xlane.xlu1 %3971 }
 0xdbf   : > { %v8630_v33 = vpop.eup %5541  ;;  %v4047_v1 = vmul.f32 1.442695, %v3978_v39  ;;  %v3936_v25 = vpop.xlane.xlu0 %3935  ;;  %v4121_v57 = vmul.f32 1.442695, %v4015_v52  ;;  %v4123_v44 = vmul.f32 1.442695, %v4016_v9 }
 0xdc0   : > { %5551 = vpow2.f32 %v4149_v23  ;;  %v4246_v7 = vadd.f32 %v8630_v33, %v8627_v26  ;;  %v8641_v19 = vpop.eup %5543 }
 0xdc1   : > { %5553 = vpow2.f32 %v4151_v15  ;;  %v8643_v24 = vpop.eup %5545 }
 0xdc2   : > { %4178 = vadd.xlane.f32.xlu2 %v4177_v16  ;;  %4247 = vadd.xlane.f32.xlu1 %v4246_v7  ;;  %v8647_v11 = vpop.eup %5547  ;;  %5555 = vpow2.f32 %v4045_v20  ;;  %v4234_v46 = vadd.f32 %v8643_v24, %v8641_v19  ;;  %v4011_v16 = vsub.f32 %v8385_v63, %v3936_v25  ;;  %v4017_v20 = vsub.f32 %v8405_v62, %v8599_v50 }
 0xdc3   : > { %v8645_v32 = vpop.xlane.xlu2 %4202  ;;  %v8651_v30 = vpop.eup %5549  ;;  %5557 = vpow2.f32 %v4137_v43 }
 0xdc4   : > { %5559 = vpow2.f32 %v4139_v29  ;;  %v4237_v0 = vadd.f32 %v8651_v30, %v8647_v11  ;;  %v4113_v63 = vmul.f32 1.442695, %v4011_v16  ;;  %v4125_v62 = vmul.f32 1.442695, %v4017_v20 }
 0xdc5   : > { %5561 = vpow2.f32 %v4047_v1  ;;  %v4018_v1 = vsub.f32 %v9388_v34, %v8599_v50 }
 0xdc6   : > { %v8655_v21 = vpop.eup %5551  ;;  %5563 = vpow2.f32 %v4049_v38 }
 0xdc7   : > { %v8659_v40 = vpop.eup %5553  ;;  %5565 = vpow2.f32 %v4051_v5 }
 0xdc8   : > { %v4249_v10 = vadd.f32 %v8659_v40, %v8655_v21  ;;  %v8671_v41 = vpop.eup %5555  ;;  %5567 = vpow2.f32 %v4121_v57 }
 0xdc9   : > { %v8673_v23 = vpop.eup %5557  ;;  %5569 = vpow2.f32 %v4123_v44 }
 0xdca   : > { %4250 = vadd.xlane.f32.xlu0 %v4249_v10  ;;  %4235 = vadd.xlane.f32.xlu2 %v4234_v46  ;;  %v8677_v39 = vpop.eup %5559  ;;  %v4127_v10 = vmul.f32 1.442695, %v4018_v1  ;;  %v3930_v46 = vpop.xlane.xlu1 %3929 }
 0xdcb   : > { %4238 = vadd.xlane.f32.xlu1 %v4237_v0  ;;  %v3966_v36 = vpop.xlane.xlu2 %3965  ;;  %v8680_v7 = vpop.eup %5561  ;;  %v4007_v16 = vsub.f32 %v8371_v3, %v3930_v46 }
 0xdcc   : > { %v4031_v15 = vsub.f32 %v8453_v35, %v3966_v36  ;;  %v4032_v12 = vsub.f32 %v8455_v27, %v3966_v36  ;;  %v9389_v35 = vld [vmem:[#allocation70_spill] sm:$0xff]  ;;  %v4240_v27 = vadd.f32 %v8677_v39, %v8673_v23  ;;  %v4171_v52 = vadd.f32 %v8680_v7, %v8671_v41  ;;  %v8691_v9 = vpop.eup %5563  ;;  %v9391_v36 = vld [vmem:[#allocation77_spill] sm:$0xff] }
 0xdcd   : > { %v4012_v53 = vsub.f32 %v9389_v35, %v3936_v25  ;;  %v8693_v38 = vpop.eup %5565  ;;  %v9390_v25 = vld [vmem:[#allocation76_spill] sm:$0xff] }
 0xdce   : > { %v4153_v43 = vmul.f32 1.442695, %v4031_v15  ;;  %v4155_v29 = vmul.f32 1.442695, %v4032_v12  ;;  %v8697_v5 = vpop.eup %5567  ;;  %v3973_v57 = vsub.f32 %v9390_v25, %v8577_v2  ;;  %v3974_v15 = vsub.f32 %v9391_v36, %v8577_v2  ;;  %v9393_v25 = vld [vmem:[#allocation40_spill] sm:$0xff] }
 0xdcf   : > { %v4115_v0 = vmul.f32 1.442695, %v4012_v53  ;;  %v8701_v44 = vpop.eup %5569  ;;  %v4174_v34 = vadd.f32 %v8693_v38, %v8691_v9  ;;  %v4105_v53 = vmul.f32 1.442695, %v4007_v16 }
 0xdd0   : > { %5571 = vpow2.f32 %v4153_v43  ;;  %v4008_v43 = vsub.f32 %v8373_v13, %v3930_v46  ;;  %v4039_v35 = vmul.f32 1.442695, %v3974_v15  ;;  %v4228_v2 = vadd.f32 %v8701_v44, %v8697_v5 }
 0xdd1   : > { %5573 = vpow2.f32 %v4155_v29  ;;  %v4037_v29 = vmul.f32 1.442695, %v3973_v57  ;;  %v4010_v57 = vsub.f32 %v9393_v25, %v8639_v61  ;;  %v4035_v15 = vsub.f32 %v8469_v8, %v8667_v42 }
 0xdd2   : > { %4241 = vadd.xlane.f32.xlu0 %v4240_v27  ;;  %5575 = vpow2.f32 %v4113_v63  ;;  %v4107_v27 = vmul.f32 1.442695, %v4008_v43 }
 0xdd3   : > { %4172 = vadd.xlane.f32.xlu1 %v4171_v52  ;;  %v8695_v50 = vpop.xlane.xlu2 %4205  ;;  %5577 = vpow2.f32 %v4125_v62  ;;  %v9392_v52 = vld [vmem:[#allocation50_spill] sm:$0xff]  ;;  %v4161_v8 = vmul.f32 1.442695, %v4035_v15 }
 0xdd4   : > { %5579 = vpow2.f32 %v4127_v10  ;;  %v4009_v62 = vsub.f32 %v9392_v52, %v8639_v61  ;;  %v9395_v52 = vld [vmem:[#allocation39_spill] sm:$0xff] }
 0xdd5   : > { %5581 = vpow2.f32 %v4115_v0 }
 0xdd6   : > { %v8705_v12 = vpop.eup %5571  ;;  %5583 = vpow2.f32 %v4037_v29  ;;  %v9394_v29 = vld [vmem:[#allocation75_spill] sm:$0xff] }
 0xdd7   : > { %v8708_v20 = vpop.eup %5573  ;;  %5585 = vpow2.f32 %v4039_v35 }
 0xdd8   : > { %v4252_v1 = vadd.f32 %v8708_v20, %v8705_v12  ;;  %v8717_v3 = vpop.eup %5575  ;;  %5587 = vpow2.f32 %v4105_v53 }
 0xdd9   : > { %v8719_v63 = vpop.eup %5577  ;;  %5589 = vpow2.f32 %v4107_v27 }
 0xdda   : > { %4175 = vadd.xlane.f32.xlu0 %v4174_v34  ;;  %4253 = vadd.xlane.f32.xlu2 %v4252_v1  ;;  %v8725_v0 = vpop.eup %5579  ;;  %v4036_v34 = vsub.f32 %v9394_v29, %v8667_v42  ;;  %v4111_v1 = vmul.f32 1.442695, %v4010_v57 }
 0xddb   : > { %4229 = vadd.xlane.f32.xlu1 %v4228_v2  ;;  %v3969_v13 = vpop.xlane.xlu2 %3968  ;;  %v8729_v36 = vpop.eup %5581 }
 0xddc   : > { %v4033_v10 = vsub.f32 %v8461_v31, %v3969_v13  ;;  %v4034_v46 = vsub.f32 %v8463_v55, %v3969_v13  ;;  %v4109_v31 = vmul.f32 1.442695, %v4009_v62  ;;  %v4231_v55 = vadd.f32 %v8725_v0, %v8719_v63  ;;  %v8739_v35 = vpop.eup %5583  ;;  %v3927_v13 = vpop.xlane.xlu1 %3926 }
 0xddd   : > { %v4222_v61 = vadd.f32 %v8729_v36, %v8717_v3  ;;  %v8741_v2 = vpop.eup %5585  ;;  %v4163_v53 = vmul.f32 1.442695, %v4036_v34  ;;  %v3975_v62 = vsub.f32 %v9395_v52, %v8565_v54  ;;  %v4005_v15 = vsub.f32 %v8365_v51, %v3927_v13  ;;  %v9397_v52 = vld [vmem:[#allocation71_spill] sm:$0xff] }
 0xdde   : > { %v4157_v16 = vmul.f32 1.442695, %v4033_v10  ;;  %v4159_v43 = vmul.f32 1.442695, %v4034_v46  ;;  %v8743_v27 = vpop.eup %5587  ;;  %v9396_v46 = vld [vmem:[#allocation49_spill] sm:$0xff]  ;;  %v4165_v34 = vadd.f32 %v8741_v2, %v8739_v35 }
 0xddf   : > { %v8747_v10 = vpop.eup %5589  ;;  %v3976_v25 = vsub.f32 %v9396_v46, %v8565_v54  ;;  %v4041_v29 = vmul.f32 1.442695, %v3975_v62  ;;  %v4013_v62 = vsub.f32 %v9397_v52, %v8589_v22  ;;  %v9398_v46 = vld [vmem:[#allocation54_spill] sm:$0xff] }
 0xde0   : > { %5591 = vpow2.f32 %v4157_v16  ;;  %v4216_v54 = vadd.f32 %v8747_v10, %v8743_v27 }
 0xde1   : > { %5593 = vpow2.f32 %v4159_v43  ;;  %v4006_v43 = vsub.f32 %v8367_v37, %v3927_v13 }
 0xde2   : > { %4232 = vadd.xlane.f32.xlu0 %v4231_v55  ;;  %5595 = vpow2.f32 %v4109_v31  ;;  %v4043_v55 = vmul.f32 1.442695, %v3976_v25  ;;  %v4014_v25 = vsub.f32 %v9398_v46, %v8589_v22  ;;  %v4200_v22 = vpop.xlane.xlu0 %4199 }
 0xde3   : > { %4223 = vadd.xlane.f32.xlu1 %v4222_v61  ;;  %v4209_v42 = vpop.xlane.xlu2 %4208  ;;  %5597 = vpow2.f32 %v4111_v1  ;;  %v4101_v61 = vmul.f32 1.442695, %v4005_v15 }
 0xde4   : > { %5599 = vpow2.f32 %v4161_v8  ;;  %v4103_v8 = vmul.f32 1.442695, %v4006_v43 }
 0xde5   : > { %5601 = vpow2.f32 %v4163_v53 }
 0xde6   : > { %v8751_v57 = vpop.eup %5591  ;;  %5603 = vpow2.f32 %v4041_v29 }
 0xde7   : > { %v8754_v16 = vpop.eup %5593  ;;  %5605 = vpow2.f32 %v4043_v55  ;;  %v4119_v55 = vmul.f32 1.442695, %v4014_v25 }
 0xde8   : > { %v4255_v31 = vadd.f32 %v8754_v16, %v8751_v57  ;;  %v8763_v1 = vpop.eup %5595  ;;  %5607 = vpow2.f32 %v4101_v61 }
 0xde9   : > { %v8765_v51 = vpop.eup %5597  ;;  %5609 = vpow2.f32 %v4103_v8 }
 0xdea   : > { %4166 = vadd.xlane.f32.xlu0 %v4165_v34  ;;  %4256 = vadd.xlane.f32.xlu2 %v4255_v31  ;;  %v8769_v53 = vpop.eup %5599  ;;  %v4219_v15 = vadd.f32 %v8765_v51, %v8763_v1  ;;  %v4117_v34 = vmul.f32 1.442695, %v4013_v62 }
 0xdeb   : > { %4217 = vadd.xlane.f32.xlu1 %v4216_v54  ;;  %v8767_v37 = vpop.xlane.xlu2 %4187  ;;  %v8771_v13 = vpop.eup %5601 }
 0xdec   : > { %v4258_v43 = vadd.f32 %v8771_v13, %v8769_v53  ;;  %v8781_v31 = vpop.eup %5603  ;;  %5611 = vpow2.f32 %v4117_v34 }
 0xded   : > { %v8783_v29 = vpop.eup %5605 }
 0xdee   : > { %v8785_v54 = vpop.eup %5607  ;;  %v4168_v52 = vadd.f32 %v8783_v29, %v8781_v31 }
 0xdef   : > { %v8787_v61 = vpop.eup %5609 }
 0xdf0   : > { %v4213_v62 = vadd.f32 %v8787_v61, %v8785_v54 }
 0xdf2   : > { %4220 = vadd.xlane.f32.xlu0 %v4219_v15  ;;  %4259 = vadd.xlane.f32.xlu2 %v4258_v43  ;;  %v8793_v46 = vpop.eup %5611 }
 0xdf5   : > { %v4212_v8 = vpop.xlane.xlu2 %4211 }
 0xdf6   : > { %5613 = vrcp.f32 %v4212_v8 }
 0xdf7   : > { %5615 = vpow2.f32 %v4119_v55  ;;  %v4197_v55 = vpop.xlane.xlu0 %4196 }
 0xdf8   : > { %5617 = vrcp.f32 %v4209_v42 }
 0xdf9   : > { %5619 = vrcp.f32 %v8695_v50  ;;  %v232_v50 = vld [vmem:[%s8962_s2 + $0xb8] sm:$0xff] }
 0xdfa   : > { %4169 = vadd.xlane.f32.xlu2 %v4168_v52  ;;  %4214 = vadd.xlane.f32.xlu0 %v4213_v62  ;;  %5621 = vrcp.f32 %v8645_v32 }
 0xdfb   : > { %5623 = vrcp.f32 %v4200_v22 }
 0xdfc   : > { %v5614_v25 = vpop.eup %5613  ;;  %5625 = vrcp.f32 %v4197_v55 }
 0xdfd   : > { %v8796_v15 = vpop.eup %5615  ;;  %v4323_v43 = vmul.f32 %v5614_v25, %v8591_v18  ;;  %v4324_v34 = vmul.f32 %v5614_v25, %v8593_v59 }
 0xdfe   : > { %v5618_v42 = vpop.eup %5617  ;;  %v4225_v8 = vadd.f32 %v8796_v15, %v8793_v46 }
 0xdff   : > { %4357 = vmatpush.xpose.msra.mxu2 %v4323_v43  ;;  %4380 = vmatpush.xpose.msra.mxu3 %v4324_v34  ;;  %v4321_v52 = vmul.f32 %v5618_v42, %v8573_v47  ;;  %v4322_v62 = vmul.f32 %v5618_v42, %v8575_v48  ;;  %v5620_v18 = vpop.eup %5619  ;;  %v4194_v47 = vpop.xlane.xlu0 %4193 }
 0xe00   : > { %v4319_v59 = vmul.f32 %v5620_v18, %v8555_v17  ;;  %v4320_v32 = vmul.f32 %v5620_v18, %v8557_v56  ;;  %v5622_v25 = vpop.eup %5621  ;;  %5627 = vrcp.f32 %v4194_v47  ;;  %v4191_v42 = vpop.xlane.xlu1 %4190  ;;  %v9399_v56 = vld [vmem:[#allocation97_spill] sm:$0xff]  ;;  %v9403_v47 = vld [vmem:[#allocation82_spill] sm:$0xff] }
 0xe01   : > { %v4317_v48 = vmul.f32 %v5622_v25, %v8533_v14  ;;  %v4318_v43 = vmul.f32 %v5622_v25, %v8535_v45  ;;  %v5624_v34 = vpop.eup %5623  ;;  %5629 = vrcp.f32 %v4191_v42 }
 0xe02   : > { %4226 = vadd.xlane.f32.xlu2 %v4225_v8  ;;  %v4315_v22 = vmul.f32 %v5624_v34, %v8475_v49  ;;  %v4316_v17 = vmul.f32 %v5624_v34, %v8477_v58  ;;  %v5626_v8 = vpop.eup %5625  ;;  %5631 = vrcp.f32 %v8767_v37  ;;  %v231_v58 = vld [vmem:[%s8962_s2 + $0xb0] sm:$0xff] }
 0xe03   : > { %4358 = vmatpush.xpose.msra.mxu2 %v4321_v52  ;;  %4381 = vmatpush.xpose.msra.mxu3 %v4322_v62  ;;  %v4313_v55 = vmul.f32 %v5626_v8, %v9399_v56  ;;  %v9400_v52 = vld [vmem:[#allocation98_spill] sm:$0xff]  ;;  %v9405_v37 = vld [vmem:[#allocation31_spill] sm:$0xff] }
 0xe04   : > { %350 = vperm.xlu1 %4909, %v232_v50   ;;  %v4314_v62 = vmul.f32 %v5626_v8, %v9400_v52  ;;  %v9401_v50 = vld [vmem:[#allocation88_spill] sm:$0xff] }
 0xe06   : > { %v5628_v14 = vpop.eup %5627 }
 0xe07   : > { %4359 = vmatpush.xpose.msra.mxu2 %v4319_v59  ;;  %4382 = vmatpush.xpose.msra.mxu3 %v4320_v32  ;;  %v4185_v45 = vpop.xlane.xlu0 %4184  ;;  %v4311_v18 = vmul.f32 %v5628_v14, %v9401_v50  ;;  %v9402_v59 = vld [vmem:[#allocation89_spill] sm:$0xff]  ;;  %v5630_v32 = vpop.eup %5629 }
 0xe08   : > { %v4312_v49 = vmul.f32 %v5628_v14, %v9402_v59  ;;  %5633 = vrcp.f32 %v4185_v45  ;;  %v4182_v25 = vpop.xlane.xlu1 %4181  ;;  %v5632_v42 = vpop.eup %5631  ;;  %v9409_v50 = vld [vmem:[#allocation29_spill] sm:$0xff]  ;;  %v9410_v59 = vld [vmem:[#allocation30_spill] sm:$0xff] }
 0xe09   : > { %5635 = vrcp.f32 %v4182_v25 }
 0xe0b   : > { %4360 = vmatpush.xpose.msra.mxu2 %v4317_v48  ;;  %4383 = vmatpush.xpose.msra.mxu3 %v4318_v43  ;;  %v4309_v48 = vmul.f32 %v5630_v32, %v9403_v47  ;;  %v9404_v43 = vld [vmem:[#allocation83_spill] sm:$0xff] }
 0xe0c   : > { %v4310_v34 = vmul.f32 %v5630_v32, %v9404_v43 }
 0xe0e   : > { %v5634_v56 = vpop.eup %5633 }
 0xe0f   : > { %4361 = vmatpush.xpose.msra.mxu2 %v4315_v22  ;;  %4384 = vmatpush.xpose.msra.mxu3 %v4316_v17  ;;  %v4307_v22 = vmul.f32 %v5632_v42, %v9405_v37  ;;  %v9406_v17 = vld [vmem:[#allocation32_spill] sm:$0xff]  ;;  %v5636_v45 = vpop.eup %5635 }
 0xe10   : > { %v4308_v8 = vmul.f32 %v5632_v42, %v9406_v17 }
 0xe13   : > { %4362 = vmatpush.xpose.msra.mxu2 %v4313_v55  ;;  %4385 = vmatpush.xpose.msra.mxu3 %v4314_v62  ;;  %v9407_v55 = vld [vmem:[#allocation61_spill] sm:$0xff] }
 0xe14   : > { %v4305_v52 = vmul.f32 %v5634_v56, %v9407_v55  ;;  %v9408_v62 = vld [vmem:[#allocation37_spill] sm:$0xff] }
 0xe15   : > { %v4306_v14 = vmul.f32 %v5634_v56, %v9408_v62 }
 0xe17   : > { %4363 = vmatpush.xpose.msra.mxu2 %v4311_v18  ;;  %4386 = vmatpush.xpose.msra.mxu3 %v4312_v49  ;;  %v4303_v18 = vmul.f32 %v5636_v45, %v9409_v50  ;;  %v4304_v49 = vmul.f32 %v5636_v45, %v9410_v59 }
 0xe1a   : > { %345 = vperm.xlu2 %4910, %v231_v58  }
 0xe1b   : > { %4364 = vmatpush.xpose.msra.mxu2 %v4309_v48  ;;  %4387 = vmatpush.xpose.msra.mxu3 %v4310_v34 }
 0xe1f   : > { %4365 = vmatpush.xpose.msra.mxu2 %v4307_v22  ;;  %4388 = vmatpush.xpose.msra.mxu3 %v4308_v8 }
 0xe23   : > { %4366 = vmatpush.xpose.msra.mxu2 %v4305_v52  ;;  %4389 = vmatpush.xpose.msra.mxu3 %v4306_v14 }
 0xe27   : > { %4367 = vmatpush.xpose.msra.mxu2 %v4303_v18  ;;  %4390 = vmatpush.xpose.msra.mxu3 %v4304_v49 }
 0xe2d   : > { %v8830_v32 = vpop.xlane.xlu2 %4244 }
 0xe35   : > { %v4179_v58 = vpop.xlane.xlu2 %4178  ;;  %v8832_v25 = vpop.xlane.xlu1 %4247 }
 0xe36   : > { %5637 = vrcp.f32 %v4179_v58 }
 0xe3c   : > { %v5638_v47 = vpop.eup %5637 }
 0xe3d   : > { %v4251_v48 = vpop.xlane.xlu0 %4250  ;;  %v4301_v43 = vmul.f32 %v5638_v47, %v8619_v28  ;;  %v4302_v34 = vmul.f32 %v5638_v47, %v8623_v6  ;;  %v8840_v22 = vpop.xlane.xlu2 %4235 }
 0xe3e   : > { %v8836_v42 = vpop.xlane.xlu1 %4238 }
 0xe3f   : > { %4368 = vmatpush.xpose.msra.mxu2 %v4301_v43  ;;  %4391 = vmatpush.xpose.msra.mxu3 %v4302_v34 }
 0xe45   : > { %v8838_v37 = vpop.xlane.xlu0 %4241 }
 0xe46   : > { %v4173_v17 = vpop.xlane.xlu1 %4172 }
 0xe4d   : > { %v4176_v8 = vpop.xlane.xlu0 %4175  ;;  %v4254_v55 = vpop.xlane.xlu2 %4253 }
 0xe4e   : > { %5639 = vrcp.f32 %v4176_v8  ;;  %v8848_v59 = vpop.xlane.xlu1 %4229 }
 0xe4f   : > { %5641 = vrcp.f32 %v4173_v17 }
 0xe54   : > { %v5640_v56 = vpop.eup %5639 }
 0xe55   : > { %v4299_v52 = vmul.f32 %v5640_v56, %v8691_v9  ;;  %v4300_v28 = vmul.f32 %v5640_v56, %v8693_v38  ;;  %v5642_v62 = vpop.eup %5641  ;;  %v8846_v50 = vpop.xlane.xlu0 %4232 }
 0xe56   : > { %v4297_v6 = vmul.f32 %v5642_v62, %v8671_v41  ;;  %v4298_v14 = vmul.f32 %v5642_v62, %v8680_v7  ;;  %v8850_v9 = vpop.xlane.xlu1 %4223  ;;  %v9411_v62 = vld [vmem:[#allocation17_spill] sm:$0xff] }
 0xe57   : > { %4369 = vmatpush.xpose.msra.mxu2 %v4299_v52  ;;  %4392 = vmatpush.xpose.msra.mxu3 %v4300_v28 }
 0xe5b   : > { %4370 = vmatpush.xpose.msra.mxu2 %v4297_v6  ;;  %4393 = vmatpush.xpose.msra.mxu3 %v4298_v14 }
 0xe5d   : > { %v4257_v45 = vpop.xlane.xlu2 %4256  ;;  %v4167_v49 = vpop.xlane.xlu0 %4166 }
 0xe5e   : > { %v8860_v28 = vpop.xlane.xlu1 %4217 }
 0xe65   : > { %v4260_v18 = vpop.xlane.xlu2 %4259 }
 0xe6d   : > { %v4170_v58 = vpop.xlane.xlu2 %4169 }
 0xe6e   : > { %5643 = vrcp.f32 %v4170_v58 }
 0xe6f   : > { %5645 = vrcp.f32 %v4167_v49  ;;  %v9414_v49 = vld [vmem:[#allocation20_spill] sm:$0xff] }
 0xe70   : > { %5647 = vrcp.f32 %v4260_v18 }
 0xe71   : > { %5649 = vrcp.f32 %v4257_v45 }
 0xe72   : > { %5651 = vrcp.f32 %v4254_v55 }
 0xe73   : > { %5653 = vrcp.f32 %v4251_v48 }
 0xe74   : > { %v5644_v38 = vpop.eup %5643  ;;  %5655 = vrcp.f32 %v8832_v25 }
 0xe75   : > { %v8852_v47 = vpop.xlane.xlu2 %4226  ;;  %v4295_v41 = vmul.f32 %v5644_v38, %v8781_v31  ;;  %v4296_v7 = vmul.f32 %v5644_v38, %v8783_v29  ;;  %v5646_v43 = vpop.eup %5645  ;;  %5657 = vrcp.f32 %v8830_v32 }
 0xe76   : > { %v5648_v34 = vpop.eup %5647  ;;  %v4293_v17 = vmul.f32 %v5646_v43, %v8739_v35  ;;  %v4294_v8 = vmul.f32 %v5646_v43, %v8741_v2  ;;  %v9412_v35 = vld [vmem:[#allocation18_spill] sm:$0xff]  ;;  %v351_v48 = vpop.permute.xlu1 %350  ;;  %5659 = vrcp.f32 %v8838_v37 }
 0xe77   : > { %4371 = vmatpush.xpose.msra.mxu2 %v4295_v41  ;;  %4394 = vmatpush.xpose.msra.mxu3 %v4296_v7  ;;  %v4355_v56 = vmul.f32 %v5648_v34, %v8769_v53  ;;  %v4356_v52 = vmul.f32 %v5648_v34, %v8771_v13  ;;  %v5650_v31 = vpop.eup %5649  ;;  %v8880_v58 = vadd.f32 %v9414_v49, %v351_v48  ;;  %5661 = vrcp.f32 %v8836_v42 }
 0xe78   : > { %v4353_v2 = vmul.f32 %v5650_v31, %v8751_v57  ;;  %v4354_v53 = vmul.f32 %v5650_v31, %v8754_v16  ;;  %v5652_v13 = vpop.eup %5651  ;;  %v9413_v57 = vld [vmem:[#allocation19_spill] sm:$0xff]  ;;  %5663 = vrcp.f32 %v8840_v22 }
 0xe79   : > { %v4351_v55 = vmul.f32 %v5652_v13, %v8705_v12  ;;  %v4352_v45 = vmul.f32 %v5652_v13, %v8708_v20  ;;  %v5654_v18 = vpop.eup %5653  ;;  %v8877_v16 = vadd.f32 %v9413_v57, %v351_v48  ;;  %5665 = vrcp.f32 %v8846_v50 }
 0xe7a   : > { %v4349_v38 = vmul.f32 %v5654_v18, %v8655_v21  ;;  %v4350_v25 = vmul.f32 %v5654_v18, %v8659_v40  ;;  %v5656_v41 = vpop.eup %5655  ;;  %5667 = vrcp.f32 %v8848_v59 }
 0xe7b   : > { %4372 = vmatpush.xpose.msra.mxu2 %v4293_v17  ;;  %4395 = vmatpush.xpose.msra.mxu3 %v4294_v8  ;;  %v4347_v12 = vmul.f32 %v5656_v41, %v8627_v26  ;;  %v4348_v20 = vmul.f32 %v5656_v41, %v8630_v33  ;;  %v5658_v32 = vpop.eup %5657  ;;  %5669 = vrcp.f32 %v8852_v47 }
 0xe7c   : > { %v4345_v21 = vmul.f32 %v5658_v32, %v8611_v4  ;;  %v4346_v40 = vmul.f32 %v5658_v32, %v8614_v60  ;;  %v5660_v7 = vpop.eup %5659  ;;  %5671 = vrcp.f32 %v8850_v9 }
 0xe7d   : > { %v346_v29 = vpop.permute.xlu2 %345  ;;  %v4343_v37 = vmul.f32 %v5660_v7, %v8673_v23  ;;  %v4344_v26 = vmul.f32 %v5660_v7, %v8677_v39  ;;  %v5662_v43 = vpop.eup %5661 }
 0xe7e   : > { %v8863_v6 = vadd.f32 %v9411_v62, %v346_v29  ;;  %v8866_v14 = vadd.f32 %v9412_v35, %v346_v29  ;;  %v4341_v33 = vmul.f32 %v5662_v43, %v8647_v11  ;;  %v4342_v4 = vmul.f32 %v5662_v43, %v8651_v30  ;;  %v5664_v42 = vpop.eup %5663  ;;  %v4221_v30 = vpop.xlane.xlu0 %4220 }
 0xe7f   : > { %4403 = vmatpush.xpose.msrb.mxu2 %v4355_v56  ;;  %4426 = vmatpush.xpose.msrb.mxu3 %v4356_v52  ;;  %v4339_v60 = vmul.f32 %v5664_v42, %v8641_v19  ;;  %v4340_v23 = vmul.f32 %v5664_v42, %v8643_v24  ;;  %v5666_v22 = vpop.eup %5665  ;;  %5673 = vrcp.f32 %v4221_v30 }
 0xe80   : > { %4373 = vmatmul.f32.vlgmr.msra.gmra.mxu2 %v8863_v6  ;;  %4396 = vmatmul.f32.vlgmr.msra.gmra.mxu3 %v8866_v14  ;;  %v4337_v39 = vmul.f32 %v5666_v22, %v8719_v63  ;;  %v4338_v11 = vmul.f32 %v5666_v22, %v8725_v0  ;;  %v5668_v50 = vpop.eup %5667  ;;  %5675 = vrcp.f32 %v8860_v28 }
 0xe81   : > { %v4335_v59 = vmul.f32 %v5668_v50, %v8697_v5  ;;  %v4336_v19 = vmul.f32 %v5668_v50, %v8701_v44  ;;  %v5670_v24 = vpop.eup %5669 }
 0xe82   : > { %v4333_v47 = vmul.f32 %v5670_v24, %v8793_v46  ;;  %v4334_v63 = vmul.f32 %v5670_v24, %v8796_v15  ;;  %v5672_v34 = vpop.eup %5671 }
 0xe83   : > { %4404 = vmatpush.xpose.msrb.mxu2 %v4353_v2  ;;  %4427 = vmatpush.xpose.msrb.mxu3 %v4354_v53  ;;  %v4331_v9 = vmul.f32 %v5672_v34, %v8717_v3  ;;  %v4332_v5 = vmul.f32 %v5672_v34, %v8729_v36 }
 0xe85   : > { %v5674_v17 = vpop.eup %5673 }
 0xe86   : > { %v4215_v0 = vpop.xlane.xlu0 %4214  ;;  %v4329_v44 = vmul.f32 %v5674_v17, %v8763_v1  ;;  %v4330_v46 = vmul.f32 %v5674_v17, %v8765_v51  ;;  %v5676_v8 = vpop.eup %5675 }
 0xe87   : > { %4405 = vmatpush.xpose.msrb.mxu2 %v4351_v55  ;;  %4428 = vmatpush.xpose.msrb.mxu3 %v4352_v45  ;;  %5677 = vrcp.f32 %v4215_v0  ;;  %v4327_v15 = vmul.f32 %v5676_v8, %v8743_v27  ;;  %v4328_v56 = vmul.f32 %v5676_v8, %v8747_v10 }
 0xe88   : > { %4376 = vmatmul.f32.gmra.mxu2 %v8877_v16  ;;  %4399 = vmatmul.f32.gmra.mxu3 %v8880_v58 }
 0xe8b   : > { %4406 = vmatpush.xpose.msrb.mxu2 %v4349_v38  ;;  %4429 = vmatpush.xpose.msrb.mxu3 %v4350_v25 }
 0xe8d   : > { %v5678_v52 = vpop.eup %5677 }
 0xe8e   : > { %v4325_v3 = vmul.f32 %v5678_v52, %v8785_v54  ;;  %v4326_v36 = vmul.f32 %v5678_v52, %v8787_v61 }
 0xe8f   : > { %4407 = vmatpush.xpose.msrb.mxu2 %v4347_v12  ;;  %4430 = vmatpush.xpose.msrb.mxu3 %v4348_v20 }
 0xe93   : > { %4408 = vmatpush.xpose.msrb.mxu2 %v4345_v21  ;;  %4431 = vmatpush.xpose.msrb.mxu3 %v4346_v40 }
 0xe97   : > { %4409 = vmatpush.xpose.msrb.mxu2 %v4343_v37  ;;  %4432 = vmatpush.xpose.msrb.mxu3 %v4344_v26 }
 0xe9b   : > { %4410 = vmatpush.xpose.msrb.mxu2 %v4341_v33  ;;  %4433 = vmatpush.xpose.msrb.mxu3 %v4342_v4 }
 0xe9f   : > { %4411 = vmatpush.xpose.msrb.mxu2 %v4339_v60  ;;  %4434 = vmatpush.xpose.msrb.mxu3 %v4340_v23 }
 0xea3   : > { %4412 = vmatpush.xpose.msrb.mxu2 %v4337_v39  ;;  %4435 = vmatpush.xpose.msrb.mxu3 %v4338_v11 }
 0xea7   : > { %4413 = vmatpush.xpose.msrb.mxu2 %v4335_v59  ;;  %4436 = vmatpush.xpose.msrb.mxu3 %v4336_v19 }
 0xeab   : > { %4414 = vmatpush.xpose.msrb.mxu2 %v4333_v47  ;;  %4437 = vmatpush.xpose.msrb.mxu3 %v4334_v63 }
 0xeaf   : > { %4415 = vmatpush.xpose.msrb.mxu2 %v4331_v9  ;;  %4438 = vmatpush.xpose.msrb.mxu3 %v4332_v5 }
 0xeb3   : > { %4416 = vmatpush.xpose.msrb.mxu2 %v4329_v44  ;;  %4439 = vmatpush.xpose.msrb.mxu3 %v4330_v46 }
 0xeb7   : > { %4417 = vmatpush.xpose.msrb.mxu2 %v4327_v15  ;;  %4440 = vmatpush.xpose.msrb.mxu3 %v4328_v56 }
 0xebb   : > { %4418 = vmatpush.xpose.msrb.mxu2 %v4325_v3  ;;  %4441 = vmatpush.xpose.msrb.mxu3 %v4326_v36 }
 0xebe   : > { %4419 = vmatmul.f32.vlgmr.msrb.gmra.mxu2 %v8863_v6  ;;  %4442 = vmatmul.f32.vlgmr.msrb.gmra.mxu3 %v8866_v14 }
 0xec6   : > { %4422 = vmatmul.f32.gmra.mxu2 %v8877_v16  ;;  %4445 = vmatmul.f32.gmra.mxu3 %v8880_v58 }
 0xf03   : > { %v4374_v27 = vpop.f32.mrf.mxu2  ;;  %v4397_v10 = vpop.f32.mrf.mxu3 }
 0xf04   : > { %v4398_v1 = vadd.f32 %v4397_v10, %v4374_v27 }
 0xf06   : > { %4449 = vst [vmem:[%s6463_s27 + $0x60] sm:$0xff] %v4398_v1 }
 0xf0b   : > { %v4377_v51 = vpop.f32.mrf.mxu2  ;;  %v4400_v54 = vpop.f32.mrf.mxu3 }
 0xf0c   : > { %v4401_v61 = vadd.f32 %v4400_v54, %v4377_v51 }
 0xf0e   : > { %4451 = vst [vmem:[%s6463_s27 + $0x70] sm:$0xff] %v4401_v61 }
 0xf41   : > { %v4420_v28 = vpop.f32.mrf.mxu2  ;;  %v4443_v31 = vpop.f32.mrf.mxu3 }
 0xf42   : > { %v4444_v29 = vadd.f32 %v4443_v31, %v4420_v28 }
 0xf44   : > { %4450 = vst [vmem:[%s6463_s27 + $0x68] sm:$0xff] %v4444_v29 }
 0xf49   : > { %v4423_v62 = vpop.f32.mrf.mxu2  ;;  %v4446_v6 = vpop.f32.mrf.mxu3 }
 0xf4a   : > { %v4447_v35 = vadd.f32 %v4446_v6, %v4423_v62 }
 0xf4c   : > { %4452 = vst [vmem:[%s6463_s27 + $0x78] sm:$0xff] %v4447_v35 }
 0xf4d   : > { %5706 = shalt.err (!%p5703_p3)
}
 0xf4e   : > { %s5744_s25 = smov 256   ;;  %s5745_s27 = smov 16  }
 0xf4f   : > { %4865 = dma.vmem_to_hbm [thread:$0]  (%p5804_p5), %s4467_s28, 2048, %s4469_s29, %s4454_s30, %s5744_s25, %s5744_s25, %s5745_s27  }
 0xf50 PF: > { %p4871_p4 = scmp.ge.s32.totalorder %s5741_s15, 2  ;;  %s4483_s10 = sand.u32 1, %s5729_s12  }
 0xf51   : > { %s4484_s11 = scalar_lea.sflag [#allocation3], %s4483_s10 }
 0xf52   : > { %p4868_p7 = pnand %p4871_p4, %p5808_p6 }
 0xf54   : > { %p4869_p8 = pneg %p4868_p7 }
 0xf56   : > { %5724 = dma.done.wait (%p4869_p8), %s4484_s11, 2048  }
 0xf57   : > { %5726 = vsyncadd (%p4869_p8), %s4484_s11, 4294965248  ;;  %p13_p9 = scmp.ge.s32.totalorder %s5791_s18, 4   ;;  %s9415_s12 = smov %s5733_s13 }
 0xf58   : > { %s9416_s13 = smov %s5737_s14  ;;  %s9417_s14 = smov %s5802_s21 }
 0xf59   : > { %s9418_s15 = smov %s5791_s18  ;;  %15 = sbr.rel (!%p13_p9) target bundleno = 3 (0x3), region = 67 }
 0xf5e   :  { %4490 = vsyncpa [#allocation3], 1 }
 0xf5f   :  { %4492 = vsyncpa [#allocation3 + $0x1], 1 }

</bundles_post_ra>
